<compile_context>
chip_gen: v5e
topology: v5e:2x2
jax: 0.10.0
libtpu: 0.0.40
codegen_flags: <defaults>
</compile_context>

<pallas_src>
import functools

import jax
import jax.numpy as jnp
from jax.experimental import pallas as pl
from jax.experimental.pallas import tpu as pltpu


# ----------------------------------------------------------------------------
# Small helpers
# ----------------------------------------------------------------------------
def _round_up(x, m):
    return ((x + m - 1) // m) * m


@functools.lru_cache(maxsize=None)
def _vmem_limit_bytes():
    """Generation-aware scoped-VMEM limit (v5e/v6e: 128 MiB phys, v7x: 64 MiB)."""
    cap = 64 * 1024 * 1024
    try:
        cap = int(pltpu.get_tpu_info().vmem_capacity_bytes)
    except Exception:
        pass
    # ~25% headroom for compiler-internal scratch, never ask for more than 96 MiB.
    return max(32 * 1024 * 1024, min(cap * 3 // 4, 96 * 1024 * 1024))


def _pick_batch_block(Bp, target=256):
    """Largest divisor of Bp that is a multiple of 8 and <= target.

    A large BB amortises the MXU fill/drain latency of the per-timestep
    (BB,H)@(H,3H) matmul (target ~128 on v5e, ~256 on v6e/v7x).  On v7x prefer
    Bp//BB >= 2 so the "parallel" batch axis spans both TensorCores (only
    possible once Bp >= 2*target).
    """
    best = 8
    d = 8
    while d <= min(Bp, target):
        if Bp % d == 0:
            best = d
        d += 8
    return best


def _pick_time_chunk(T, BB, Hp, D, budget_bytes):
    """Largest divisor of T whose per-chunk VMEM working set fits the budget."""
    per_t = BB * (3 * Hp * 4      # gx scratch, f32, single copy
                  + 2 * D * 4     # input chunk, double-buffered (<= f32)
                  + 2 * Hp * 4)   # output sequence chunk, double-buffered
    cap = max(1, budget_bytes // max(per_t, 1))
    tb = 1
    for d in range(1, T + 1):
        if T % d == 0 and d <= cap:
            tb = d
    return tb


# ----------------------------------------------------------------------------
# GRU layer kernel: one grid step = one batch block x one chunk of timesteps.
# PyTorch nn.GRU gate order (r, z, n) and update rule are reproduced exactly.
# ----------------------------------------------------------------------------
def _gru_layer_kernel(*refs, fuse_heads, hidden, mxu_dtype, unroll):
    if fuse_heads:
        (x_ref, w_ih_ref, b_gx_ref, w_hh_ref, b_hn_ref, h0_ref,
         wh_ref, bh_ref, out_ref, h_scratch, gx_vmem) = refs
    else:
        (x_ref, w_ih_ref, b_gx_ref, w_hh_ref, b_hn_ref, h0_ref,
         y_ref, hlast_ref, h_scratch, gx_vmem) = refs

    H = hidden
    TB, BB, D = x_ref.shape
    c = pl.program_id(1)                       # time-chunk index (sequential)

    @pl.when(c == 0)
    def _():                                   # restart recurrence for this batch block
        h_scratch[...] = h0_ref[...]

    # -- chunk prologue: input gates for all TB timesteps in one MXU op --------
    # (off the serial h chain; b_ih + b_hh[r,z] already folded into b_gx)
    x2d = x_ref[...].reshape(TB * BB, D).astype(mxu_dtype)
    gx = jnp.dot(x2d, w_ih_ref[...], preferred_element_type=jnp.float32)
    gx_vmem[...] = (gx + b_gx_ref[...]).reshape(TB, BB, 3 * H)

    whh = w_hh_ref[...]                                         # (H, 3H) fused
    bhn = jnp.broadcast_to(b_hn_ref[...], (BB, H))              # hoisted broadcast

    def step(tt, h_prev):
        gxt = gx_vmem[tt]                                       # (BB, 3H) f32
        gh = jnp.dot(h_prev.astype(mxu_dtype), whh,
                     preferred_element_type=jnp.float32)        # (BB, 3H)
        r = jax.nn.sigmoid(gxt[:, :H] + gh[:, :H])
        z = jax.nn.sigmoid(gxt[:, H:2 * H] + gh[:, H:2 * H])
        n = jnp.tanh(gxt[:, 2 * H:] + r * (gh[:, 2 * H:] + bhn))
        h_new = n + z * (h_prev - n)                            # == (1-z)*n + z*h
        if not fuse_heads:
            y_ref[tt] = h_new.astype(y_ref.dtype)               # next layer's input
        return h_new

    h_last = jax.lax.fori_loop(0, TB, step, h_scratch[...], unroll=unroll)
    h_scratch[...] = h_last                                     # carry across chunks

    if fuse_heads:
        @pl.when(c == pl.num_programs(1) - 1)
        def _():                                                # fused [fc_reg | fc_clf]
            out_ref[...] = (jnp.dot(h_last.astype(mxu_dtype), wh_ref[...],
                                    preferred_element_type=jnp.float32)
                            + bh_ref[...]).astype(out_ref.dtype)
    else:
        hlast_ref[...] = h_last                                 # resident (BB, H) block


def gru_layer(x_tbd, w_ih, b_gx, w_hh, b_hn, h0, *, hidden, mxu_dtype, seq_dtype,
              w_heads=None, b_heads=None, time_chunk=None, batch_block=None):
    """Run one GRU layer over a time-major, batch/hidden-padded input.

    Returns (hidden sequence (T, Bp, Hp) in seq_dtype, final hidden (Bp, Hp) f32),
    or — if w_heads is given — the fused head output (Bp, 2*O) f32.
    """
    T, Bp, D = x_tbd.shape
    Hp = hidden
    assert Hp % 128 == 0 and Bp % 8 == 0, "pad hidden to 128 and batch to 8"

    BB = batch_block if batch_block is not None else _pick_batch_block(Bp)
    limit = _vmem_limit_bytes()
    w_bytes = (D + Hp) * 3 * Hp * jnp.dtype(mxu_dtype).itemsize
    TB = (time_chunk if time_chunk is not None
          else _pick_time_chunk(T, BB, Hp, D, max(limit // 2 - w_bytes, 2 << 20)))
    assert T % TB == 0 and Bp % BB == 0
    grid = (Bp // BB, T // TB)                  # (parallel batch, sequential time)

    fuse_heads = w_heads is not None
    kernel = functools.partial(
        _gru_layer_kernel, fuse_heads=fuse_heads, hidden=Hp,
        mxu_dtype=mxu_dtype, unroll=min(TB, 8))   # moderate unroll

    # Constant-index operands: single-buffered (their index_map never changes).
    const = dict(pipeline_mode=pl.Buffered(1))

    in_specs = [
        pl.BlockSpec((TB, BB, D), lambda b, c: (c, b, 0)),             # input chunk
        pl.BlockSpec((D, 3 * Hp), lambda b, c: (0, 0), **const),       # W_ih (fused r|z|n)
        pl.BlockSpec((1, 3 * Hp), lambda b, c: (0, 0), **const),       # b_ih + b_hh[r,z]
        pl.BlockSpec((Hp, 3 * Hp), lambda b, c: (0, 0), **const),      # W_hh (fused r|z|n)
        pl.BlockSpec((1, Hp), lambda b, c: (0, 0), **const),           # b_hh[n]
        pl.BlockSpec((BB, Hp), lambda b, c: (b, 0)),                   # h0
    ]
    args = [x_tbd, w_ih, b_gx, w_hh, b_hn, h0]

    if fuse_heads:
        O2 = w_heads.shape[1]
        in_specs += [pl.BlockSpec((Hp, O2), lambda b, c: (0, 0), **const),
                     pl.BlockSpec((1, O2), lambda b, c: (0, 0), **const)]
        args += [w_heads, b_heads]
        out_specs = pl.BlockSpec((BB, O2), lambda b, c: (b, 0))
        out_shape = jax.ShapeDtypeStruct((Bp, O2), jnp.float32)
    else:
        out_specs = (pl.BlockSpec((TB, BB, Hp), lambda b, c: (c, b, 0)),
                     pl.BlockSpec((BB, Hp), lambda b, c: (b, 0)))
        out_shape = (jax.ShapeDtypeStruct((T, Bp, Hp), seq_dtype),
                     jax.ShapeDtypeStruct((Bp, Hp), jnp.float32))

    return pl.pallas_call(
        kernel,
        out_shape=out_shape,
        grid_spec=pltpu.PrefetchScalarGridSpec(
            num_scalar_prefetch=0,
            grid=grid,
            in_specs=in_specs,
            out_specs=out_specs,
            scratch_shapes=[pltpu.VMEM((BB, Hp), jnp.float32),             # carried h
                            pltpu.VMEM((TB, BB, 3 * Hp), jnp.float32)]),   # chunk gx
        compiler_params=pltpu.CompilerParams(
            dimension_semantics=("parallel", "arbitrary"),
            vmem_limit_bytes=limit),
    )(*args)


# ----------------------------------------------------------------------------
# Parameters (mirrors torch: xavier_uniform_ weights, zero biases; gate order
# r, z, n; fused/transposed layout W_ih (din, 3H), W_hh (H, 3H)).
# ----------------------------------------------------------------------------
def xavier_uniform(key, shape, fan_in, fan_out):
    bound = (6.0 / (fan_in + fan_out)) ** 0.5
    return jax.random.uniform(key, shape, jnp.float32, -bound, bound)


def init_params(key, input_dim, hidden_dim, output_dim, n_layers):
    H = hidden_dim
    O = output_dim // 2
    gru = []
    for i in range(n_layers):
        din = input_dim if i == 0 else H
        key, k1, k2 = jax.random.split(key, 3)
        gru.append(dict(
            w_ih=xavier_uniform(k1, (din, 3 * H), fan_in=din, fan_out=3 * H),
            b_ih=jnp.zeros((1, 3 * H), jnp.float32),
            w_hh=xavier_uniform(k2, (H, 3 * H), fan_in=H, fan_out=3 * H),
            b_hh=jnp.zeros((1, 3 * H), jnp.float32),
        ))
    key, k3, k4 = jax.random.split(key, 3)
    w_reg = xavier_uniform(k3, (H, O), fan_in=H, fan_out=O)
    w_clf = xavier_uniform(k4, (H, O), fan_in=H, fan_out=O)
    return dict(gru=gru,
                w_heads=jnp.concatenate([w_reg, w_clf], axis=1),   # (H, 2O) fused heads
                b_heads=jnp.zeros((1, 2 * O), jnp.float32))


def _pad_gate_cols(w, H, Hp):
    """(.., 3H) fused [r|z|n] -> (.., 3Hp): zero-pad each gate block (lane-aligned)."""
    if Hp == H:
        return w
    pad = [(0, 0)] * (w.ndim - 1) + [(0, Hp - H)]
    return jnp.concatenate(
        [jnp.pad(w[..., g * H:(g + 1) * H], pad) for g in range(3)], axis=-1)


def _pad_rows(w, H, Hp):
    if Hp == H:
        return w
    return jnp.pad(w, ((0, Hp - H),) + ((0, 0),) * (w.ndim - 1))


# ----------------------------------------------------------------------------
# Forward pass
# ----------------------------------------------------------------------------
def mc_mtl_sgru_forward(params, x_btd, mxu_dtype=jnp.bfloat16, seq_dtype=jnp.bfloat16):
    """Eval-mode forward of MC_MTL_SGRU.  bf16 MXU operands / bf16 inter-layer
    sequence by default; all gate math stays f32."""
    B, T, _ = x_btd.shape
    H = params["gru"][0]["w_hh"].shape[0]
    n_layers = len(params["gru"])
    Hp = _round_up(H, 128)        # lane-aligned hidden (gate slices = free views)
    Bp = _round_up(B, 8)          # sublane-aligned batch

    # batch-first -> time-major once; no per-layer (T,B,3H) gx materialisation.
    seq = jnp.transpose(x_btd.astype(jnp.float32), (1, 0, 2))
    if Bp != B:
        seq = jnp.pad(seq, ((0, 0), (0, Bp - B), (0, 0)))

    h = jnp.zeros((Bp, Hp), jnp.float32)       # torch: h = None -> zeros (layer 0)
    for i, lp in enumerate(params["gru"]):
        w_ih = lp["w_ih"] if i == 0 else _pad_rows(lp["w_ih"], H, Hp)
        w_ih = _pad_gate_cols(w_ih, H, Hp).astype(mxu_dtype)
        w_hh = _pad_gate_cols(_pad_rows(lp["w_hh"], H, Hp), H, Hp).astype(mxu_dtype)
        b_ih = _pad_gate_cols(lp["b_ih"], H, Hp)
        b_hh = _pad_gate_cols(lp["b_hh"], H, Hp)
        # fold the r/z thirds of b_hh into the chunk-level gx bias; only the
        # n-gate recurrent bias must stay on the per-timestep path.
        b_gx = b_ih.at[:, :2 * Hp].add(b_hh[:, :2 * Hp])
        b_hn = b_hh[:, 2 * Hp:]

        if i == n_layers - 1:
            w_heads = _pad_rows(params["w_heads"], H, Hp).astype(mxu_dtype)
            out = gru_layer(seq, w_ih, b_gx, w_hh, b_hn, h,
                            hidden=Hp, mxu_dtype=mxu_dtype, seq_dtype=seq_dtype,
                            w_heads=w_heads, b_heads=params["b_heads"])
            O = out.shape[1] // 2
            return out[:B, :O], out[:B, O:]     # (fc_reg, fc_clf)

        # torch: `x, h = layer(x, h)` — layer i's final hidden chains into i+1.
        seq, h = gru_layer(seq, w_ih, b_gx, w_hh, b_hn, h,
                           hidden=Hp, mxu_dtype=mxu_dtype, seq_dtype=seq_dtype)
        # TODO(synk): NewDropout is training-mode only; identity here (eval).


# ----------------------------------------------------------------------------
# Pure-JAX (f32, unpadded) reference mirroring the torch module exactly.
# ----------------------------------------------------------------------------
def reference_forward(params, x_btd):
    H = params["gru"][0]["w_hh"].shape[0]
    x = x_btd.astype(jnp.float32)
    h = jnp.zeros((x.shape[0], H), jnp.float32)
    for lp in params["gru"]:
        ys, h_t = [], h
        for t in range(x.shape[1]):
            gx = x[:, t] @ lp["w_ih"] + lp["b_ih"]
            gh = h_t @ lp["w_hh"] + lp["b_hh"]
            r = jax.nn.sigmoid(gx[:, :H] + gh[:, :H])
            z = jax.nn.sigmoid(gx[:, H:2 * H] + gh[:, H:2 * H])
            n = jnp.tanh(gx[:, 2 * H:] + r * gh[:, 2 * H:])
            h_t = (1.0 - z) * n + z * h_t
            ys.append(h_t)
        x = jnp.stack(ys, axis=1)
        h = h_t
    out = x[:, -1] @ params["w_heads"] + params["b_heads"]
    O = out.shape[1] // 2
    return out[:, :O], out[:, O:]


if __name__ == "__main__":
    key = jax.random.PRNGKey(0)
    input_dim, hidden_dim, output_dim, n_layers = 16, 32, 8, 2
    B, T = 2, 8

    k_params, k_x = jax.random.split(key)
    params = init_params(k_params, input_dim, hidden_dim, output_dim, n_layers)
    x = jax.random.normal(k_x, (B, T, input_dim), jnp.float32)

    fwd = jax.jit(mc_mtl_sgru_forward, static_argnames=("mxu_dtype", "seq_dtype"))
    r_reg, r_clf = reference_forward(params, x)

    # 1) f32 path — tight check of kernel plumbing / padding / gate order.
    y_reg, y_clf = fwd(params, x, mxu_dtype=jnp.float32, seq_dtype=jnp.float32)
    jax.block_until_ready((y_reg, y_clf))
    assert y_reg.shape == (B, output_dim // 2) and y_clf.shape == (B, output_dim // 2)
    assert jnp.allclose(y_reg, r_reg, atol=1e-4, rtol=1e-4), "fc_reg mismatch (f32)"
    assert jnp.allclose(y_clf, r_clf, atol=1e-4, rtol=1e-4), "fc_clf mismatch (f32)"

    # 2) default bf16-MXU / bf16-sequence path (performance configuration);
    #    bf16 storage drives the looser tolerance.
    z_reg, z_clf = fwd(params, x)
    jax.block_until_ready((z_reg, z_clf))
    assert jnp.allclose(z_reg, r_reg, atol=5e-2, rtol=5e-2), "fc_reg mismatch (bf16)"
    assert jnp.allclose(z_clf, r_clf, atol=5e-2, rtol=5e-2), "fc_clf mismatch (bf16)"

    print("KERNEL_OK")
</pallas_src>

<mosaic_0001>
module attributes {stable_mosaic.version = 11 : i64} {
  func.func @_gru_layer_kernel(%arg0: i32, %arg1: i32, %arg2: memref<8x8x16xf32, #tpu.memory_space<vmem>>, %arg3: memref<16x384xf32, #tpu.memory_space<vmem>>, %arg4: memref<1x384xf32, #tpu.memory_space<vmem>>, %arg5: memref<128x384xf32, #tpu.memory_space<vmem>>, %arg6: memref<1x128xf32, #tpu.memory_space<vmem>>, %arg7: memref<8x128xf32, #tpu.memory_space<vmem>>, %arg8: memref<8x8x128xf32, #tpu.memory_space<vmem>>, %arg9: memref<8x128xf32, #tpu.memory_space<vmem>>, %arg10: memref<8x128xf32, #tpu.memory_space<vmem>>, %arg11: memref<8x8x384xf32, #tpu.memory_space<vmem>>) attributes {dimension_semantics = [#tpu.dimension_semantics<parallel>, #tpu.dimension_semantics<arbitrary>], iteration_bounds = array<i64: 1, 1>, scalar_prefetch = 0 : i64, scratch_operands = 2 : i64, tpu.core_type = #tpu.core_type<tc>, window_params = [{transform_indices = @transform_0, window_bounds = array<i64: 8, 8, 16>}, {pipeline_mode = #tpu.pipeline_mode<synchronous>, transform_indices = @transform_1, window_bounds = array<i64: 16, 384>}, {pipeline_mode = #tpu.pipeline_mode<synchronous>, transform_indices = @transform_2, window_bounds = array<i64: 1, 384>}, {pipeline_mode = #tpu.pipeline_mode<synchronous>, transform_indices = @transform_3, window_bounds = array<i64: 128, 384>}, {pipeline_mode = #tpu.pipeline_mode<synchronous>, transform_indices = @transform_4, window_bounds = array<i64: 1, 128>}, {transform_indices = @transform_5, window_bounds = array<i64: 8, 128>}, {transform_indices = @transform_6, window_bounds = array<i64: 8, 8, 128>}, {transform_indices = @transform_7, window_bounds = array<i64: 8, 128>}]} {
    %c0_i32 = arith.constant 0 : i32
    %0 = arith.cmpi eq, %arg1, %c0_i32 : i32
    %1 = arith.extui %0 : i1 to i32
    %c0_i32_0 = arith.constant 0 : i32
    %2 = arith.cmpi ne, %1, %c0_i32_0 : i32
    scf.if %2 {
      %c0_77 = arith.constant 0 : index
      %c0_78 = arith.constant 0 : index
      %283 = vector.load %arg7[%c0_77, %c0_78] : memref<8x128xf32, #tpu.memory_space<vmem>>, vector<8x128xf32>
      %c0_79 = arith.constant 0 : index
      %c0_80 = arith.constant 0 : index
      %284 = vector.load %arg10[%c0_79, %c0_80] : memref<8x128xf32, #tpu.memory_space<vmem>>, vector<8x128xf32>
      tpu.vector_store %arg10[%c0_79, %c0_80], %283 {strides = array<i32>} : memref<8x128xf32, #tpu.memory_space<vmem>>, vector<8x128xf32>,
    } else {
    }
    %c0 = arith.constant 0 : index
    %c0_1 = arith.constant 0 : index
    %c0_2 = arith.constant 0 : index
    %3 = vector.load %arg2[%c0, %c0_1, %c0_2] : memref<8x8x16xf32, #tpu.memory_space<vmem>>, vector<8x8x16xf32>
    %4 = vector.shape_cast %3 : vector<8x8x16xf32> to vector<64x16xf32>
    %c0_3 = arith.constant 0 : index
    %c0_4 = arith.constant 0 : index
    %5 = vector.load %arg3[%c0_3, %c0_4] : memref<16x384xf32, #tpu.memory_space<vmem>>, vector<16x384xf32>
    %cst = arith.constant dense<0.000000e+00> : vector<64x384xf32>
    %6 = tpu.matmul %4, %5, %cst {dimension_numbers = #tpu.dot_dimension_numbers<[1], [0], [0], [1], [0, 0, 1, 1], [], []>} : vector<64x16xf32>, vector<16x384xf32>, vector<64x384xf32> -> vector<64x384xf32>
    %c0_5 = arith.constant 0 : index
    %c0_6 = arith.constant 0 : index
    %7 = vector.load %arg4[%c0_5, %c0_6] : memref<1x384xf32, #tpu.memory_space<vmem>>, vector<1x384xf32>
    %8 = vector.broadcast %7 : vector<1x384xf32> to vector<64x384xf32>
    %9 = arith.addf %6, %8 : vector<64x384xf32>
    %10 = vector.shape_cast %9 : vector<64x384xf32> to vector<8x8x384xf32>
    %c0_7 = arith.constant 0 : index
    %c0_8 = arith.constant 0 : index
    %c0_9 = arith.constant 0 : index
    %11 = vector.load %arg11[%c0_7, %c0_8, %c0_9] : memref<8x8x384xf32, #tpu.memory_space<vmem>>, vector<8x8x384xf32>
    tpu.vector_store %arg11[%c0_7, %c0_8, %c0_9], %10 {strides = array<i32>} : memref<8x8x384xf32, #tpu.memory_space<vmem>>, vector<8x8x384xf32>,
    %c0_10 = arith.constant 0 : index
    %c0_11 = arith.constant 0 : index
    %12 = vector.load %arg5[%c0_10, %c0_11] : memref<128x384xf32, #tpu.memory_space<vmem>>, vector<128x384xf32>
    %c0_12 = arith.constant 0 : index
    %c0_13 = arith.constant 0 : index
    %13 = vector.load %arg6[%c0_12, %c0_13] : memref<1x128xf32, #tpu.memory_space<vmem>>, vector<1x128xf32>
    %14 = vector.shape_cast %13 : vector<1x128xf32> to vector<1x128xf32>
    %15 = vector.broadcast %14 : vector<1x128xf32> to vector<8x128xf32>
    %c0_14 = arith.constant 0 : index
    %c0_15 = arith.constant 0 : index
    %16 = vector.load %arg10[%c0_14, %c0_15] : memref<8x128xf32, #tpu.memory_space<vmem>>, vector<8x128xf32>
    %c0_i32_16 = arith.constant 0 : i32
    %17 = arith.index_cast %c0_i32_16 : i32 to index
    %c0_17 = arith.constant 0 : index
    %c0_18 = arith.constant 0 : index
    %18 = vector.load %arg11[%17, %c0_17, %c0_18] : memref<8x8x384xf32, #tpu.memory_space<vmem>>, vector<1x8x384xf32>
    %19 = vector.shape_cast %18 : vector<1x8x384xf32> to vector<8x384xf32>
    %cst_19 = arith.constant dense<0.000000e+00> : vector<8x384xf32>
    %20 = tpu.matmul %16, %12, %cst_19 {dimension_numbers = #tpu.dot_dimension_numbers<[1], [0], [0], [1], [0, 0, 1, 1], [], []>} : vector<8x128xf32>, vector<128x384xf32>, vector<8x384xf32> -> vector<8x384xf32>
    %21 = vector.extract_strided_slice %19 {offsets = [0, 0], sizes = [8, 128], strides = [1, 1]} : vector<8x384xf32> to vector<8x128xf32>
    %22 = vector.extract_strided_slice %20 {offsets = [0, 0], sizes = [8, 128], strides = [1, 1]} : vector<8x384xf32> to vector<8x128xf32>
    %23 = arith.addf %21, %22 : vector<8x128xf32>
    %24 = arith.negf %23 : vector<8x128xf32>
    %25 = math.exp %24 : vector<8x128xf32>
    %cst_20 = arith.constant 1.000000e+00 : f32
    %26 = vector.broadcast %cst_20 : f32 to vector<8x128xf32>
    %27 = arith.addf %26, %25 : vector<8x128xf32>
    %28 = arith.divf %26, %27 : vector<8x128xf32>
    %29 = vector.extract_strided_slice %19 {offsets = [0, 128], sizes = [8, 128], strides = [1, 1]} : vector<8x384xf32> to vector<8x128xf32>
    %30 = vector.extract_strided_slice %20 {offsets = [0, 128], sizes = [8, 128], strides = [1, 1]} : vector<8x384xf32> to vector<8x128xf32>
    %31 = arith.addf %29, %30 : vector<8x128xf32>
    %32 = arith.negf %31 : vector<8x128xf32>
    %33 = math.exp %32 : vector<8x128xf32>
    %cst_21 = arith.constant 1.000000e+00 : f32
    %34 = vector.broadcast %cst_21 : f32 to vector<8x128xf32>
    %35 = arith.addf %34, %33 : vector<8x128xf32>
    %36 = arith.divf %34, %35 : vector<8x128xf32>
    %37 = vector.extract_strided_slice %19 {offsets = [0, 256], sizes = [8, 128], strides = [1, 1]} : vector<8x384xf32> to vector<8x128xf32>
    %38 = vector.extract_strided_slice %20 {offsets = [0, 256], sizes = [8, 128], strides = [1, 1]} : vector<8x384xf32> to vector<8x128xf32>
    %39 = arith.addf %38, %15 : vector<8x128xf32>
    %40 = arith.mulf %28, %39 : vector<8x128xf32>
    %41 = arith.addf %37, %40 : vector<8x128xf32>
    %42 = math.tanh %41 : vector<8x128xf32>
    %43 = arith.subf %16, %42 : vector<8x128xf32>
    %44 = arith.mulf %36, %43 : vector<8x128xf32>
    %45 = arith.addf %42, %44 : vector<8x128xf32>
    %46 = arith.index_cast %c0_i32_16 : i32 to index
    %c0_22 = arith.constant 0 : index
    %c0_23 = arith.constant 0 : index
    %47 = vector.load %arg8[%46, %c0_22, %c0_23] : memref<8x8x128xf32, #tpu.memory_space<vmem>>, vector<1x8x128xf32>
    %48 = vector.shape_cast %47 : vector<1x8x128xf32> to vector<8x128xf32>
    %49 = vector.shape_cast %45 : vector<8x128xf32> to vector<1x8x128xf32>
    tpu.vector_store %arg8[%46, %c0_22, %c0_23], %49 {strides = array<i32>} : memref<8x8x128xf32, #tpu.memory_space<vmem>>, vector<1x8x128xf32>,
    %c1_i32 = arith.constant 1 : i32
    %50 = arith.index_cast %c1_i32 : i32 to index
    %c0_24 = arith.constant 0 : index
    %c0_25 = arith.constant 0 : index
    %51 = vector.load %arg11[%50, %c0_24, %c0_25] : memref<8x8x384xf32, #tpu.memory_space<vmem>>, vector<1x8x384xf32>
    %52 = vector.shape_cast %51 : vector<1x8x384xf32> to vector<8x384xf32>
    %cst_26 = arith.constant dense<0.000000e+00> : vector<8x384xf32>
    %53 = tpu.matmul %45, %12, %cst_26 {dimension_numbers = #tpu.dot_dimension_numbers<[1], [0], [0], [1], [0, 0, 1, 1], [], []>} : vector<8x128xf32>, vector<128x384xf32>, vector<8x384xf32> -> vector<8x384xf32>
    %54 = vector.extract_strided_slice %52 {offsets = [0, 0], sizes = [8, 128], strides = [1, 1]} : vector<8x384xf32> to vector<8x128xf32>
    %55 = vector.extract_strided_slice %53 {offsets = [0, 0], sizes = [8, 128], strides = [1, 1]} : vector<8x384xf32> to vector<8x128xf32>
    %56 = arith.addf %54, %55 : vector<8x128xf32>
    %57 = arith.negf %56 : vector<8x128xf32>
    %58 = math.exp %57 : vector<8x128xf32>
    %cst_27 = arith.constant 1.000000e+00 : f32
    %59 = vector.broadcast %cst_27 : f32 to vector<8x128xf32>
    %60 = arith.addf %59, %58 : vector<8x128xf32>
    %61 = arith.divf %59, %60 : vector<8x128xf32>
    %62 = vector.extract_strided_slice %52 {offsets = [0, 128], sizes = [8, 128], strides = [1, 1]} : vector<8x384xf32> to vector<8x128xf32>
    %63 = vector.extract_strided_slice %53 {offsets = [0, 128], sizes = [8, 128], strides = [1, 1]} : vector<8x384xf32> to vector<8x128xf32>
    %64 = arith.addf %62, %63 : vector<8x128xf32>
    %65 = arith.negf %64 : vector<8x128xf32>
    %66 = math.exp %65 : vector<8x128xf32>
    %cst_28 = arith.constant 1.000000e+00 : f32
    %67 = vector.broadcast %cst_28 : f32 to vector<8x128xf32>
    %68 = arith.addf %67, %66 : vector<8x128xf32>
    %69 = arith.divf %67, %68 : vector<8x128xf32>
    %70 = vector.extract_strided_slice %52 {offsets = [0, 256], sizes = [8, 128], strides = [1, 1]} : vector<8x384xf32> to vector<8x128xf32>
    %71 = vector.extract_strided_slice %53 {offsets = [0, 256], sizes = [8, 128], strides = [1, 1]} : vector<8x384xf32> to vector<8x128xf32>
    %72 = arith.addf %71, %15 : vector<8x128xf32>
    %73 = arith.mulf %61, %72 : vector<8x128xf32>
    %74 = arith.addf %70, %73 : vector<8x128xf32>
    %75 = math.tanh %74 : vector<8x128xf32>
    %76 = arith.subf %45, %75 : vector<8x128xf32>
    %77 = arith.mulf %69, %76 : vector<8x128xf32>
    %78 = arith.addf %75, %77 : vector<8x128xf32>
    %79 = arith.index_cast %c1_i32 : i32 to index
    %c0_29 = arith.constant 0 : index
    %c0_30 = arith.constant 0 : index
    %80 = vector.load %arg8[%79, %c0_29, %c0_30] : memref<8x8x128xf32, #tpu.memory_space<vmem>>, vector<1x8x128xf32>
    %81 = vector.shape_cast %80 : vector<1x8x128xf32> to vector<8x128xf32>
    %82 = vector.shape_cast %78 : vector<8x128xf32> to vector<1x8x128xf32>
    tpu.vector_store %arg8[%79, %c0_29, %c0_30], %82 {strides = array<i32>} : memref<8x8x128xf32, #tpu.memory_space<vmem>>, vector<1x8x128xf32>,
    %c2_i32 = arith.constant 2 : i32
    %83 = arith.index_cast %c2_i32 : i32 to index
    %c0_31 = arith.constant 0 : index
    %c0_32 = arith.constant 0 : index
    %84 = vector.load %arg11[%83, %c0_31, %c0_32] : memref<8x8x384xf32, #tpu.memory_space<vmem>>, vector<1x8x384xf32>
    %85 = vector.shape_cast %84 : vector<1x8x384xf32> to vector<8x384xf32>
    %cst_33 = arith.constant dense<0.000000e+00> : vector<8x384xf32>
    %86 = tpu.matmul %78, %12, %cst_33 {dimension_numbers = #tpu.dot_dimension_numbers<[1], [0], [0], [1], [0, 0, 1, 1], [], []>} : vector<8x128xf32>, vector<128x384xf32>, vector<8x384xf32> -> vector<8x384xf32>
    %87 = vector.extract_strided_slice %85 {offsets = [0, 0], sizes = [8, 128], strides = [1, 1]} : vector<8x384xf32> to vector<8x128xf32>
    %88 = vector.extract_strided_slice %86 {offsets = [0, 0], sizes = [8, 128], strides = [1, 1]} : vector<8x384xf32> to vector<8x128xf32>
    %89 = arith.addf %87, %88 : vector<8x128xf32>
    %90 = arith.negf %89 : vector<8x128xf32>
    %91 = math.exp %90 : vector<8x128xf32>
    %cst_34 = arith.constant 1.000000e+00 : f32
    %92 = vector.broadcast %cst_34 : f32 to vector<8x128xf32>
    %93 = arith.addf %92, %91 : vector<8x128xf32>
    %94 = arith.divf %92, %93 : vector<8x128xf32>
    %95 = vector.extract_strided_slice %85 {offsets = [0, 128], sizes = [8, 128], strides = [1, 1]} : vector<8x384xf32> to vector<8x128xf32>
    %96 = vector.extract_strided_slice %86 {offsets = [0, 128], sizes = [8, 128], strides = [1, 1]} : vector<8x384xf32> to vector<8x128xf32>
    %97 = arith.addf %95, %96 : vector<8x128xf32>
    %98 = arith.negf %97 : vector<8x128xf32>
    %99 = math.exp %98 : vector<8x128xf32>
    %cst_35 = arith.constant 1.000000e+00 : f32
    %100 = vector.broadcast %cst_35 : f32 to vector<8x128xf32>
    %101 = arith.addf %100, %99 : vector<8x128xf32>
    %102 = arith.divf %100, %101 : vector<8x128xf32>
    %103 = vector.extract_strided_slice %85 {offsets = [0, 256], sizes = [8, 128], strides = [1, 1]} : vector<8x384xf32> to vector<8x128xf32>
    %104 = vector.extract_strided_slice %86 {offsets = [0, 256], sizes = [8, 128], strides = [1, 1]} : vector<8x384xf32> to vector<8x128xf32>
    %105 = arith.addf %104, %15 : vector<8x128xf32>
    %106 = arith.mulf %94, %105 : vector<8x128xf32>
    %107 = arith.addf %103, %106 : vector<8x128xf32>
    %108 = math.tanh %107 : vector<8x128xf32>
    %109 = arith.subf %78, %108 : vector<8x128xf32>
    %110 = arith.mulf %102, %109 : vector<8x128xf32>
    %111 = arith.addf %108, %110 : vector<8x128xf32>
    %112 = arith.index_cast %c2_i32 : i32 to index
    %c0_36 = arith.constant 0 : index
    %c0_37 = arith.constant 0 : index
    %113 = vector.load %arg8[%112, %c0_36, %c0_37] : memref<8x8x128xf32, #tpu.memory_space<vmem>>, vector<1x8x128xf32>
    %114 = vector.shape_cast %113 : vector<1x8x128xf32> to vector<8x128xf32>
    %115 = vector.shape_cast %111 : vector<8x128xf32> to vector<1x8x128xf32>
    tpu.vector_store %arg8[%112, %c0_36, %c0_37], %115 {strides = array<i32>} : memref<8x8x128xf32, #tpu.memory_space<vmem>>, vector<1x8x128xf32>,
    %c3_i32 = arith.constant 3 : i32
    %116 = arith.index_cast %c3_i32 : i32 to index
    %c0_38 = arith.constant 0 : index
    %c0_39 = arith.constant 0 : index
    %117 = vector.load %arg11[%116, %c0_38, %c0_39] : memref<8x8x384xf32, #tpu.memory_space<vmem>>, vector<1x8x384xf32>
    %118 = vector.shape_cast %117 : vector<1x8x384xf32> to vector<8x384xf32>
    %cst_40 = arith.constant dense<0.000000e+00> : vector<8x384xf32>
    %119 = tpu.matmul %111, %12, %cst_40 {dimension_numbers = #tpu.dot_dimension_numbers<[1], [0], [0], [1], [0, 0, 1, 1], [], []>} : vector<8x128xf32>, vector<128x384xf32>, vector<8x384xf32> -> vector<8x384xf32>
    %120 = vector.extract_strided_slice %118 {offsets = [0, 0], sizes = [8, 128], strides = [1, 1]} : vector<8x384xf32> to vector<8x128xf32>
    %121 = vector.extract_strided_slice %119 {offsets = [0, 0], sizes = [8, 128], strides = [1, 1]} : vector<8x384xf32> to vector<8x128xf32>
    %122 = arith.addf %120, %121 : vector<8x128xf32>
    %123 = arith.negf %122 : vector<8x128xf32>
    %124 = math.exp %123 : vector<8x128xf32>
    %cst_41 = arith.constant 1.000000e+00 : f32
    %125 = vector.broadcast %cst_41 : f32 to vector<8x128xf32>
    %126 = arith.addf %125, %124 : vector<8x128xf32>
    %127 = arith.divf %125, %126 : vector<8x128xf32>
    %128 = vector.extract_strided_slice %118 {offsets = [0, 128], sizes = [8, 128], strides = [1, 1]} : vector<8x384xf32> to vector<8x128xf32>
    %129 = vector.extract_strided_slice %119 {offsets = [0, 128], sizes = [8, 128], strides = [1, 1]} : vector<8x384xf32> to vector<8x128xf32>
    %130 = arith.addf %128, %129 : vector<8x128xf32>
    %131 = arith.negf %130 : vector<8x128xf32>
    %132 = math.exp %131 : vector<8x128xf32>
    %cst_42 = arith.constant 1.000000e+00 : f32
    %133 = vector.broadcast %cst_42 : f32 to vector<8x128xf32>
    %134 = arith.addf %133, %132 : vector<8x128xf32>
    %135 = arith.divf %133, %134 : vector<8x128xf32>
    %136 = vector.extract_strided_slice %118 {offsets = [0, 256], sizes = [8, 128], strides = [1, 1]} : vector<8x384xf32> to vector<8x128xf32>
    %137 = vector.extract_strided_slice %119 {offsets = [0, 256], sizes = [8, 128], strides = [1, 1]} : vector<8x384xf32> to vector<8x128xf32>
    %138 = arith.addf %137, %15 : vector<8x128xf32>
    %139 = arith.mulf %127, %138 : vector<8x128xf32>
    %140 = arith.addf %136, %139 : vector<8x128xf32>
    %141 = math.tanh %140 : vector<8x128xf32>
    %142 = arith.subf %111, %141 : vector<8x128xf32>
    %143 = arith.mulf %135, %142 : vector<8x128xf32>
    %144 = arith.addf %141, %143 : vector<8x128xf32>
    %145 = arith.index_cast %c3_i32 : i32 to index
    %c0_43 = arith.constant 0 : index
    %c0_44 = arith.constant 0 : index
    %146 = vector.load %arg8[%145, %c0_43, %c0_44] : memref<8x8x128xf32, #tpu.memory_space<vmem>>, vector<1x8x128xf32>
    %147 = vector.shape_cast %146 : vector<1x8x128xf32> to vector<8x128xf32>
    %148 = vector.shape_cast %144 : vector<8x128xf32> to vector<1x8x128xf32>
    tpu.vector_store %arg8[%145, %c0_43, %c0_44], %148 {strides = array<i32>} : memref<8x8x128xf32, #tpu.memory_space<vmem>>, vector<1x8x128xf32>,
    %c4_i32 = arith.constant 4 : i32
    %149 = arith.index_cast %c4_i32 : i32 to index
    %c0_45 = arith.constant 0 : index
    %c0_46 = arith.constant 0 : index
    %150 = vector.load %arg11[%149, %c0_45, %c0_46] : memref<8x8x384xf32, #tpu.memory_space<vmem>>, vector<1x8x384xf32>
    %151 = vector.shape_cast %150 : vector<1x8x384xf32> to vector<8x384xf32>
    %cst_47 = arith.constant dense<0.000000e+00> : vector<8x384xf32>
    %152 = tpu.matmul %144, %12, %cst_47 {dimension_numbers = #tpu.dot_dimension_numbers<[1], [0], [0], [1], [0, 0, 1, 1], [], []>} : vector<8x128xf32>, vector<128x384xf32>, vector<8x384xf32> -> vector<8x384xf32>
    %153 = vector.extract_strided_slice %151 {offsets = [0, 0], sizes = [8, 128], strides = [1, 1]} : vector<8x384xf32> to vector<8x128xf32>
    %154 = vector.extract_strided_slice %152 {offsets = [0, 0], sizes = [8, 128], strides = [1, 1]} : vector<8x384xf32> to vector<8x128xf32>
    %155 = arith.addf %153, %154 : vector<8x128xf32>
    %156 = arith.negf %155 : vector<8x128xf32>
    %157 = math.exp %156 : vector<8x128xf32>
    %cst_48 = arith.constant 1.000000e+00 : f32
    %158 = vector.broadcast %cst_48 : f32 to vector<8x128xf32>
    %159 = arith.addf %158, %157 : vector<8x128xf32>
    %160 = arith.divf %158, %159 : vector<8x128xf32>
    %161 = vector.extract_strided_slice %151 {offsets = [0, 128], sizes = [8, 128], strides = [1, 1]} : vector<8x384xf32> to vector<8x128xf32>
    %162 = vector.extract_strided_slice %152 {offsets = [0, 128], sizes = [8, 128], strides = [1, 1]} : vector<8x384xf32> to vector<8x128xf32>
    %163 = arith.addf %161, %162 : vector<8x128xf32>
    %164 = arith.negf %163 : vector<8x128xf32>
    %165 = math.exp %164 : vector<8x128xf32>
    %cst_49 = arith.constant 1.000000e+00 : f32
    %166 = vector.broadcast %cst_49 : f32 to vector<8x128xf32>
    %167 = arith.addf %166, %165 : vector<8x128xf32>
    %168 = arith.divf %166, %167 : vector<8x128xf32>
    %169 = vector.extract_strided_slice %151 {offsets = [0, 256], sizes = [8, 128], strides = [1, 1]} : vector<8x384xf32> to vector<8x128xf32>
    %170 = vector.extract_strided_slice %152 {offsets = [0, 256], sizes = [8, 128], strides = [1, 1]} : vector<8x384xf32> to vector<8x128xf32>
    %171 = arith.addf %170, %15 : vector<8x128xf32>
    %172 = arith.mulf %160, %171 : vector<8x128xf32>
    %173 = arith.addf %169, %172 : vector<8x128xf32>
    %174 = math.tanh %173 : vector<8x128xf32>
    %175 = arith.subf %144, %174 : vector<8x128xf32>
    %176 = arith.mulf %168, %175 : vector<8x128xf32>
    %177 = arith.addf %174, %176 : vector<8x128xf32>
    %178 = arith.index_cast %c4_i32 : i32 to index
    %c0_50 = arith.constant 0 : index
    %c0_51 = arith.constant 0 : index
    %179 = vector.load %arg8[%178, %c0_50, %c0_51] : memref<8x8x128xf32, #tpu.memory_space<vmem>>, vector<1x8x128xf32>
    %180 = vector.shape_cast %179 : vector<1x8x128xf32> to vector<8x128xf32>
    %181 = vector.shape_cast %177 : vector<8x128xf32> to vector<1x8x128xf32>
    tpu.vector_store %arg8[%178, %c0_50, %c0_51], %181 {strides = array<i32>} : memref<8x8x128xf32, #tpu.memory_space<vmem>>, vector<1x8x128xf32>,
    %c5_i32 = arith.constant 5 : i32
    %182 = arith.index_cast %c5_i32 : i32 to index
    %c0_52 = arith.constant 0 : index
    %c0_53 = arith.constant 0 : index
    %183 = vector.load %arg11[%182, %c0_52, %c0_53] : memref<8x8x384xf32, #tpu.memory_space<vmem>>, vector<1x8x384xf32>
    %184 = vector.shape_cast %183 : vector<1x8x384xf32> to vector<8x384xf32>
    %cst_54 = arith.constant dense<0.000000e+00> : vector<8x384xf32>
    %185 = tpu.matmul %177, %12, %cst_54 {dimension_numbers = #tpu.dot_dimension_numbers<[1], [0], [0], [1], [0, 0, 1, 1], [], []>} : vector<8x128xf32>, vector<128x384xf32>, vector<8x384xf32> -> vector<8x384xf32>
    %186 = vector.extract_strided_slice %184 {offsets = [0, 0], sizes = [8, 128], strides = [1, 1]} : vector<8x384xf32> to vector<8x128xf32>
    %187 = vector.extract_strided_slice %185 {offsets = [0, 0], sizes = [8, 128], strides = [1, 1]} : vector<8x384xf32> to vector<8x128xf32>
    %188 = arith.addf %186, %187 : vector<8x128xf32>
    %189 = arith.negf %188 : vector<8x128xf32>
    %190 = math.exp %189 : vector<8x128xf32>
    %cst_55 = arith.constant 1.000000e+00 : f32
    %191 = vector.broadcast %cst_55 : f32 to vector<8x128xf32>
    %192 = arith.addf %191, %190 : vector<8x128xf32>
    %193 = arith.divf %191, %192 : vector<8x128xf32>
    %194 = vector.extract_strided_slice %184 {offsets = [0, 128], sizes = [8, 128], strides = [1, 1]} : vector<8x384xf32> to vector<8x128xf32>
    %195 = vector.extract_strided_slice %185 {offsets = [0, 128], sizes = [8, 128], strides = [1, 1]} : vector<8x384xf32> to vector<8x128xf32>
    %196 = arith.addf %194, %195 : vector<8x128xf32>
    %197 = arith.negf %196 : vector<8x128xf32>
    %198 = math.exp %197 : vector<8x128xf32>
    %cst_56 = arith.constant 1.000000e+00 : f32
    %199 = vector.broadcast %cst_56 : f32 to vector<8x128xf32>
    %200 = arith.addf %199, %198 : vector<8x128xf32>
    %201 = arith.divf %199, %200 : vector<8x128xf32>
    %202 = vector.extract_strided_slice %184 {offsets = [0, 256], sizes = [8, 128], strides = [1, 1]} : vector<8x384xf32> to vector<8x128xf32>
    %203 = vector.extract_strided_slice %185 {offsets = [0, 256], sizes = [8, 128], strides = [1, 1]} : vector<8x384xf32> to vector<8x128xf32>
    %204 = arith.addf %203, %15 : vector<8x128xf32>
    %205 = arith.mulf %193, %204 : vector<8x128xf32>
    %206 = arith.addf %202, %205 : vector<8x128xf32>
    %207 = math.tanh %206 : vector<8x128xf32>
    %208 = arith.subf %177, %207 : vector<8x128xf32>
    %209 = arith.mulf %201, %208 : vector<8x128xf32>
    %210 = arith.addf %207, %209 : vector<8x128xf32>
    %211 = arith.index_cast %c5_i32 : i32 to index
    %c0_57 = arith.constant 0 : index
    %c0_58 = arith.constant 0 : index
    %212 = vector.load %arg8[%211, %c0_57, %c0_58] : memref<8x8x128xf32, #tpu.memory_space<vmem>>, vector<1x8x128xf32>
    %213 = vector.shape_cast %212 : vector<1x8x128xf32> to vector<8x128xf32>
    %214 = vector.shape_cast %210 : vector<8x128xf32> to vector<1x8x128xf32>
    tpu.vector_store %arg8[%211, %c0_57, %c0_58], %214 {strides = array<i32>} : memref<8x8x128xf32, #tpu.memory_space<vmem>>, vector<1x8x128xf32>,
    %c6_i32 = arith.constant 6 : i32
    %215 = arith.index_cast %c6_i32 : i32 to index
    %c0_59 = arith.constant 0 : index
    %c0_60 = arith.constant 0 : index
    %216 = vector.load %arg11[%215, %c0_59, %c0_60] : memref<8x8x384xf32, #tpu.memory_space<vmem>>, vector<1x8x384xf32>
    %217 = vector.shape_cast %216 : vector<1x8x384xf32> to vector<8x384xf32>
    %cst_61 = arith.constant dense<0.000000e+00> : vector<8x384xf32>
    %218 = tpu.matmul %210, %12, %cst_61 {dimension_numbers = #tpu.dot_dimension_numbers<[1], [0], [0], [1], [0, 0, 1, 1], [], []>} : vector<8x128xf32>, vector<128x384xf32>, vector<8x384xf32> -> vector<8x384xf32>
    %219 = vector.extract_strided_slice %217 {offsets = [0, 0], sizes = [8, 128], strides = [1, 1]} : vector<8x384xf32> to vector<8x128xf32>
    %220 = vector.extract_strided_slice %218 {offsets = [0, 0], sizes = [8, 128], strides = [1, 1]} : vector<8x384xf32> to vector<8x128xf32>
    %221 = arith.addf %219, %220 : vector<8x128xf32>
    %222 = arith.negf %221 : vector<8x128xf32>
    %223 = math.exp %222 : vector<8x128xf32>
    %cst_62 = arith.constant 1.000000e+00 : f32
    %224 = vector.broadcast %cst_62 : f32 to vector<8x128xf32>
    %225 = arith.addf %224, %223 : vector<8x128xf32>
    %226 = arith.divf %224, %225 : vector<8x128xf32>
    %227 = vector.extract_strided_slice %217 {offsets = [0, 128], sizes = [8, 128], strides = [1, 1]} : vector<8x384xf32> to vector<8x128xf32>
    %228 = vector.extract_strided_slice %218 {offsets = [0, 128], sizes = [8, 128], strides = [1, 1]} : vector<8x384xf32> to vector<8x128xf32>
    %229 = arith.addf %227, %228 : vector<8x128xf32>
    %230 = arith.negf %229 : vector<8x128xf32>
    %231 = math.exp %230 : vector<8x128xf32>
    %cst_63 = arith.constant 1.000000e+00 : f32
    %232 = vector.broadcast %cst_63 : f32 to vector<8x128xf32>
    %233 = arith.addf %232, %231 : vector<8x128xf32>
    %234 = arith.divf %232, %233 : vector<8x128xf32>
    %235 = vector.extract_strided_slice %217 {offsets = [0, 256], sizes = [8, 128], strides = [1, 1]} : vector<8x384xf32> to vector<8x128xf32>
    %236 = vector.extract_strided_slice %218 {offsets = [0, 256], sizes = [8, 128], strides = [1, 1]} : vector<8x384xf32> to vector<8x128xf32>
    %237 = arith.addf %236, %15 : vector<8x128xf32>
    %238 = arith.mulf %226, %237 : vector<8x128xf32>
    %239 = arith.addf %235, %238 : vector<8x128xf32>
    %240 = math.tanh %239 : vector<8x128xf32>
    %241 = arith.subf %210, %240 : vector<8x128xf32>
    %242 = arith.mulf %234, %241 : vector<8x128xf32>
    %243 = arith.addf %240, %242 : vector<8x128xf32>
    %244 = arith.index_cast %c6_i32 : i32 to index
    %c0_64 = arith.constant 0 : index
    %c0_65 = arith.constant 0 : index
    %245 = vector.load %arg8[%244, %c0_64, %c0_65] : memref<8x8x128xf32, #tpu.memory_space<vmem>>, vector<1x8x128xf32>
    %246 = vector.shape_cast %245 : vector<1x8x128xf32> to vector<8x128xf32>
    %247 = vector.shape_cast %243 : vector<8x128xf32> to vector<1x8x128xf32>
    tpu.vector_store %arg8[%244, %c0_64, %c0_65], %247 {strides = array<i32>} : memref<8x8x128xf32, #tpu.memory_space<vmem>>, vector<1x8x128xf32>,
    %c7_i32 = arith.constant 7 : i32
    %248 = arith.index_cast %c7_i32 : i32 to index
    %c0_66 = arith.constant 0 : index
    %c0_67 = arith.constant 0 : index
    %249 = vector.load %arg11[%248, %c0_66, %c0_67] : memref<8x8x384xf32, #tpu.memory_space<vmem>>, vector<1x8x384xf32>
    %250 = vector.shape_cast %249 : vector<1x8x384xf32> to vector<8x384xf32>
    %cst_68 = arith.constant dense<0.000000e+00> : vector<8x384xf32>
    %251 = tpu.matmul %243, %12, %cst_68 {dimension_numbers = #tpu.dot_dimension_numbers<[1], [0], [0], [1], [0, 0, 1, 1], [], []>} : vector<8x128xf32>, vector<128x384xf32>, vector<8x384xf32> -> vector<8x384xf32>
    %252 = vector.extract_strided_slice %250 {offsets = [0, 0], sizes = [8, 128], strides = [1, 1]} : vector<8x384xf32> to vector<8x128xf32>
    %253 = vector.extract_strided_slice %251 {offsets = [0, 0], sizes = [8, 128], strides = [1, 1]} : vector<8x384xf32> to vector<8x128xf32>
    %254 = arith.addf %252, %253 : vector<8x128xf32>
    %255 = arith.negf %254 : vector<8x128xf32>
    %256 = math.exp %255 : vector<8x128xf32>
    %cst_69 = arith.constant 1.000000e+00 : f32
    %257 = vector.broadcast %cst_69 : f32 to vector<8x128xf32>
    %258 = arith.addf %257, %256 : vector<8x128xf32>
    %259 = arith.divf %257, %258 : vector<8x128xf32>
    %260 = vector.extract_strided_slice %250 {offsets = [0, 128], sizes = [8, 128], strides = [1, 1]} : vector<8x384xf32> to vector<8x128xf32>
    %261 = vector.extract_strided_slice %251 {offsets = [0, 128], sizes = [8, 128], strides = [1, 1]} : vector<8x384xf32> to vector<8x128xf32>
    %262 = arith.addf %260, %261 : vector<8x128xf32>
    %263 = arith.negf %262 : vector<8x128xf32>
    %264 = math.exp %263 : vector<8x128xf32>
    %cst_70 = arith.constant 1.000000e+00 : f32
    %265 = vector.broadcast %cst_70 : f32 to vector<8x128xf32>
    %266 = arith.addf %265, %264 : vector<8x128xf32>
    %267 = arith.divf %265, %266 : vector<8x128xf32>
    %268 = vector.extract_strided_slice %250 {offsets = [0, 256], sizes = [8, 128], strides = [1, 1]} : vector<8x384xf32> to vector<8x128xf32>
    %269 = vector.extract_strided_slice %251 {offsets = [0, 256], sizes = [8, 128], strides = [1, 1]} : vector<8x384xf32> to vector<8x128xf32>
    %270 = arith.addf %269, %15 : vector<8x128xf32>
    %271 = arith.mulf %259, %270 : vector<8x128xf32>
    %272 = arith.addf %268, %271 : vector<8x128xf32>
    %273 = math.tanh %272 : vector<8x128xf32>
    %274 = arith.subf %243, %273 : vector<8x128xf32>
    %275 = arith.mulf %267, %274 : vector<8x128xf32>
    %276 = arith.addf %273, %275 : vector<8x128xf32>
    %277 = arith.index_cast %c7_i32 : i32 to index
    %c0_71 = arith.constant 0 : index
    %c0_72 = arith.constant 0 : index
    %278 = vector.load %arg8[%277, %c0_71, %c0_72] : memref<8x8x128xf32, #tpu.memory_space<vmem>>, vector<1x8x128xf32>
    %279 = vector.shape_cast %278 : vector<1x8x128xf32> to vector<8x128xf32>
    %280 = vector.shape_cast %276 : vector<8x128xf32> to vector<1x8x128xf32>
    tpu.vector_store %arg8[%277, %c0_71, %c0_72], %280 {strides = array<i32>} : memref<8x8x128xf32, #tpu.memory_space<vmem>>, vector<1x8x128xf32>,
    %c8_i32 = arith.constant 8 : i32
    %c0_73 = arith.constant 0 : index
    %c0_74 = arith.constant 0 : index
    %281 = vector.load %arg10[%c0_73, %c0_74] : memref<8x128xf32, #tpu.memory_space<vmem>>, vector<8x128xf32>
    tpu.vector_store %arg10[%c0_73, %c0_74], %276 {strides = array<i32>} : memref<8x128xf32, #tpu.memory_space<vmem>>, vector<8x128xf32>,
    %c0_75 = arith.constant 0 : index
    %c0_76 = arith.constant 0 : index
    %282 = vector.load %arg9[%c0_75, %c0_76] : memref<8x128xf32, #tpu.memory_space<vmem>>, vector<8x128xf32>
    tpu.vector_store %arg9[%c0_75, %c0_76], %276 {strides = array<i32>} : memref<8x128xf32, #tpu.memory_space<vmem>>, vector<8x128xf32>,
    return
  }
  func.func @transform_0(%arg0: i32, %arg1: i32) -> (i32, i32, i32) {
    %c0_i32 = arith.constant 0 : i32
    %c0_i32_0 = arith.constant 0 : i32
    return %arg1, %arg0, %c0_i32 : i32, i32, i32
  }
  func.func @transform_1(%arg0: i32, %arg1: i32) -> (i32, i32) {
    %c0_i32 = arith.constant 0 : i32
    %c0_i32_0 = arith.constant 0 : i32
    %c0_i32_1 = arith.constant 0 : i32
    return %c0_i32, %c0_i32_0 : i32, i32
  }
  func.func @transform_2(%arg0: i32, %arg1: i32) -> (i32, i32) {
    %c0_i32 = arith.constant 0 : i32
    %c0_i32_0 = arith.constant 0 : i32
    %c0_i32_1 = arith.constant 0 : i32
    return %c0_i32, %c0_i32_0 : i32, i32
  }
  func.func @transform_3(%arg0: i32, %arg1: i32) -> (i32, i32) {
    %c0_i32 = arith.constant 0 : i32
    %c0_i32_0 = arith.constant 0 : i32
    %c0_i32_1 = arith.constant 0 : i32
    return %c0_i32, %c0_i32_0 : i32, i32
  }
  func.func @transform_4(%arg0: i32, %arg1: i32) -> (i32, i32) {
    %c0_i32 = arith.constant 0 : i32
    %c0_i32_0 = arith.constant 0 : i32
    %c0_i32_1 = arith.constant 0 : i32
    return %c0_i32, %c0_i32_0 : i32, i32
  }
  func.func @transform_5(%arg0: i32, %arg1: i32) -> (i32, i32) {
    %c0_i32 = arith.constant 0 : i32
    %c0_i32_0 = arith.constant 0 : i32
    return %arg0, %c0_i32 : i32, i32
  }
  func.func @transform_6(%arg0: i32, %arg1: i32) -> (i32, i32, i32) {
    %c0_i32 = arith.constant 0 : i32
    %c0_i32_0 = arith.constant 0 : i32
    return %arg1, %arg0, %c0_i32 : i32, i32, i32
  }
  func.func @transform_7(%arg0: i32, %arg1: i32) -> (i32, i32) {
    %c0_i32 = arith.constant 0 : i32
    %c0_i32_0 = arith.constant 0 : i32
    return %arg0, %c0_i32 : i32, i32
  }
}

module attributes {stable_mosaic.version = 11 : i64} {
  func.func @_gru_layer_kernel(%arg0: i32, %arg1: i32, %arg2: memref<8x8x128xf32, #tpu.memory_space<vmem>>, %arg3: memref<128x384xf32, #tpu.memory_space<vmem>>, %arg4: memref<1x384xf32, #tpu.memory_space<vmem>>, %arg5: memref<128x384xf32, #tpu.memory_space<vmem>>, %arg6: memref<1x128xf32, #tpu.memory_space<vmem>>, %arg7: memref<8x128xf32, #tpu.memory_space<vmem>>, %arg8: memref<128x8xf32, #tpu.memory_space<vmem>>, %arg9: memref<1x8xf32, #tpu.memory_space<vmem>>, %arg10: memref<8x8xf32, #tpu.memory_space<vmem>>, %arg11: memref<8x128xf32, #tpu.memory_space<vmem>>, %arg12: memref<8x8x384xf32, #tpu.memory_space<vmem>>) attributes {dimension_semantics = [#tpu.dimension_semantics<parallel>, #tpu.dimension_semantics<arbitrary>], iteration_bounds = array<i64: 1, 1>, scalar_prefetch = 0 : i64, scratch_operands = 2 : i64, tpu.core_type = #tpu.core_type<tc>, window_params = [{transform_indices = @transform_0, window_bounds = array<i64: 8, 8, 128>}, {pipeline_mode = #tpu.pipeline_mode<synchronous>, transform_indices = @transform_1, window_bounds = array<i64: 128, 384>}, {pipeline_mode = #tpu.pipeline_mode<synchronous>, transform_indices = @transform_2, window_bounds = array<i64: 1, 384>}, {pipeline_mode = #tpu.pipeline_mode<synchronous>, transform_indices = @transform_3, window_bounds = array<i64: 128, 384>}, {pipeline_mode = #tpu.pipeline_mode<synchronous>, transform_indices = @transform_4, window_bounds = array<i64: 1, 128>}, {transform_indices = @transform_5, window_bounds = array<i64: 8, 128>}, {pipeline_mode = #tpu.pipeline_mode<synchronous>, transform_indices = @transform_6, window_bounds = array<i64: 128, 8>}, {pipeline_mode = #tpu.pipeline_mode<synchronous>, transform_indices = @transform_7, window_bounds = array<i64: 1, 8>}, {transform_indices = @transform_8, window_bounds = array<i64: 8, 8>}]} {
    %c0_i32 = arith.constant 0 : i32
    %0 = arith.cmpi eq, %arg1, %c0_i32 : i32
    %1 = arith.extui %0 : i1 to i32
    %c0_i32_0 = arith.constant 0 : i32
    %2 = arith.cmpi ne, %1, %c0_i32_0 : i32
    scf.if %2 {
      %c0_61 = arith.constant 0 : index
      %c0_62 = arith.constant 0 : index
      %253 = vector.load %arg7[%c0_61, %c0_62] : memref<8x128xf32, #tpu.memory_space<vmem>>, vector<8x128xf32>
      %c0_63 = arith.constant 0 : index
      %c0_64 = arith.constant 0 : index
      %254 = vector.load %arg11[%c0_63, %c0_64] : memref<8x128xf32, #tpu.memory_space<vmem>>, vector<8x128xf32>
      tpu.vector_store %arg11[%c0_63, %c0_64], %253 {strides = array<i32>} : memref<8x128xf32, #tpu.memory_space<vmem>>, vector<8x128xf32>,
    } else {
    }
    %c0 = arith.constant 0 : index
    %c0_1 = arith.constant 0 : index
    %c0_2 = arith.constant 0 : index
    %3 = vector.load %arg2[%c0, %c0_1, %c0_2] : memref<8x8x128xf32, #tpu.memory_space<vmem>>, vector<8x8x128xf32>
    %4 = vector.shape_cast %3 : vector<8x8x128xf32> to vector<64x128xf32>
    %c0_3 = arith.constant 0 : index
    %c0_4 = arith.constant 0 : index
    %5 = vector.load %arg3[%c0_3, %c0_4] : memref<128x384xf32, #tpu.memory_space<vmem>>, vector<128x384xf32>
    %cst = arith.constant dense<0.000000e+00> : vector<64x384xf32>
    %6 = tpu.matmul %4, %5, %cst {dimension_numbers = #tpu.dot_dimension_numbers<[1], [0], [0], [1], [0, 0, 1, 1], [], []>} : vector<64x128xf32>, vector<128x384xf32>, vector<64x384xf32> -> vector<64x384xf32>
    %c0_5 = arith.constant 0 : index
    %c0_6 = arith.constant 0 : index
    %7 = vector.load %arg4[%c0_5, %c0_6] : memref<1x384xf32, #tpu.memory_space<vmem>>, vector<1x384xf32>
    %8 = vector.broadcast %7 : vector<1x384xf32> to vector<64x384xf32>
    %9 = arith.addf %6, %8 : vector<64x384xf32>
    %10 = vector.shape_cast %9 : vector<64x384xf32> to vector<8x8x384xf32>
    %c0_7 = arith.constant 0 : index
    %c0_8 = arith.constant 0 : index
    %c0_9 = arith.constant 0 : index
    %11 = vector.load %arg12[%c0_7, %c0_8, %c0_9] : memref<8x8x384xf32, #tpu.memory_space<vmem>>, vector<8x8x384xf32>
    tpu.vector_store %arg12[%c0_7, %c0_8, %c0_9], %10 {strides = array<i32>} : memref<8x8x384xf32, #tpu.memory_space<vmem>>, vector<8x8x384xf32>,
    %c0_10 = arith.constant 0 : index
    %c0_11 = arith.constant 0 : index
    %12 = vector.load %arg5[%c0_10, %c0_11] : memref<128x384xf32, #tpu.memory_space<vmem>>, vector<128x384xf32>
    %c0_12 = arith.constant 0 : index
    %c0_13 = arith.constant 0 : index
    %13 = vector.load %arg6[%c0_12, %c0_13] : memref<1x128xf32, #tpu.memory_space<vmem>>, vector<1x128xf32>
    %14 = vector.shape_cast %13 : vector<1x128xf32> to vector<1x128xf32>
    %15 = vector.broadcast %14 : vector<1x128xf32> to vector<8x128xf32>
    %c0_14 = arith.constant 0 : index
    %c0_15 = arith.constant 0 : index
    %16 = vector.load %arg11[%c0_14, %c0_15] : memref<8x128xf32, #tpu.memory_space<vmem>>, vector<8x128xf32>
    %c0_i32_16 = arith.constant 0 : i32
    %17 = arith.index_cast %c0_i32_16 : i32 to index
    %c0_17 = arith.constant 0 : index
    %c0_18 = arith.constant 0 : index
    %18 = vector.load %arg12[%17, %c0_17, %c0_18] : memref<8x8x384xf32, #tpu.memory_space<vmem>>, vector<1x8x384xf32>
    %19 = vector.shape_cast %18 : vector<1x8x384xf32> to vector<8x384xf32>
    %cst_19 = arith.constant dense<0.000000e+00> : vector<8x384xf32>
    %20 = tpu.matmul %16, %12, %cst_19 {dimension_numbers = #tpu.dot_dimension_numbers<[1], [0], [0], [1], [0, 0, 1, 1], [], []>} : vector<8x128xf32>, vector<128x384xf32>, vector<8x384xf32> -> vector<8x384xf32>
    %21 = vector.extract_strided_slice %19 {offsets = [0, 0], sizes = [8, 128], strides = [1, 1]} : vector<8x384xf32> to vector<8x128xf32>
    %22 = vector.extract_strided_slice %20 {offsets = [0, 0], sizes = [8, 128], strides = [1, 1]} : vector<8x384xf32> to vector<8x128xf32>
    %23 = arith.addf %21, %22 : vector<8x128xf32>
    %24 = arith.negf %23 : vector<8x128xf32>
    %25 = math.exp %24 : vector<8x128xf32>
    %cst_20 = arith.constant 1.000000e+00 : f32
    %26 = vector.broadcast %cst_20 : f32 to vector<8x128xf32>
    %27 = arith.addf %26, %25 : vector<8x128xf32>
    %28 = arith.divf %26, %27 : vector<8x128xf32>
    %29 = vector.extract_strided_slice %19 {offsets = [0, 128], sizes = [8, 128], strides = [1, 1]} : vector<8x384xf32> to vector<8x128xf32>
    %30 = vector.extract_strided_slice %20 {offsets = [0, 128], sizes = [8, 128], strides = [1, 1]} : vector<8x384xf32> to vector<8x128xf32>
    %31 = arith.addf %29, %30 : vector<8x128xf32>
    %32 = arith.negf %31 : vector<8x128xf32>
    %33 = math.exp %32 : vector<8x128xf32>
    %cst_21 = arith.constant 1.000000e+00 : f32
    %34 = vector.broadcast %cst_21 : f32 to vector<8x128xf32>
    %35 = arith.addf %34, %33 : vector<8x128xf32>
    %36 = arith.divf %34, %35 : vector<8x128xf32>
    %37 = vector.extract_strided_slice %19 {offsets = [0, 256], sizes = [8, 128], strides = [1, 1]} : vector<8x384xf32> to vector<8x128xf32>
    %38 = vector.extract_strided_slice %20 {offsets = [0, 256], sizes = [8, 128], strides = [1, 1]} : vector<8x384xf32> to vector<8x128xf32>
    %39 = arith.addf %38, %15 : vector<8x128xf32>
    %40 = arith.mulf %28, %39 : vector<8x128xf32>
    %41 = arith.addf %37, %40 : vector<8x128xf32>
    %42 = math.tanh %41 : vector<8x128xf32>
    %43 = arith.subf %16, %42 : vector<8x128xf32>
    %44 = arith.mulf %36, %43 : vector<8x128xf32>
    %45 = arith.addf %42, %44 : vector<8x128xf32>
    %c1_i32 = arith.constant 1 : i32
    %46 = arith.index_cast %c1_i32 : i32 to index
    %c0_22 = arith.constant 0 : index
    %c0_23 = arith.constant 0 : index
    %47 = vector.load %arg12[%46, %c0_22, %c0_23] : memref<8x8x384xf32, #tpu.memory_space<vmem>>, vector<1x8x384xf32>
    %48 = vector.shape_cast %47 : vector<1x8x384xf32> to vector<8x384xf32>
    %cst_24 = arith.constant dense<0.000000e+00> : vector<8x384xf32>
    %49 = tpu.matmul %45, %12, %cst_24 {dimension_numbers = #tpu.dot_dimension_numbers<[1], [0], [0], [1], [0, 0, 1, 1], [], []>} : vector<8x128xf32>, vector<128x384xf32>, vector<8x384xf32> -> vector<8x384xf32>
    %50 = vector.extract_strided_slice %48 {offsets = [0, 0], sizes = [8, 128], strides = [1, 1]} : vector<8x384xf32> to vector<8x128xf32>
    %51 = vector.extract_strided_slice %49 {offsets = [0, 0], sizes = [8, 128], strides = [1, 1]} : vector<8x384xf32> to vector<8x128xf32>
    %52 = arith.addf %50, %51 : vector<8x128xf32>
    %53 = arith.negf %52 : vector<8x128xf32>
    %54 = math.exp %53 : vector<8x128xf32>
    %cst_25 = arith.constant 1.000000e+00 : f32
    %55 = vector.broadcast %cst_25 : f32 to vector<8x128xf32>
    %56 = arith.addf %55, %54 : vector<8x128xf32>
    %57 = arith.divf %55, %56 : vector<8x128xf32>
    %58 = vector.extract_strided_slice %48 {offsets = [0, 128], sizes = [8, 128], strides = [1, 1]} : vector<8x384xf32> to vector<8x128xf32>
    %59 = vector.extract_strided_slice %49 {offsets = [0, 128], sizes = [8, 128], strides = [1, 1]} : vector<8x384xf32> to vector<8x128xf32>
    %60 = arith.addf %58, %59 : vector<8x128xf32>
    %61 = arith.negf %60 : vector<8x128xf32>
    %62 = math.exp %61 : vector<8x128xf32>
    %cst_26 = arith.constant 1.000000e+00 : f32
    %63 = vector.broadcast %cst_26 : f32 to vector<8x128xf32>
    %64 = arith.addf %63, %62 : vector<8x128xf32>
    %65 = arith.divf %63, %64 : vector<8x128xf32>
    %66 = vector.extract_strided_slice %48 {offsets = [0, 256], sizes = [8, 128], strides = [1, 1]} : vector<8x384xf32> to vector<8x128xf32>
    %67 = vector.extract_strided_slice %49 {offsets = [0, 256], sizes = [8, 128], strides = [1, 1]} : vector<8x384xf32> to vector<8x128xf32>
    %68 = arith.addf %67, %15 : vector<8x128xf32>
    %69 = arith.mulf %57, %68 : vector<8x128xf32>
    %70 = arith.addf %66, %69 : vector<8x128xf32>
    %71 = math.tanh %70 : vector<8x128xf32>
    %72 = arith.subf %45, %71 : vector<8x128xf32>
    %73 = arith.mulf %65, %72 : vector<8x128xf32>
    %74 = arith.addf %71, %73 : vector<8x128xf32>
    %c2_i32 = arith.constant 2 : i32
    %75 = arith.index_cast %c2_i32 : i32 to index
    %c0_27 = arith.constant 0 : index
    %c0_28 = arith.constant 0 : index
    %76 = vector.load %arg12[%75, %c0_27, %c0_28] : memref<8x8x384xf32, #tpu.memory_space<vmem>>, vector<1x8x384xf32>
    %77 = vector.shape_cast %76 : vector<1x8x384xf32> to vector<8x384xf32>
    %cst_29 = arith.constant dense<0.000000e+00> : vector<8x384xf32>
    %78 = tpu.matmul %74, %12, %cst_29 {dimension_numbers = #tpu.dot_dimension_numbers<[1], [0], [0], [1], [0, 0, 1, 1], [], []>} : vector<8x128xf32>, vector<128x384xf32>, vector<8x384xf32> -> vector<8x384xf32>
    %79 = vector.extract_strided_slice %77 {offsets = [0, 0], sizes = [8, 128], strides = [1, 1]} : vector<8x384xf32> to vector<8x128xf32>
    %80 = vector.extract_strided_slice %78 {offsets = [0, 0], sizes = [8, 128], strides = [1, 1]} : vector<8x384xf32> to vector<8x128xf32>
    %81 = arith.addf %79, %80 : vector<8x128xf32>
    %82 = arith.negf %81 : vector<8x128xf32>
    %83 = math.exp %82 : vector<8x128xf32>
    %cst_30 = arith.constant 1.000000e+00 : f32
    %84 = vector.broadcast %cst_30 : f32 to vector<8x128xf32>
    %85 = arith.addf %84, %83 : vector<8x128xf32>
    %86 = arith.divf %84, %85 : vector<8x128xf32>
    %87 = vector.extract_strided_slice %77 {offsets = [0, 128], sizes = [8, 128], strides = [1, 1]} : vector<8x384xf32> to vector<8x128xf32>
    %88 = vector.extract_strided_slice %78 {offsets = [0, 128], sizes = [8, 128], strides = [1, 1]} : vector<8x384xf32> to vector<8x128xf32>
    %89 = arith.addf %87, %88 : vector<8x128xf32>
    %90 = arith.negf %89 : vector<8x128xf32>
    %91 = math.exp %90 : vector<8x128xf32>
    %cst_31 = arith.constant 1.000000e+00 : f32
    %92 = vector.broadcast %cst_31 : f32 to vector<8x128xf32>
    %93 = arith.addf %92, %91 : vector<8x128xf32>
    %94 = arith.divf %92, %93 : vector<8x128xf32>
    %95 = vector.extract_strided_slice %77 {offsets = [0, 256], sizes = [8, 128], strides = [1, 1]} : vector<8x384xf32> to vector<8x128xf32>
    %96 = vector.extract_strided_slice %78 {offsets = [0, 256], sizes = [8, 128], strides = [1, 1]} : vector<8x384xf32> to vector<8x128xf32>
    %97 = arith.addf %96, %15 : vector<8x128xf32>
    %98 = arith.mulf %86, %97 : vector<8x128xf32>
    %99 = arith.addf %95, %98 : vector<8x128xf32>
    %100 = math.tanh %99 : vector<8x128xf32>
    %101 = arith.subf %74, %100 : vector<8x128xf32>
    %102 = arith.mulf %94, %101 : vector<8x128xf32>
    %103 = arith.addf %100, %102 : vector<8x128xf32>
    %c3_i32 = arith.constant 3 : i32
    %104 = arith.index_cast %c3_i32 : i32 to index
    %c0_32 = arith.constant 0 : index
    %c0_33 = arith.constant 0 : index
    %105 = vector.load %arg12[%104, %c0_32, %c0_33] : memref<8x8x384xf32, #tpu.memory_space<vmem>>, vector<1x8x384xf32>
    %106 = vector.shape_cast %105 : vector<1x8x384xf32> to vector<8x384xf32>
    %cst_34 = arith.constant dense<0.000000e+00> : vector<8x384xf32>
    %107 = tpu.matmul %103, %12, %cst_34 {dimension_numbers = #tpu.dot_dimension_numbers<[1], [0], [0], [1], [0, 0, 1, 1], [], []>} : vector<8x128xf32>, vector<128x384xf32>, vector<8x384xf32> -> vector<8x384xf32>
    %108 = vector.extract_strided_slice %106 {offsets = [0, 0], sizes = [8, 128], strides = [1, 1]} : vector<8x384xf32> to vector<8x128xf32>
    %109 = vector.extract_strided_slice %107 {offsets = [0, 0], sizes = [8, 128], strides = [1, 1]} : vector<8x384xf32> to vector<8x128xf32>
    %110 = arith.addf %108, %109 : vector<8x128xf32>
    %111 = arith.negf %110 : vector<8x128xf32>
    %112 = math.exp %111 : vector<8x128xf32>
    %cst_35 = arith.constant 1.000000e+00 : f32
    %113 = vector.broadcast %cst_35 : f32 to vector<8x128xf32>
    %114 = arith.addf %113, %112 : vector<8x128xf32>
    %115 = arith.divf %113, %114 : vector<8x128xf32>
    %116 = vector.extract_strided_slice %106 {offsets = [0, 128], sizes = [8, 128], strides = [1, 1]} : vector<8x384xf32> to vector<8x128xf32>
    %117 = vector.extract_strided_slice %107 {offsets = [0, 128], sizes = [8, 128], strides = [1, 1]} : vector<8x384xf32> to vector<8x128xf32>
    %118 = arith.addf %116, %117 : vector<8x128xf32>
    %119 = arith.negf %118 : vector<8x128xf32>
    %120 = math.exp %119 : vector<8x128xf32>
    %cst_36 = arith.constant 1.000000e+00 : f32
    %121 = vector.broadcast %cst_36 : f32 to vector<8x128xf32>
    %122 = arith.addf %121, %120 : vector<8x128xf32>
    %123 = arith.divf %121, %122 : vector<8x128xf32>
    %124 = vector.extract_strided_slice %106 {offsets = [0, 256], sizes = [8, 128], strides = [1, 1]} : vector<8x384xf32> to vector<8x128xf32>
    %125 = vector.extract_strided_slice %107 {offsets = [0, 256], sizes = [8, 128], strides = [1, 1]} : vector<8x384xf32> to vector<8x128xf32>
    %126 = arith.addf %125, %15 : vector<8x128xf32>
    %127 = arith.mulf %115, %126 : vector<8x128xf32>
    %128 = arith.addf %124, %127 : vector<8x128xf32>
    %129 = math.tanh %128 : vector<8x128xf32>
    %130 = arith.subf %103, %129 : vector<8x128xf32>
    %131 = arith.mulf %123, %130 : vector<8x128xf32>
    %132 = arith.addf %129, %131 : vector<8x128xf32>
    %c4_i32 = arith.constant 4 : i32
    %133 = arith.index_cast %c4_i32 : i32 to index
    %c0_37 = arith.constant 0 : index
    %c0_38 = arith.constant 0 : index
    %134 = vector.load %arg12[%133, %c0_37, %c0_38] : memref<8x8x384xf32, #tpu.memory_space<vmem>>, vector<1x8x384xf32>
    %135 = vector.shape_cast %134 : vector<1x8x384xf32> to vector<8x384xf32>
    %cst_39 = arith.constant dense<0.000000e+00> : vector<8x384xf32>
    %136 = tpu.matmul %132, %12, %cst_39 {dimension_numbers = #tpu.dot_dimension_numbers<[1], [0], [0], [1], [0, 0, 1, 1], [], []>} : vector<8x128xf32>, vector<128x384xf32>, vector<8x384xf32> -> vector<8x384xf32>
    %137 = vector.extract_strided_slice %135 {offsets = [0, 0], sizes = [8, 128], strides = [1, 1]} : vector<8x384xf32> to vector<8x128xf32>
    %138 = vector.extract_strided_slice %136 {offsets = [0, 0], sizes = [8, 128], strides = [1, 1]} : vector<8x384xf32> to vector<8x128xf32>
    %139 = arith.addf %137, %138 : vector<8x128xf32>
    %140 = arith.negf %139 : vector<8x128xf32>
    %141 = math.exp %140 : vector<8x128xf32>
    %cst_40 = arith.constant 1.000000e+00 : f32
    %142 = vector.broadcast %cst_40 : f32 to vector<8x128xf32>
    %143 = arith.addf %142, %141 : vector<8x128xf32>
    %144 = arith.divf %142, %143 : vector<8x128xf32>
    %145 = vector.extract_strided_slice %135 {offsets = [0, 128], sizes = [8, 128], strides = [1, 1]} : vector<8x384xf32> to vector<8x128xf32>
    %146 = vector.extract_strided_slice %136 {offsets = [0, 128], sizes = [8, 128], strides = [1, 1]} : vector<8x384xf32> to vector<8x128xf32>
    %147 = arith.addf %145, %146 : vector<8x128xf32>
    %148 = arith.negf %147 : vector<8x128xf32>
    %149 = math.exp %148 : vector<8x128xf32>
    %cst_41 = arith.constant 1.000000e+00 : f32
    %150 = vector.broadcast %cst_41 : f32 to vector<8x128xf32>
    %151 = arith.addf %150, %149 : vector<8x128xf32>
    %152 = arith.divf %150, %151 : vector<8x128xf32>
    %153 = vector.extract_strided_slice %135 {offsets = [0, 256], sizes = [8, 128], strides = [1, 1]} : vector<8x384xf32> to vector<8x128xf32>
    %154 = vector.extract_strided_slice %136 {offsets = [0, 256], sizes = [8, 128], strides = [1, 1]} : vector<8x384xf32> to vector<8x128xf32>
    %155 = arith.addf %154, %15 : vector<8x128xf32>
    %156 = arith.mulf %144, %155 : vector<8x128xf32>
    %157 = arith.addf %153, %156 : vector<8x128xf32>
    %158 = math.tanh %157 : vector<8x128xf32>
    %159 = arith.subf %132, %158 : vector<8x128xf32>
    %160 = arith.mulf %152, %159 : vector<8x128xf32>
    %161 = arith.addf %158, %160 : vector<8x128xf32>
    %c5_i32 = arith.constant 5 : i32
    %162 = arith.index_cast %c5_i32 : i32 to index
    %c0_42 = arith.constant 0 : index
    %c0_43 = arith.constant 0 : index
    %163 = vector.load %arg12[%162, %c0_42, %c0_43] : memref<8x8x384xf32, #tpu.memory_space<vmem>>, vector<1x8x384xf32>
    %164 = vector.shape_cast %163 : vector<1x8x384xf32> to vector<8x384xf32>
    %cst_44 = arith.constant dense<0.000000e+00> : vector<8x384xf32>
    %165 = tpu.matmul %161, %12, %cst_44 {dimension_numbers = #tpu.dot_dimension_numbers<[1], [0], [0], [1], [0, 0, 1, 1], [], []>} : vector<8x128xf32>, vector<128x384xf32>, vector<8x384xf32> -> vector<8x384xf32>
    %166 = vector.extract_strided_slice %164 {offsets = [0, 0], sizes = [8, 128], strides = [1, 1]} : vector<8x384xf32> to vector<8x128xf32>
    %167 = vector.extract_strided_slice %165 {offsets = [0, 0], sizes = [8, 128], strides = [1, 1]} : vector<8x384xf32> to vector<8x128xf32>
    %168 = arith.addf %166, %167 : vector<8x128xf32>
    %169 = arith.negf %168 : vector<8x128xf32>
    %170 = math.exp %169 : vector<8x128xf32>
    %cst_45 = arith.constant 1.000000e+00 : f32
    %171 = vector.broadcast %cst_45 : f32 to vector<8x128xf32>
    %172 = arith.addf %171, %170 : vector<8x128xf32>
    %173 = arith.divf %171, %172 : vector<8x128xf32>
    %174 = vector.extract_strided_slice %164 {offsets = [0, 128], sizes = [8, 128], strides = [1, 1]} : vector<8x384xf32> to vector<8x128xf32>
    %175 = vector.extract_strided_slice %165 {offsets = [0, 128], sizes = [8, 128], strides = [1, 1]} : vector<8x384xf32> to vector<8x128xf32>
    %176 = arith.addf %174, %175 : vector<8x128xf32>
    %177 = arith.negf %176 : vector<8x128xf32>
    %178 = math.exp %177 : vector<8x128xf32>
    %cst_46 = arith.constant 1.000000e+00 : f32
    %179 = vector.broadcast %cst_46 : f32 to vector<8x128xf32>
    %180 = arith.addf %179, %178 : vector<8x128xf32>
    %181 = arith.divf %179, %180 : vector<8x128xf32>
    %182 = vector.extract_strided_slice %164 {offsets = [0, 256], sizes = [8, 128], strides = [1, 1]} : vector<8x384xf32> to vector<8x128xf32>
    %183 = vector.extract_strided_slice %165 {offsets = [0, 256], sizes = [8, 128], strides = [1, 1]} : vector<8x384xf32> to vector<8x128xf32>
    %184 = arith.addf %183, %15 : vector<8x128xf32>
    %185 = arith.mulf %173, %184 : vector<8x128xf32>
    %186 = arith.addf %182, %185 : vector<8x128xf32>
    %187 = math.tanh %186 : vector<8x128xf32>
    %188 = arith.subf %161, %187 : vector<8x128xf32>
    %189 = arith.mulf %181, %188 : vector<8x128xf32>
    %190 = arith.addf %187, %189 : vector<8x128xf32>
    %c6_i32 = arith.constant 6 : i32
    %191 = arith.index_cast %c6_i32 : i32 to index
    %c0_47 = arith.constant 0 : index
    %c0_48 = arith.constant 0 : index
    %192 = vector.load %arg12[%191, %c0_47, %c0_48] : memref<8x8x384xf32, #tpu.memory_space<vmem>>, vector<1x8x384xf32>
    %193 = vector.shape_cast %192 : vector<1x8x384xf32> to vector<8x384xf32>
    %cst_49 = arith.constant dense<0.000000e+00> : vector<8x384xf32>
    %194 = tpu.matmul %190, %12, %cst_49 {dimension_numbers = #tpu.dot_dimension_numbers<[1], [0], [0], [1], [0, 0, 1, 1], [], []>} : vector<8x128xf32>, vector<128x384xf32>, vector<8x384xf32> -> vector<8x384xf32>
    %195 = vector.extract_strided_slice %193 {offsets = [0, 0], sizes = [8, 128], strides = [1, 1]} : vector<8x384xf32> to vector<8x128xf32>
    %196 = vector.extract_strided_slice %194 {offsets = [0, 0], sizes = [8, 128], strides = [1, 1]} : vector<8x384xf32> to vector<8x128xf32>
    %197 = arith.addf %195, %196 : vector<8x128xf32>
    %198 = arith.negf %197 : vector<8x128xf32>
    %199 = math.exp %198 : vector<8x128xf32>
    %cst_50 = arith.constant 1.000000e+00 : f32
    %200 = vector.broadcast %cst_50 : f32 to vector<8x128xf32>
    %201 = arith.addf %200, %199 : vector<8x128xf32>
    %202 = arith.divf %200, %201 : vector<8x128xf32>
    %203 = vector.extract_strided_slice %193 {offsets = [0, 128], sizes = [8, 128], strides = [1, 1]} : vector<8x384xf32> to vector<8x128xf32>
    %204 = vector.extract_strided_slice %194 {offsets = [0, 128], sizes = [8, 128], strides = [1, 1]} : vector<8x384xf32> to vector<8x128xf32>
    %205 = arith.addf %203, %204 : vector<8x128xf32>
    %206 = arith.negf %205 : vector<8x128xf32>
    %207 = math.exp %206 : vector<8x128xf32>
    %cst_51 = arith.constant 1.000000e+00 : f32
    %208 = vector.broadcast %cst_51 : f32 to vector<8x128xf32>
    %209 = arith.addf %208, %207 : vector<8x128xf32>
    %210 = arith.divf %208, %209 : vector<8x128xf32>
    %211 = vector.extract_strided_slice %193 {offsets = [0, 256], sizes = [8, 128], strides = [1, 1]} : vector<8x384xf32> to vector<8x128xf32>
    %212 = vector.extract_strided_slice %194 {offsets = [0, 256], sizes = [8, 128], strides = [1, 1]} : vector<8x384xf32> to vector<8x128xf32>
    %213 = arith.addf %212, %15 : vector<8x128xf32>
    %214 = arith.mulf %202, %213 : vector<8x128xf32>
    %215 = arith.addf %211, %214 : vector<8x128xf32>
    %216 = math.tanh %215 : vector<8x128xf32>
    %217 = arith.subf %190, %216 : vector<8x128xf32>
    %218 = arith.mulf %210, %217 : vector<8x128xf32>
    %219 = arith.addf %216, %218 : vector<8x128xf32>
    %c7_i32 = arith.constant 7 : i32
    %220 = arith.index_cast %c7_i32 : i32 to index
    %c0_52 = arith.constant 0 : index
    %c0_53 = arith.constant 0 : index
    %221 = vector.load %arg12[%220, %c0_52, %c0_53] : memref<8x8x384xf32, #tpu.memory_space<vmem>>, vector<1x8x384xf32>
    %222 = vector.shape_cast %221 : vector<1x8x384xf32> to vector<8x384xf32>
    %cst_54 = arith.constant dense<0.000000e+00> : vector<8x384xf32>
    %223 = tpu.matmul %219, %12, %cst_54 {dimension_numbers = #tpu.dot_dimension_numbers<[1], [0], [0], [1], [0, 0, 1, 1], [], []>} : vector<8x128xf32>, vector<128x384xf32>, vector<8x384xf32> -> vector<8x384xf32>
    %224 = vector.extract_strided_slice %222 {offsets = [0, 0], sizes = [8, 128], strides = [1, 1]} : vector<8x384xf32> to vector<8x128xf32>
    %225 = vector.extract_strided_slice %223 {offsets = [0, 0], sizes = [8, 128], strides = [1, 1]} : vector<8x384xf32> to vector<8x128xf32>
    %226 = arith.addf %224, %225 : vector<8x128xf32>
    %227 = arith.negf %226 : vector<8x128xf32>
    %228 = math.exp %227 : vector<8x128xf32>
    %cst_55 = arith.constant 1.000000e+00 : f32
    %229 = vector.broadcast %cst_55 : f32 to vector<8x128xf32>
    %230 = arith.addf %229, %228 : vector<8x128xf32>
    %231 = arith.divf %229, %230 : vector<8x128xf32>
    %232 = vector.extract_strided_slice %222 {offsets = [0, 128], sizes = [8, 128], strides = [1, 1]} : vector<8x384xf32> to vector<8x128xf32>
    %233 = vector.extract_strided_slice %223 {offsets = [0, 128], sizes = [8, 128], strides = [1, 1]} : vector<8x384xf32> to vector<8x128xf32>
    %234 = arith.addf %232, %233 : vector<8x128xf32>
    %235 = arith.negf %234 : vector<8x128xf32>
    %236 = math.exp %235 : vector<8x128xf32>
    %cst_56 = arith.constant 1.000000e+00 : f32
    %237 = vector.broadcast %cst_56 : f32 to vector<8x128xf32>
    %238 = arith.addf %237, %236 : vector<8x128xf32>
    %239 = arith.divf %237, %238 : vector<8x128xf32>
    %240 = vector.extract_strided_slice %222 {offsets = [0, 256], sizes = [8, 128], strides = [1, 1]} : vector<8x384xf32> to vector<8x128xf32>
    %241 = vector.extract_strided_slice %223 {offsets = [0, 256], sizes = [8, 128], strides = [1, 1]} : vector<8x384xf32> to vector<8x128xf32>
    %242 = arith.addf %241, %15 : vector<8x128xf32>
    %243 = arith.mulf %231, %242 : vector<8x128xf32>
    %244 = arith.addf %240, %243 : vector<8x128xf32>
    %245 = math.tanh %244 : vector<8x128xf32>
    %246 = arith.subf %219, %245 : vector<8x128xf32>
    %247 = arith.mulf %239, %246 : vector<8x128xf32>
    %248 = arith.addf %245, %247 : vector<8x128xf32>
    %c8_i32 = arith.constant 8 : i32
    %c0_57 = arith.constant 0 : index
    %c0_58 = arith.constant 0 : index
    %249 = vector.load %arg11[%c0_57, %c0_58] : memref<8x128xf32, #tpu.memory_space<vmem>>, vector<8x128xf32>
    tpu.vector_store %arg11[%c0_57, %c0_58], %248 {strides = array<i32>} : memref<8x128xf32, #tpu.memory_space<vmem>>, vector<8x128xf32>,
    %c0_i32_59 = arith.constant 0 : i32
    %250 = arith.cmpi eq, %arg1, %c0_i32_59 : i32
    %251 = arith.extui %250 : i1 to i32
    %c0_i32_60 = arith.constant 0 : i32
    %252 = arith.cmpi ne, %251, %c0_i32_60 : i32
    scf.if %252 {
      %c0_61 = arith.constant 0 : index
      %c0_62 = arith.constant 0 : index
      %253 = vector.load %arg8[%c0_61, %c0_62] : memref<128x8xf32, #tpu.memory_space<vmem>>, vector<128x8xf32>
      %cst_63 = arith.constant dense<0.000000e+00> : vector<8x8xf32>
      %254 = tpu.matmul %248, %253, %cst_63 {dimension_numbers = #tpu.dot_dimension_numbers<[1], [0], [0], [1], [0, 0, 1, 1], [], []>} : vector<8x128xf32>, vector<128x8xf32>, vector<8x8xf32> -> vector<8x8xf32>
      %c0_64 = arith.constant 0 : index
      %c0_65 = arith.constant 0 : index
      %255 = vector.load %arg9[%c0_64, %c0_65] : memref<1x8xf32, #tpu.memory_space<vmem>>, vector<1x8xf32>
      %256 = vector.broadcast %255 : vector<1x8xf32> to vector<8x8xf32>
      %257 = arith.addf %254, %256 : vector<8x8xf32>
      %c0_66 = arith.constant 0 : index
      %c0_67 = arith.constant 0 : index
      %258 = vector.load %arg10[%c0_66, %c0_67] : memref<8x8xf32, #tpu.memory_space<vmem>>, vector<8x8xf32>
      tpu.vector_store %arg10[%c0_66, %c0_67], %257 {strides = array<i32>} : memref<8x8xf32, #tpu.memory_space<vmem>>, vector<8x8xf32>,
    } else {
    }
    return
  }
  func.func @transform_0(%arg0: i32, %arg1: i32) -> (i32, i32, i32) {
    %c0_i32 = arith.constant 0 : i32
    %c0_i32_0 = arith.constant 0 : i32
    return %arg1, %arg0, %c0_i32 : i32, i32, i32
  }
  func.func @transform_1(%arg0: i32, %arg1: i32) -> (i32, i32) {
    %c0_i32 = arith.constant 0 : i32
    %c0_i32_0 = arith.constant 0 : i32
    %c0_i32_1 = arith.constant 0 : i32
    return %c0_i32, %c0_i32_0 : i32, i32
  }
  func.func @transform_2(%arg0: i32, %arg1: i32) -> (i32, i32) {
    %c0_i32 = arith.constant 0 : i32
    %c0_i32_0 = arith.constant 0 : i32
    %c0_i32_1 = arith.constant 0 : i32
    return %c0_i32, %c0_i32_0 : i32, i32
  }
  func.func @transform_3(%arg0: i32, %arg1: i32) -> (i32, i32) {
    %c0_i32 = arith.constant 0 : i32
    %c0_i32_0 = arith.constant 0 : i32
    %c0_i32_1 = arith.constant 0 : i32
    return %c0_i32, %c0_i32_0 : i32, i32
  }
  func.func @transform_4(%arg0: i32, %arg1: i32) -> (i32, i32) {
    %c0_i32 = arith.constant 0 : i32
    %c0_i32_0 = arith.constant 0 : i32
    %c0_i32_1 = arith.constant 0 : i32
    return %c0_i32, %c0_i32_0 : i32, i32
  }
  func.func @transform_5(%arg0: i32, %arg1: i32) -> (i32, i32) {
    %c0_i32 = arith.constant 0 : i32
    %c0_i32_0 = arith.constant 0 : i32
    return %arg0, %c0_i32 : i32, i32
  }
  func.func @transform_6(%arg0: i32, %arg1: i32) -> (i32, i32) {
    %c0_i32 = arith.constant 0 : i32
    %c0_i32_0 = arith.constant 0 : i32
    %c0_i32_1 = arith.constant 0 : i32
    return %c0_i32, %c0_i32_0 : i32, i32
  }
  func.func @transform_7(%arg0: i32, %arg1: i32) -> (i32, i32) {
    %c0_i32 = arith.constant 0 : i32
    %c0_i32_0 = arith.constant 0 : i32
    %c0_i32_1 = arith.constant 0 : i32
    return %c0_i32, %c0_i32_0 : i32, i32
  }
  func.func @transform_8(%arg0: i32, %arg1: i32) -> (i32, i32) {
    %c0_i32 = arith.constant 0 : i32
    %c0_i32_0 = arith.constant 0 : i32
    return %arg0, %c0_i32 : i32, i32
  }
}

</mosaic_0001>

<bundles_post_ra>
// kernel: mc_mtl_sgru_forward.2
= control target key start
LH: loop header
LB: loop body
LE: loop exit
PB: predicated region body
PF: predicated region fallthrough
CT: control target
= control target key end

     0   :  { %vm53_vm0 = vcmask 130048   ;;  %s2502_s3 = inlined_call_operand.vmem [shape: f32[128,384], index: 3, kind: input, shape index: {}]   ;;  %s2503_s1 = inlined_call_operand.vmem [shape: f32[16,384], index: 1, kind: input, shape index: {}]   ;;  %s2504_s0 = inlined_call_operand.vmem [shape: f32[8,8,16], index: 0, kind: input, shape index: {}]   ;;  %s2505_s5 = inlined_call_operand.vmem [shape: f32[8,128], index: 5, kind: input, shape index: {}]   ;;  %s2506_s4 = inlined_call_operand.vmem [shape: f32[1,128], index: 4, kind: input, shape index: {}]   ;;  %s2507_s2 = inlined_call_operand.vmem [shape: f32[1,384], index: 2, kind: input, shape index: {}]   ;;  %s2508_s6 = inlined_call_operand.vmem [shape: f32[8,8,128], index: 6, kind: output, shape index: {0}]   ;;  %s2509_s7 = inlined_call_operand.vmem [shape: f32[8,128], index: 7, kind: output, shape index: {1}]  }
   0x1   :  { %v1414_v0 = vld [vmem:[%s2502_s3 + $0x168] sm:$0xff]  ;;  %v1419_v1 = vld [vmem:[%s2502_s3 + $0x150] sm:$0xff]  ;;  %v42_v2 = vld [vmem:[%s2503_s1 + $0x18] sm:$0xff] }
   0x2   :  { %281 = vmatpush.msra.mxu3 %v1414_v0  ;;  %v39_v3 = vld [vmem:[%s2503_s1] sm:$0xff]  ;;  %v1431_v4 = vld [vmem:[%s2502_s3 + $0x138] sm:$0xff]  ;;  %92 = vmatpush.msra.mxu0 %v42_v2  ;;  %v1450_v7 = vld [vmem:[%s2502_s3 + $0x108] sm:$0xff] }
   0x3   :  { %v1436_v5 = vld [vmem:[%s2504_s0] sm:$0xff]  ;;  %1237 = vmatpush.msra.mxu2 %v42_v2  ;;  %v1455_v8 = vld [vmem:[%s2502_s3 + $0x178] sm:$0xff]  ;;  %v1462_v9 = vld [vmem:[%s2502_s3 + $0xf0] sm:$0xff] }
   0x4   :  { %282 = vmatpush.msra.mxu3 %v1419_v1  ;;  %v1442_v6 = vld [vmem:[%s2502_s3 + $0x120] sm:$0xff]  ;;  %93 = vmatpush.msra.mxu0 %v39_v3  ;;  %v1474_v11 = vld [vmem:[%s2502_s3 + $0x148] sm:$0xff]  ;;  %v1479_v12 = vld [vmem:[%s2502_s3 + $0xd8] sm:$0xff] }
   0x5   :  { %1238 = vmatpush.msra.mxu2 %v39_v3  ;;  %1190 = vmatmul.msk.f32.vlgmr.msra.gmra.mxu0 %vm53_vm0, %v1436_v5  ;;  %v1467_v10 = vld [vmem:[%s2502_s3 + $0x160] sm:$0xff]  ;;  %v1484_v13 = vld [vmem:[%s2504_s0 + $0x8] sm:$0xff]  ;;  %v1491_v14 = vld [vmem:[%s2502_s3 + $0x130] sm:$0xff] }
   0x6   :  { %283 = vmatpush.msra.mxu3 %v1431_v4  ;;  %321 = vmatpush.msrb.mxu0 %v1455_v8  ;;  %v1496_v15 = vld [vmem:[%s2502_s3 + $0xc0] sm:$0xff]  ;;  %v1504_v16 = vld [vmem:[%s2502_s3 + $0x118] sm:$0xff]  ;;  %v1514_v18 = vld [vmem:[%s2502_s3 + $0xa8] sm:$0xff] }
   0x7   :  { %v1509_v17 = vld [vmem:[%s2504_s0 + $0x38] sm:$0xff]  ;;  %v1523_v19 = vld [vmem:[%s2502_s3 + $0x100] sm:$0xff]  ;;  %v1528_v20 = vld [vmem:[%s2502_s3 + $0x90] sm:$0xff] }
   0x8   :  { %284 = vmatpush.msra.mxu3 %v1442_v6  ;;  %322 = vmatpush.msrb.mxu0 %v1467_v10  ;;  %v1535_v21 = vld [vmem:[%s2502_s3 + $0xe8] sm:$0xff]  ;;  %v1540_v22 = vld [vmem:[%s2502_s3 + $0x78] sm:$0xff]  ;;  %v1545_v23 = vld [vmem:[%s2504_s0 + $0x10] sm:$0xff] }
   0x9   :  { %1197 = vmatmul.msk.f32.vlgmr.msra.gmra.mxu2 %vm53_vm0, %v1509_v17  ;;  %v1552_v24 = vld [vmem:[%s2502_s3 + $0xd0] sm:$0xff]  ;;  %v43_v25 = vld [vmem:[%s2503_s1 + $0x20] sm:$0xff]  ;;  %v1569_v27 = vld [vmem:[%s2502_s3 + $0xb8] sm:$0xff] }
   0xa   :  { %285 = vmatpush.msra.mxu3 %v1450_v7  ;;  %323 = vmatpush.msrb.mxu0 %v1474_v11  ;;  %v1560_v26 = vld [vmem:[%s2502_s3 + $0x60] sm:$0xff]  ;;  %v40_v28 = vld [vmem:[%s2503_s1 + $0x8] sm:$0xff]  ;;  %v1591_v31 = vld [vmem:[%s2502_s3 + $0x30] sm:$0xff] }
   0xb   :  { %1239 = vmatpush.msrb.mxu2 %v43_v25  ;;  %v1577_v29 = vld [vmem:[%s2502_s3 + $0x48] sm:$0xff]  ;;  %v1584_v30 = vld [vmem:[%s2502_s3 + $0xa0] sm:$0xff]  ;;  %2528 = vst [vmem:[#allocation4_spill] sm:$0xff] %v1591_v31  ;;  %133 = vmatpush.msra.mxu1 %v43_v25  ;;  %v1603_v33 = vld [vmem:[%s2502_s3 + $0x18] sm:$0xff] }
   0xc   :  { %286 = vmatpush.msra.mxu3 %v1462_v9  ;;  %324 = vmatpush.msrb.mxu0 %v1491_v14  ;;  %v1598_v32 = vld [vmem:[%s2502_s3 + $0x88] sm:$0xff]  ;;  %2529 = vst [vmem:[#allocation5_spill] sm:$0xff] %v1603_v33  ;;  %v1608_v34 = vld [vmem:[%s2504_s0 + $0x18] sm:$0xff]  ;;  %v1615_v35 = vld [vmem:[%s2502_s3 + $0x70] sm:$0xff] }
   0xd   :  { %1191 = vmatmul.msk.f32.gmra.mxu0 %vm53_vm0, %v1484_v13  ;;  %1240 = vmatpush.msrb.mxu2 %v40_v28  ;;  %v44_v36 = vld [vmem:[%s2503_s1 + $0x28] sm:$0xff]  ;;  %v1625_v37 = vld [vmem:[%s2502_s3] sm:$0xff]  ;;  %v1639_v39 = vld [vmem:[%s2502_s3 + $0x58] sm:$0xff] }
   0xe   :  { %287 = vmatpush.msra.mxu3 %v1479_v12  ;;  %325 = vmatpush.msrb.mxu0 %v1504_v16  ;;  %2530 = vst [vmem:[#allocation6_spill] sm:$0xff] %v1625_v37  ;;  %v1632_v38 = vld [vmem:[%s2505_s5] sm:$0xff]  ;;  %v41_v40 = vld [vmem:[%s2503_s1 + $0x10] sm:$0xff]  ;;  %v1662_v43 = vld [vmem:[%s2502_s3 + $0x158] sm:$0xff] }
   0xf   :  { %134 = vmatpush.msra.mxu1 %v40_v28  ;;  %174 = vmatpush.msra.mxu2 %v44_v36  ;;  %v1647_v41 = vld [vmem:[%s2502_s3 + $0x170] sm:$0xff]  ;;  %v1654_v42 = vld [vmem:[%s2502_s3 + $0x40] sm:$0xff]  ;;  %v1669_v44 = vld [vmem:[%s2502_s3 + $0x28] sm:$0xff] }
  0x10   :  { %288 = vmatpush.msra.mxu3 %v1496_v15  ;;  %326 = vmatpush.msrb.mxu0 %v1523_v19  ;;  %2531 = vst [vmem:[#allocation7_spill] sm:$0xff] %v1654_v42  ;;  %v1675_v45 = vld [vmem:[%s2502_s3 + $0x140] sm:$0xff]  ;;  %v1688_v47 = vld [vmem:[%s2502_s3 + $0x10] sm:$0xff]  ;;  %v1694_v48 = vld [vmem:[%s2502_s3 + $0x128] sm:$0xff] }
  0x11   :  { %1205 = vmatmul.msk.f32.vlgmr.msrb.gmra.mxu2 %vm53_vm0, %v1509_v17  ;;  %1198 = vmatmul.msk.f32.vlgmr.msra.gmra.mxu1 %vm53_vm0, %v1436_v5  ;;  %2532 = vst [vmem:[#allocation8_spill] sm:$0xff] %v1669_v44  ;;  %v1680_v46 = vld [vmem:[%s2504_s0 + $0x20] sm:$0xff]  ;;  %v1704_v49 = vld [vmem:[%s2502_s3 + $0x110] sm:$0xff]  ;;  %v1714_v50 = vld [vmem:[%s2502_s3 + $0xf8] sm:$0xff] }
  0x12   :  { %289 = vmatpush.msra.mxu3 %v1514_v18  ;;  %327 = vmatpush.msrb.mxu0 %v1535_v21  ;;  %2533 = vst [vmem:[#allocation9_spill] sm:$0xff] %v1688_v47  ;;  %v1724_v51 = vld [vmem:[%s2502_s3 + $0xe0] sm:$0xff]  ;;  %v1729_v52 = vld [vmem:[%s2504_s0 + $0x28] sm:$0xff]  ;;  %v1748_v54 = vld [vmem:[%s2502_s3 + $0xb0] sm:$0xff] }
  0x13   :  { %175 = vmatpush.msra.mxu2 %v41_v40  ;;  %393 = vmatpush.msrb.mxu1 %v1414_v0  ;;  %v1738_v53 = vld [vmem:[%s2502_s3 + $0xc8] sm:$0xff]  ;;  %v1758_v55 = vld [vmem:[%s2502_s3 + $0x98] sm:$0xff]  ;;  %v1768_v56 = vld [vmem:[%s2502_s3 + $0x80] sm:$0xff] }
  0x14   :  { %290 = vmatpush.msra.mxu3 %v1528_v20  ;;  %328 = vmatpush.msrb.mxu0 %v1552_v24  ;;  %v1773_v57 = vld [vmem:[%s2504_s0 + $0x30] sm:$0xff]  ;;  %v1782_v58 = vld [vmem:[%s2502_s3 + $0x68] sm:$0xff]  ;;  %v1802_v60 = vld [vmem:[%s2502_s3 + $0x38] sm:$0xff] }
  0x15   :  { %1192 = vmatmul.msk.f32.gmra.mxu0 %vm53_vm0, %v1545_v23  ;;  %413 = vmatpush.msrb.mxu2 %v1647_v41  ;;  %v1792_v59 = vld [vmem:[%s2502_s3 + $0x50] sm:$0xff]  ;;  %2534 = vst [vmem:[#allocation10_spill] sm:$0xff] %v1802_v60  ;;  %v1812_v61 = vld [vmem:[%s2502_s3 + $0x20] sm:$0xff]  ;;  %v1821_v62 = vld [vmem:[%s2502_s3 + $0x8] sm:$0xff] }
  0x16   :  { %291 = vmatpush.msra.mxu3 %v1540_v22  ;;  %329 = vmatpush.msrb.mxu0 %v1569_v27  ;;  %2535 = vst [vmem:[#allocation11_spill] sm:$0xff] %v1812_v61  ;;  %v45_v2 = vld [vmem:[%s2507_s2] sm:$0x7] }
  0x17   :  { %414 = vmatpush.msrb.mxu2 %v1662_v43  ;;  %394 = vmatpush.msrb.mxu1 %v1419_v1  ;;  %2536 = vst [vmem:[#allocation12_spill] sm:$0xff] %v1821_v62  ;;  %v47_v3 = vperm.slane %v45_v2, 0 }
  0x18   :  { %292 = vmatpush.msra.mxu3 %v1560_v26  ;;  %330 = vmatpush.msrb.mxu0 %v1584_v30 }
  0x19   :  { %1206 = vmatmul.msk.f32.vlgmr.msra.gmra.mxu2 %vm53_vm0, %v1436_v5  ;;  %395 = vmatpush.msrb.mxu1 %v1431_v4 }
  0x1a   :  { %293 = vmatpush.msra.mxu3 %v1577_v29  ;;  %331 = vmatpush.msrb.mxu0 %v1598_v32 }
  0x1b   :  { %415 = vmatpush.msrb.mxu2 %v1675_v45  ;;  %1199 = vmatmul.msk.f32.gmra.mxu1 %vm53_vm0, %v1484_v13 }
  0x1c   :  { %294 = vmatpush.msra.mxu3 %v1591_v31  ;;  %332 = vmatpush.msrb.mxu0 %v1615_v35 }
  0x1d   :  { %1193 = vmatmul.msk.f32.gmra.mxu0 %vm53_vm0, %v1608_v34  ;;  %396 = vmatpush.msrb.mxu1 %v1442_v6 }
  0x1e   :  { %295 = vmatpush.msra.mxu3 %v1603_v33  ;;  %333 = vmatpush.msrb.mxu0 %v1639_v39 }
  0x1f   :  { %416 = vmatpush.msrb.mxu2 %v1694_v48  ;;  %397 = vmatpush.msrb.mxu1 %v1450_v7 }
  0x20   :  { %296 = vmatpush.msra.mxu3 %v1625_v37  ;;  %334 = vmatpush.msrb.mxu0 %v1654_v42 }
  0x21   :  { %297 = vmatmul.f32.vlgmr.msra.gmra.mxu3 %v1632_v38  ;;  %1207 = vmatmul.msk.f32.gmra.mxu2 %vm53_vm0, %v1484_v13 }
  0x22   :  { %301 = vmatpush.msrb.mxu3 %v1647_v41  ;;  %335 = vmatpush.msrb.mxu0 %v1669_v44 }
  0x23   :  { %417 = vmatpush.msrb.mxu2 %v1704_v49  ;;  %398 = vmatpush.msrb.mxu1 %v1462_v9 }
  0x24   :  { %302 = vmatpush.msrb.mxu3 %v1662_v43  ;;  %336 = vmatpush.msrb.mxu0 %v1688_v47 }
  0x25   :  { %1194 = vmatmul.msk.f32.gmra.mxu0 %vm53_vm0, %v1680_v46  ;;  %418 = vmatpush.msrb.mxu2 %v1714_v50 }
  0x26   :  { %303 = vmatpush.msrb.mxu3 %v1675_v45  ;;  %506 = vmatpush.msra.mxu0 %v1414_v0 }
  0x27   :  { %1200 = vmatmul.msk.f32.gmra.mxu1 %vm53_vm0, %v1545_v23  ;;  %419 = vmatpush.msrb.mxu2 %v1724_v51 }
  0x28   :  { %304 = vmatpush.msrb.mxu3 %v1694_v48  ;;  %507 = vmatpush.msra.mxu0 %v1419_v1 }
  0x29   :  { %1208 = vmatmul.msk.f32.gmra.mxu2 %vm53_vm0, %v1545_v23  ;;  %399 = vmatpush.msrb.mxu1 %v1479_v12 }
  0x2a   :  { %305 = vmatpush.msrb.mxu3 %v1704_v49  ;;  %420 = vmatpush.msrb.mxu2 %v1738_v53 }
  0x2b   :  { %508 = vmatpush.msra.mxu0 %v1431_v4  ;;  %400 = vmatpush.msrb.mxu1 %v1496_v15 }
  0x2c   :  { %306 = vmatpush.msrb.mxu3 %v1714_v50  ;;  %421 = vmatpush.msrb.mxu2 %v1748_v54 }
  0x2d   :  { %1195 = vmatmul.msk.f32.gmra.mxu0 %vm53_vm0, %v1729_v52  ;;  %401 = vmatpush.msrb.mxu1 %v1514_v18 }
  0x2e   :  { %307 = vmatpush.msrb.mxu3 %v1724_v51  ;;  %509 = vmatpush.msra.mxu0 %v1442_v6 }
  0x2f   :  { %422 = vmatpush.msrb.mxu2 %v1758_v55  ;;  %1201 = vmatmul.msk.f32.gmra.mxu1 %vm53_vm0, %v1608_v34 }
  0x30   :  { %308 = vmatpush.msrb.mxu3 %v1738_v53  ;;  %402 = vmatpush.msrb.mxu1 %v1528_v20 }
  0x31   :  { %1209 = vmatmul.msk.f32.gmra.mxu2 %vm53_vm0, %v1608_v34  ;;  %510 = vmatpush.msra.mxu0 %v1450_v7 }
  0x32   :  { %309 = vmatpush.msrb.mxu3 %v1748_v54  ;;  %423 = vmatpush.msrb.mxu2 %v1768_v56 }
  0x33   :  { %403 = vmatpush.msrb.mxu1 %v1540_v22  ;;  %511 = vmatpush.msra.mxu0 %v1462_v9 }
  0x34   :  { %310 = vmatpush.msrb.mxu3 %v1758_v55  ;;  %424 = vmatpush.msrb.mxu2 %v1782_v58 }
  0x35   :  { %1196 = vmatmul.msk.f32.gmra.mxu0 %vm53_vm0, %v1773_v57  ;;  %404 = vmatpush.msrb.mxu1 %v1560_v26 }
  0x36   :  { %311 = vmatpush.msrb.mxu3 %v1768_v56  ;;  %425 = vmatpush.msrb.mxu2 %v1792_v59 }
  0x37   :  { %1202 = vmatmul.msk.f32.gmra.mxu1 %vm53_vm0, %v1680_v46  ;;  %512 = vmatpush.msra.mxu0 %v1479_v12 }
  0x38   :  { %312 = vmatpush.msrb.mxu3 %v1782_v58  ;;  %426 = vmatpush.msrb.mxu2 %v1802_v60 }
  0x39   :  { %1210 = vmatmul.msk.f32.gmra.mxu2 %vm53_vm0, %v1680_v46  ;;  %405 = vmatpush.msrb.mxu1 %v1577_v29 }
  0x3a   :  { %313 = vmatpush.msrb.mxu3 %v1792_v59  ;;  %427 = vmatpush.msrb.mxu2 %v1812_v61 }
  0x3b   :  { %406 = vmatpush.msrb.mxu1 %v1591_v31  ;;  %513 = vmatpush.msra.mxu0 %v1496_v15 }
  0x3c   :  { %314 = vmatpush.msrb.mxu3 %v1802_v60  ;;  %428 = vmatpush.msrb.mxu2 %v1821_v62 }
  0x3d   :  { %337 = vmatmul.f32.vlgmr.msrb.gmra.mxu0 %v1632_v38  ;;  %407 = vmatpush.msrb.mxu1 %v1603_v33 }
  0x3e   :  { %315 = vmatpush.msrb.mxu3 %v1812_v61  ;;  %546 = vmatpush.msra.mxu2 %v1455_v8 }
  0x3f   :  { %514 = vmatpush.msra.mxu0 %v1514_v18  ;;  %1203 = vmatmul.msk.f32.gmra.mxu1 %vm53_vm0, %v1729_v52 }
  0x40   :  { %316 = vmatpush.msrb.mxu3 %v1821_v62  ;;  %547 = vmatpush.msra.mxu2 %v1467_v10 }
  0x41   :  { %317 = vmatmul.f32.vlgmr.msrb.gmra.mxu3 %v1632_v38  ;;  %1211 = vmatmul.msk.f32.gmra.mxu2 %vm53_vm0, %v1729_v52 }
  0x42   :  { %433 = vmatpush.msra.mxu3 %v1455_v8  ;;  %408 = vmatpush.msrb.mxu1 %v1625_v37 }
  0x43   :  { %548 = vmatpush.msra.mxu2 %v1474_v11  ;;  %515 = vmatpush.msra.mxu0 %v1528_v20 }
  0x44   :  { %434 = vmatpush.msra.mxu3 %v1467_v10  ;;  %526 = vmatpush.msra.mxu1 %v1647_v41 }
  0x45   :  { %549 = vmatpush.msra.mxu2 %v1491_v14  ;;  %516 = vmatpush.msra.mxu0 %v1540_v22 }
  0x46   :  { %435 = vmatpush.msra.mxu3 %v1474_v11  ;;  %527 = vmatpush.msra.mxu1 %v1662_v43 }
  0x47   :  { %550 = vmatpush.msra.mxu2 %v1504_v16  ;;  %1204 = vmatmul.msk.f32.gmra.mxu1 %vm53_vm0, %v1773_v57 }
  0x48   :  { %436 = vmatpush.msra.mxu3 %v1491_v14  ;;  %528 = vmatpush.msra.mxu1 %v1675_v45 }
  0x49   :  { %1212 = vmatmul.msk.f32.gmra.mxu2 %vm53_vm0, %v1773_v57  ;;  %517 = vmatpush.msra.mxu0 %v1560_v26 }
  0x4a   :  { %437 = vmatpush.msra.mxu3 %v1504_v16  ;;  %551 = vmatpush.msra.mxu2 %v1523_v19 }
  0x4b   :  { %529 = vmatpush.msra.mxu1 %v1694_v48  ;;  %518 = vmatpush.msra.mxu0 %v1577_v29 }
  0x4c   :  { %438 = vmatpush.msra.mxu3 %v1523_v19  ;;  %552 = vmatpush.msra.mxu2 %v1535_v21 }
  0x4d   :  { %530 = vmatpush.msra.mxu1 %v1704_v49  ;;  %519 = vmatpush.msra.mxu0 %v1591_v31 }
  0x4e   :  { %439 = vmatpush.msra.mxu3 %v1535_v21  ;;  %553 = vmatpush.msra.mxu2 %v1552_v24 }
  0x4f   :  { %531 = vmatpush.msra.mxu1 %v1714_v50  ;;  %520 = vmatpush.msra.mxu0 %v1603_v33 }
  0x50   :  { %440 = vmatpush.msra.mxu3 %v1552_v24  ;;  %554 = vmatpush.msra.mxu2 %v1569_v27 }
  0x51   :  { %1213 = vmatmul.msk.f32.gmra.mxu2 %vm53_vm0, %v1509_v17  ;;  %532 = vmatpush.msra.mxu1 %v1724_v51 }
  0x52   :  { %441 = vmatpush.msra.mxu3 %v1569_v27  ;;  %555 = vmatpush.msra.mxu2 %v1584_v30 }
  0x53   :  { %533 = vmatpush.msra.mxu1 %v1738_v53  ;;  %521 = vmatpush.msra.mxu0 %v1625_v37 }
  0x54   :  { %442 = vmatpush.msra.mxu3 %v1584_v30  ;;  %556 = vmatpush.msra.mxu2 %v1598_v32 }
  0x55   :  { %534 = vmatpush.msra.mxu1 %v1748_v54  ;;  %639 = vmatpush.msrb.mxu0 %v1647_v41 }
  0x56   :  { %443 = vmatpush.msra.mxu3 %v1598_v32  ;;  %557 = vmatpush.msra.mxu2 %v1615_v35 }
  0x57   :  { %535 = vmatpush.msra.mxu1 %v1758_v55  ;;  %640 = vmatpush.msrb.mxu0 %v1662_v43 }
  0x58   :  { %444 = vmatpush.msra.mxu3 %v1615_v35  ;;  %558 = vmatpush.msra.mxu2 %v1639_v39 }
  0x59   :  { %536 = vmatpush.msra.mxu1 %v1768_v56  ;;  %641 = vmatpush.msrb.mxu0 %v1675_v45 }
  0x5a   :  { %445 = vmatpush.msra.mxu3 %v1639_v39  ;;  %559 = vmatpush.msra.mxu2 %v1654_v42 }
  0x5b   :  { %537 = vmatpush.msra.mxu1 %v1782_v58  ;;  %642 = vmatpush.msrb.mxu0 %v1694_v48 }
  0x5c   :  { %446 = vmatpush.msra.mxu3 %v1654_v42  ;;  %560 = vmatpush.msra.mxu2 %v1669_v44 }
  0x5d   :  { %538 = vmatpush.msra.mxu1 %v1792_v59  ;;  %643 = vmatpush.msrb.mxu0 %v1704_v49 }
  0x5e   :  { %447 = vmatpush.msra.mxu3 %v1669_v44  ;;  %561 = vmatpush.msra.mxu2 %v1688_v47 }
  0x5f   :  { %539 = vmatpush.msra.mxu1 %v1802_v60  ;;  %644 = vmatpush.msrb.mxu0 %v1714_v50 }
  0x60   :  { %448 = vmatpush.msra.mxu3 %v1688_v47 }
  0x61   :  { %540 = vmatpush.msra.mxu1 %v1812_v61  ;;  %645 = vmatpush.msrb.mxu0 %v1724_v51 }
  0x62   :  { %619 = vmatpush.msrb.mxu3 %v1414_v0 }
  0x63   :  { %541 = vmatpush.msra.mxu1 %v1821_v62  ;;  %646 = vmatpush.msrb.mxu0 %v1738_v53 }
  0x64   :  { %620 = vmatpush.msrb.mxu3 %v1419_v1 }
  0x65   :  { %647 = vmatpush.msrb.mxu0 %v1748_v54 }
  0x66   :  { %621 = vmatpush.msrb.mxu3 %v1431_v4 }
  0x67   :  { %648 = vmatpush.msrb.mxu0 %v1758_v55 }
  0x68   :  { %622 = vmatpush.msrb.mxu3 %v1442_v6 }
  0x69   :  { %649 = vmatpush.msrb.mxu0 %v1768_v56 }
  0x6a   :  { %623 = vmatpush.msrb.mxu3 %v1450_v7 }
  0x6b   :  { %650 = vmatpush.msrb.mxu0 %v1782_v58 }
  0x6c   :  { %624 = vmatpush.msrb.mxu3 %v1462_v9 }
  0x6d   :  { %651 = vmatpush.msrb.mxu0 %v1792_v59 }
  0x6e   :  { %625 = vmatpush.msrb.mxu3 %v1479_v12 }
  0x6f   :  { %652 = vmatpush.msrb.mxu0 %v1802_v60 }
  0x70   :  { %626 = vmatpush.msrb.mxu3 %v1496_v15 }
  0x71   :  { %653 = vmatpush.msrb.mxu0 %v1812_v61 }
  0x72   :  { %627 = vmatpush.msrb.mxu3 %v1514_v18 }
  0x73   :  { %654 = vmatpush.msrb.mxu0 %v1821_v62 }
  0x74   :  { %628 = vmatpush.msrb.mxu3 %v1528_v20 }
  0x76   :  { %629 = vmatpush.msrb.mxu3 %v1540_v22 }
  0x78   :  { %630 = vmatpush.msrb.mxu3 %v1560_v26 }
  0x7a   :  { %631 = vmatpush.msrb.mxu3 %v1577_v29 }
  0x7c   :  { %632 = vmatpush.msrb.mxu3 %v1591_v31 }
  0x7e   :  { %633 = vmatpush.msrb.mxu3 %v1603_v33 }
  0x80   :  { %634 = vmatpush.msrb.mxu3 %v1625_v37 }
  0x82   :  { %v95_v63 = vpop.f32.mrf.mxu0 }
  0x83   :  { %v96_v40 = vadd.f32 %v95_v63, %v47_v3 }
  0x8a   :  { %v98_v5 = vpop.f32.mrf.mxu0 }
  0x8b   :  { %v1944_v13 = vadd.f32 %v98_v5, %v47_v3 }
  0x8c   :  { %v116_v17 = vpop.f32.mrf.mxu2 }
  0x8d   :  { %2537 = vst [vmem:[#allocation13_spill] sm:$0xff] %v1944_v13  ;;  %v1946_v25 = vadd.f32 %v116_v17, %v47_v3 }
  0x8f   :  { %2538 = vst [vmem:[#allocation14_spill] sm:$0xff] %v1946_v25 }
  0x92   :  { %v101_v23 = vpop.f32.mrf.mxu0 }
  0x93   :  { %v1948_v28 = vadd.f32 %v101_v23, %v47_v3 }
  0x95   :  { %2539 = vst [vmem:[#allocation15_spill] sm:$0xff] %v1948_v28  ;;  %v136_v28 = vpop.f32.mrf.mxu1 }
  0x9a   :  { %v104_v34 = vpop.f32.mrf.mxu0 }
  0x9b   :  { %v1950_v36 = vadd.f32 %v104_v34, %v47_v3 }
  0x9d   :  { %2540 = vst [vmem:[#allocation16_spill] sm:$0xff] %v1950_v36  ;;  %v1958_v36 = vperm.slane %v45_v2, 1 }
  0x9f   :  { %2544 = vst [vmem:[#allocation20_spill] sm:$0xff] %v1958_v36 }
  0xa2   :  { %v107_v46 = vpop.f32.mrf.mxu0 }
  0xa3   :  { %v1952_v57 = vadd.f32 %v107_v46, %v47_v3  ;;  %v137_v46 = vadd.f32 %v136_v28, %v1958_v36 }
  0xa4   :  { %v298_v52 = vpop.f32.mrf.mxu3 }
  0xa5   :  { %2541 = vst [vmem:[#allocation17_spill] sm:$0xff] %v1952_v57  ;;  %v341_v62 = vadd.f32 %v298_v52, %v96_v40 }
  0xa7   :  { %v1214_v37 = vmul.f32 -1.442695, %v341_v62  ;;  %v1961_v62 = vpop.f32.mrf.mxu2 }
  0xa8   :  { %2545 = vst [vmem:[#allocation21_spill] sm:$0xff] %v1961_v62 }
  0xa9   :  { %1242 = vpow2.f32 %v1214_v37 }
  0xaa   :  { %v110_v47 = vpop.f32.mrf.mxu0 }
  0xab   :  { %v1954_v5 = vadd.f32 %v110_v47, %v47_v3 }
  0xad   :  { %2542 = vst [vmem:[#allocation18_spill] sm:$0xff] %v1954_v5 }
  0xaf   :  { %v1243_v13 = vpop.eup %1242 }
  0xb0   :  { %v345_v61 = vadd.f32 1.0, %v1243_v13 }
  0xb2   :  { %1244 = vrcp.f32 %v345_v61  ;;  %v113_v17 = vpop.f32.mrf.mxu0  ;;  %v357_v13 = vand.u32 2147483648, %v345_v61  ;;  %vm351_vm2 = vweird.f32 %v345_v61 }
  0xb3   :  { %v1956_v23 = vadd.f32 %v113_v17, %v47_v3  ;;  %v1966_v3 = vld [vmem:[%s2506_s4] ss:$0 sm:$0xff]  ;;  %v355_v17 = vand.u32 2147483647, %v345_v61 }
  0xb5   :  { %2543 = vst [vmem:[#allocation19_spill] sm:$0xff] %v1956_v23  ;;  %vm356_vm4 = vcmp.eq.f32.partialorder %v355_v17, 8.507059e+37 }
  0xb8   :  { %v1245_v25 = vpop.eup %1244 }
  0xb9   :  { %v347_v34 = vmul.f32 %v1245_v25, %v345_v61  ;;  %vm352_vm1 = vweird.f32 %v1245_v25 }
  0xba   :  { %vm353_vm3 = vmor %vm351_vm2, %vm352_vm1 }
  0xbb   :  { %v348_v63 = vsub.f32 1.0, %v347_v34  ;;  %v338_v34 = vpop.f32.mrf.mxu0 }
  0xbc   :  { %v381_v62 = vadd.f32 %v1966_v3, %v338_v34 }
  0xbd   :  { %v349_v40 = vmul.f32 %v1245_v25, %v348_v63  ;;  %v358_v63 = vor.u32 1.1754944e-38, %v357_v13 }
  0xbf   :  { %v350_v52 = vadd.f32 %v1245_v25, %v349_v40 }
  0xc1   :  { %v354_v28 = vsel %vm353_vm3, %v1245_v25, %v350_v52 }
  0xc2   :  { %v359_v40 = vsel %vm356_vm4, %v358_v63, %v354_v28 }
  0xc3   :  { %v382_v23 = vmul.f32 %v381_v62, %v359_v40 }
  0xc4   :  { %v318_v37 = vpop.f32.mrf.mxu3 }
  0xc5   :  { %v361_v47 = vadd.f32 %v318_v37, %v137_v46  ;;  %v1969_v46 = vperm.slane %v45_v2, 2  ;;  %v177_v37 = vpop.f32.mrf.mxu2 }
  0xc7   :  { %v1215_v5 = vmul.f32 -1.442695, %v361_v47  ;;  %v178_v57 = vadd.f32 %v177_v37, %v1969_v46  ;;  %v2551_v37 = vld [vmem:[#allocation12_spill] sm:$0xff] }
  0xc9   :  { %1246 = vpow2.f32 %v1215_v5  ;;  %v383_v33 = vadd.f32 %v382_v23, %v178_v57  ;;  %v2550_v23 = vld [vmem:[#allocation6_spill] sm:$0xff] }
  0xcf   :  { %v1247_v47 = vpop.eup %1246 }
  0xd0   :  { %v365_v36 = vadd.f32 1.0, %v1247_v47  ;;  %v180_v47 = vpop.f32.mrf.mxu2 }
  0xd2   :  { %1248 = vrcp.f32 %v365_v36  ;;  %v377_v25 = vand.u32 2147483648, %v365_v36  ;;  %v375_v13 = vand.u32 2147483647, %v365_v36  ;;  %vm371_vm6 = vweird.f32 %v365_v36 }
  0xd3   :  { %1250 = vtanh.f32 %v383_v33  ;;  %v2546_v33 = vld [vmem:[#allocation8_spill] sm:$0xff] }
  0xd4   :  { %v378_v34 = vor.u32 1.1754944e-38, %v377_v25  ;;  %vm376_vm8 = vcmp.eq.f32.partialorder %v375_v13, 8.507059e+37 }
  0xd8   :  { %v1249_v61 = vpop.eup %1248 }
  0xd9   :  { %v367_v44 = vmul.f32 %v1249_v61, %v365_v36  ;;  %vm372_vm5 = vweird.f32 %v1249_v61  ;;  %v1251_v17 = vpop.eup %1250  ;;  %v2549_v36 = vld [vmem:[#allocation9_spill] sm:$0xff] }
  0xda   :  { %vm373_vm7 = vmor %vm371_vm6, %vm372_vm5  ;;  %v385_v62 = vsub.f32 %v1632_v38, %v1251_v17  ;;  %v2547_v38 = vld [vmem:[#allocation5_spill] sm:$0xff] }
  0xdb   :  { %v368_v5 = vsub.f32 1.0, %v367_v44  ;;  %v2548_v44 = vld [vmem:[#allocation11_spill] sm:$0xff] }
  0xdd   :  { %v369_v52 = vmul.f32 %v1249_v61, %v368_v5  ;;  %v2030_v5 = vpop.f32.mrf.mxu2 }
  0xde   :  { %2552 = vst [vmem:[#allocation22_spill] sm:$0xff] %v2030_v5 }
  0xdf   :  { %v370_v2 = vadd.f32 %v1249_v61, %v369_v52 }
  0xe1   :  { %v374_v28 = vsel %vm373_vm7, %v1249_v61, %v370_v2  ;;  %v139_v61 = vpop.f32.mrf.mxu1 }
  0xe2   :  { %v379_v63 = vsel %vm376_vm8, %v378_v34, %v374_v28 }
  0xe3   :  { %v386_v40 = vmul.f32 %v385_v62, %v379_v63 }
  0xe5   :  { %v1973_v57 = vadd.f32 %v1251_v17, %v386_v40  ;;  %v2034_v52 = vpop.f32.mrf.mxu2 }
  0xe6   :  { %2554 = vst [vmem:[#allocation24_spill] sm:$0xff] %v2034_v52 }
  0xe7   :  { %388 = vst [vmem:[%s2508_s6] sm:$0xff] %v1973_v57  ;;  %409 = vmatmul.f32.vlgmr.msrb.gmra.mxu1 %v1973_v57  ;;  %429 = vmatmul.f32.vlgmr.msrb.gmra.mxu2 %v1973_v57 }
  0xe8   :  { %449 = vmatmul.f32.vlgmr.msra.gmra.mxu3 %v1973_v57  ;;  %659 = vmatpush.msrb.mxu1 %v1455_v8 }
  0xe9   :  { %732 = vmatpush.msrb.mxu2 %v1414_v0  ;;  %752 = vmatpush.msra.mxu3 %v1647_v41  ;;  %v2032_v25 = vpop.f32.mrf.mxu1 }
  0xea   :  { %660 = vmatpush.msrb.mxu1 %v1467_v10  ;;  %2553 = vst [vmem:[#allocation23_spill] sm:$0xff] %v2032_v25  ;;  %v2563_v25 = vld [vmem:[#allocation13_spill] sm:$0xff] }
  0xeb   :  { %733 = vmatpush.msrb.mxu2 %v1419_v1  ;;  %753 = vmatpush.msra.mxu3 %v1662_v43 }
  0xec   :  { %661 = vmatpush.msrb.mxu1 %v1474_v11 }
  0xed   :  { %734 = vmatpush.msrb.mxu2 %v1431_v4  ;;  %754 = vmatpush.msra.mxu3 %v1675_v45  ;;  %v2038_v17 = vpop.f32.mrf.mxu2 }
  0xee   :  { %662 = vmatpush.msrb.mxu1 %v1491_v14  ;;  %2556 = vst [vmem:[#allocation26_spill] sm:$0xff] %v2038_v17 }
  0xef   :  { %735 = vmatpush.msrb.mxu2 %v1442_v6  ;;  %755 = vmatpush.msra.mxu3 %v1694_v48 }
  0xf0   :  { %663 = vmatpush.msrb.mxu1 %v1504_v16 }
  0xf1   :  { %736 = vmatpush.msrb.mxu2 %v1450_v7  ;;  %756 = vmatpush.msra.mxu3 %v1704_v49  ;;  %v2036_v13 = vpop.f32.mrf.mxu1 }
  0xf2   :  { %664 = vmatpush.msrb.mxu1 %v1523_v19  ;;  %2555 = vst [vmem:[#allocation25_spill] sm:$0xff] %v2036_v13 }
  0xf3   :  { %737 = vmatpush.msrb.mxu2 %v1462_v9  ;;  %757 = vmatpush.msra.mxu3 %v1714_v50 }
  0xf4   :  { %665 = vmatpush.msrb.mxu1 %v1535_v21 }
  0xf5   :  { %738 = vmatpush.msrb.mxu2 %v1479_v12  ;;  %758 = vmatpush.msra.mxu3 %v1724_v51  ;;  %v2042_v34 = vpop.f32.mrf.mxu2 }
  0xf6   :  { %666 = vmatpush.msrb.mxu1 %v1552_v24  ;;  %2558 = vst [vmem:[#allocation28_spill] sm:$0xff] %v2042_v34 }
  0xf7   :  { %739 = vmatpush.msrb.mxu2 %v1496_v15  ;;  %759 = vmatpush.msra.mxu3 %v1738_v53 }
  0xf8   :  { %667 = vmatpush.msrb.mxu1 %v1569_v27 }
  0xf9   :  { %740 = vmatpush.msrb.mxu2 %v1514_v18  ;;  %760 = vmatpush.msra.mxu3 %v1748_v54  ;;  %v2040_v2 = vpop.f32.mrf.mxu1 }
  0xfa   :  { %668 = vmatpush.msrb.mxu1 %v1584_v30  ;;  %2557 = vst [vmem:[#allocation27_spill] sm:$0xff] %v2040_v2 }
  0xfb   :  { %741 = vmatpush.msrb.mxu2 %v1528_v20  ;;  %761 = vmatpush.msra.mxu3 %v1758_v55 }
  0xfc   :  { %669 = vmatpush.msrb.mxu1 %v1598_v32 }
  0xfd   :  { %742 = vmatpush.msrb.mxu2 %v1540_v22  ;;  %762 = vmatpush.msra.mxu3 %v1768_v56  ;;  %v2046_v28 = vpop.f32.mrf.mxu2 }
  0xfe   :  { %670 = vmatpush.msrb.mxu1 %v1615_v35  ;;  %2560 = vst [vmem:[#allocation30_spill] sm:$0xff] %v2046_v28 }
  0xff   :  { %743 = vmatpush.msrb.mxu2 %v1560_v26  ;;  %763 = vmatpush.msra.mxu3 %v1782_v58 }
 0x100   :  { %671 = vmatpush.msrb.mxu1 %v1639_v39 }
 0x101   :  { %744 = vmatpush.msrb.mxu2 %v1577_v29  ;;  %764 = vmatpush.msra.mxu3 %v1792_v59  ;;  %v2044_v62 = vpop.f32.mrf.mxu1 }
 0x102   :  { %672 = vmatpush.msrb.mxu1 %v1654_v42  ;;  %2559 = vst [vmem:[#allocation29_spill] sm:$0xff] %v2044_v62 }
 0x103   :  { %745 = vmatpush.msrb.mxu2 %v1591_v31  ;;  %765 = vmatpush.msra.mxu3 %v1802_v60 }
 0x104   :  { %673 = vmatpush.msrb.mxu1 %v2546_v33 }
 0x105   :  { %746 = vmatpush.msrb.mxu2 %v2547_v38  ;;  %766 = vmatpush.msra.mxu3 %v2548_v44  ;;  %v2050_v40 = vpop.f32.mrf.mxu2 }
 0x106   :  { %674 = vmatpush.msrb.mxu1 %v2549_v36  ;;  %2562 = vst [vmem:[#allocation32_spill] sm:$0xff] %v2050_v40 }
 0x107   :  { %747 = vmatpush.msrb.mxu2 %v2550_v23  ;;  %767 = vmatpush.msra.mxu3 %v2551_v37  ;;  %v2564_v23 = vld [vmem:[#allocation20_spill] sm:$0xff] }
 0x108   :  { %v140_v13 = vadd.f32 %v139_v61, %v2564_v23 }
 0x109   :  { %v2048_v63 = vpop.f32.mrf.mxu1 }
 0x10a   :  { %2561 = vst [vmem:[#allocation31_spill] sm:$0xff] %v2048_v63 }
 0x164   :  { %v410_v5 = vpop.f32.mrf.mxu1 }
 0x165   :  { %v453_v37 = vadd.f32 %v410_v5, %v2563_v25 }
 0x167   :  { %v1216_v52 = vmul.f32 -1.442695, %v453_v37 }
 0x169   :  { %1252 = vpow2.f32 %v1216_v52 }
 0x16a   :  { %v430_v17 = vpop.f32.mrf.mxu2 }
 0x16b   :  { %v473_v36 = vadd.f32 %v430_v17, %v140_v13  ;;  %v450_v61 = vpop.f32.mrf.mxu3 }
 0x16c   :  { %v493_v17 = vadd.f32 %v1966_v3, %v450_v61 }
 0x16d   :  { %v1217_v2 = vmul.f32 -1.442695, %v473_v36 }
 0x16f   :  { %v1253_v44 = vpop.eup %1252  ;;  %1254 = vpow2.f32 %v1217_v2 }
 0x170   :  { %v457_v34 = vadd.f32 1.0, %v1253_v44 }
 0x172   :  { %1256 = vrcp.f32 %v457_v34  ;;  %v469_v33 = vand.u32 2147483648, %v457_v34  ;;  %v467_v37 = vand.u32 2147483647, %v457_v34  ;;  %vm463_vm10 = vweird.f32 %v457_v34 }
 0x174   :  { %v470_v36 = vor.u32 1.1754944e-38, %v469_v33  ;;  %vm468_vm12 = vcmp.eq.f32.partialorder %v467_v37, 8.507059e+37 }
 0x175   :  { %v1255_v62 = vpop.eup %1254 }
 0x176   :  { %v477_v28 = vadd.f32 1.0, %v1255_v62  ;;  %v181_v62 = vadd.f32 %v180_v47, %v1969_v46 }
 0x178   :  { %v1257_v38 = vpop.eup %1256  ;;  %1258 = vrcp.f32 %v477_v28  ;;  %v489_v42 = vand.u32 2147483648, %v477_v28  ;;  %vm483_vm14 = vweird.f32 %v477_v28 }
 0x179   :  { %v459_v63 = vmul.f32 %v1257_v38, %v457_v34  ;;  %vm464_vm9 = vweird.f32 %v1257_v38 }
 0x17a   :  { %vm465_vm11 = vmor %vm463_vm10, %vm464_vm9 }
 0x17b   :  { %v460_v40 = vsub.f32 1.0, %v459_v63 }
 0x17d   :  { %v461_v60 = vmul.f32 %v1257_v38, %v460_v40 }
 0x17e   :  { %v1259_v5 = vpop.eup %1258 }
 0x17f   :  { %v479_v25 = vmul.f32 %v1259_v5, %v477_v28  ;;  %v462_v52 = vadd.f32 %v1257_v38, %v461_v60  ;;  %vm484_vm13 = vweird.f32 %v1259_v5  ;;  %v487_v60 = vand.u32 2147483647, %v477_v28 }
 0x180   :  { %vm485_vm15 = vmor %vm483_vm14, %vm484_vm13 }
 0x181   :  { %v480_v13 = vsub.f32 1.0, %v479_v25  ;;  %v466_v44 = vsel %vm465_vm11, %v1257_v38, %v462_v52  ;;  %v490_v25 = vor.u32 1.1754944e-38, %v489_v42  ;;  %vm488_vm0 = vcmp.eq.f32.partialorder %v487_v60, 8.507059e+37 }
 0x182   :  { %v471_v2 = vsel %vm468_vm12, %v470_v36, %v466_v44 }
 0x183   :  { %v494_v63 = vmul.f32 %v493_v17, %v471_v2  ;;  %v481_v23 = vmul.f32 %v1259_v5, %v480_v13 }
 0x185   :  { %v495_v40 = vadd.f32 %v494_v63, %v181_v62  ;;  %v482_v31 = vadd.f32 %v1259_v5, %v481_v23  ;;  %v2577_v62 = vld [vmem:[#allocation22_spill] sm:$0xff] }
 0x186   :  { %v184_v63 = vadd.f32 %v2577_v62, %v1969_v46 }
 0x187   :  { %1260 = vtanh.f32 %v495_v40  ;;  %v486_v34 = vsel %vm485_vm15, %v1259_v5, %v482_v31 }
 0x188   :  { %v491_v37 = vsel %vm488_vm0, %v490_v25, %v486_v34 }
 0x18d   :  { %v1261_v33 = vpop.eup %1260 }
 0x18e   :  { %v497_v38 = vsub.f32 %v1973_v57, %v1261_v33 }
 0x190   :  { %v498_v61 = vmul.f32 %v497_v38, %v491_v37 }
 0x192   :  { %v2057_v52 = vadd.f32 %v1261_v33, %v498_v61 }
 0x194   :  { %1218 = vst [vmem:[%s2508_s6 + $0x8] sm:$0xff] %v2057_v52  ;;  %522 = vmatmul.f32.vlgmr.msra.gmra.mxu0 %v2057_v52  ;;  %542 = vmatmul.f32.vlgmr.msra.gmra.mxu1 %v2057_v52 }
 0x195   :  { %562 = vmatmul.f32.vlgmr.msra.gmra.mxu2 %v2057_v52  ;;  %772 = vmatpush.msra.mxu0 %v1455_v8  ;;  %v2570_v8 = vld [vmem:[#allocation11_spill] sm:$0xff] }
 0x196   :  { %845 = vmatpush.msra.mxu1 %v1414_v0  ;;  %865 = vmatpush.msra.mxu2 %v1647_v41  ;;  %v2565_v0 = vld [vmem:[#allocation7_spill] sm:$0xff] }
 0x197   :  { %773 = vmatpush.msra.mxu0 %v1467_v10  ;;  %v2572_v10 = vld [vmem:[#allocation6_spill] sm:$0xff] }
 0x198   :  { %846 = vmatpush.msra.mxu1 %v1419_v1  ;;  %866 = vmatpush.msra.mxu2 %v1662_v43  ;;  %v2566_v1 = vld [vmem:[#allocation4_spill] sm:$0xff] }
 0x199   :  { %774 = vmatpush.msra.mxu0 %v1474_v11  ;;  %v2573_v11 = vld [vmem:[#allocation12_spill] sm:$0xff] }
 0x19a   :  { %847 = vmatpush.msra.mxu1 %v1431_v4  ;;  %867 = vmatpush.msra.mxu2 %v1675_v45  ;;  %v2567_v4 = vld [vmem:[#allocation10_spill] sm:$0xff] }
 0x19b   :  { %775 = vmatpush.msra.mxu0 %v1491_v14  ;;  %v2575_v14 = vld [vmem:[#allocation23_spill] sm:$0xff] }
 0x19c   :  { %848 = vmatpush.msra.mxu1 %v1442_v6  ;;  %868 = vmatpush.msra.mxu2 %v1694_v48  ;;  %v2568_v6 = vld [vmem:[#allocation8_spill] sm:$0xff] }
 0x19d   :  { %776 = vmatpush.msra.mxu0 %v1504_v16 }
 0x19e   :  { %849 = vmatpush.msra.mxu1 %v1450_v7  ;;  %869 = vmatpush.msra.mxu2 %v1704_v49  ;;  %v2569_v7 = vld [vmem:[#allocation5_spill] sm:$0xff] }
 0x19f   :  { %777 = vmatpush.msra.mxu0 %v1523_v19  ;;  %v2576_v19 = vld [vmem:[#allocation15_spill] sm:$0xff] }
 0x1a0   :  { %850 = vmatpush.msra.mxu1 %v1462_v9  ;;  %870 = vmatpush.msra.mxu2 %v1714_v50  ;;  %v2571_v9 = vld [vmem:[#allocation9_spill] sm:$0xff] }
 0x1a1   :  { %778 = vmatpush.msra.mxu0 %v1535_v21 }
 0x1a2   :  { %851 = vmatpush.msra.mxu1 %v1479_v12  ;;  %871 = vmatpush.msra.mxu2 %v1724_v51  ;;  %v2574_v12 = vld [vmem:[#allocation20_spill] sm:$0xff] }
 0x1a3   :  { %779 = vmatpush.msra.mxu0 %v1552_v24 }
 0x1a4   :  { %852 = vmatpush.msra.mxu1 %v1496_v15  ;;  %872 = vmatpush.msra.mxu2 %v1738_v53  ;;  %v143_v15 = vadd.f32 %v2575_v14, %v2574_v12  ;;  %v2146_v14 = vld [vmem:[%s2502_s3 + $0x160] sm:$0xff] }
 0x1a5   :  { %780 = vmatpush.msra.mxu0 %v1569_v27 }
 0x1a6   :  { %853 = vmatpush.msra.mxu1 %v1514_v18  ;;  %873 = vmatpush.msra.mxu2 %v1748_v54 }
 0x1a7   :  { %781 = vmatpush.msra.mxu0 %v1584_v30 }
 0x1a8   :  { %854 = vmatpush.msra.mxu1 %v1528_v20  ;;  %874 = vmatpush.msra.mxu2 %v1758_v55 }
 0x1a9   :  { %782 = vmatpush.msra.mxu0 %v1598_v32 }
 0x1aa   :  { %855 = vmatpush.msra.mxu1 %v1540_v22  ;;  %875 = vmatpush.msra.mxu2 %v1768_v56 }
 0x1ab   :  { %783 = vmatpush.msra.mxu0 %v1615_v35 }
 0x1ac   :  { %856 = vmatpush.msra.mxu1 %v1560_v26  ;;  %876 = vmatpush.msra.mxu2 %v1782_v58 }
 0x1ad   :  { %784 = vmatpush.msra.mxu0 %v1639_v39 }
 0x1ae   :  { %857 = vmatpush.msra.mxu1 %v1577_v29  ;;  %877 = vmatpush.msra.mxu2 %v1792_v59 }
 0x1af   :  { %785 = vmatpush.msra.mxu0 %v2565_v0 }
 0x1b0   :  { %858 = vmatpush.msra.mxu1 %v2566_v1  ;;  %878 = vmatpush.msra.mxu2 %v2567_v4 }
 0x1b1   :  { %786 = vmatpush.msra.mxu0 %v2568_v6 }
 0x1b2   :  { %859 = vmatpush.msra.mxu1 %v2569_v7  ;;  %879 = vmatpush.msra.mxu2 %v2570_v8 }
 0x1b3   :  { %787 = vmatpush.msra.mxu0 %v2571_v9 }
 0x1b4   :  { %860 = vmatpush.msra.mxu1 %v2572_v10  ;;  %880 = vmatpush.msra.mxu2 %v2573_v11  ;;  %v2133_v10 = vld [vmem:[%s2502_s3 + $0x178] sm:$0xff] }
 0x211   :  { %v523_v16 = vpop.f32.mrf.mxu0  ;;  %v543_v18 = vpop.f32.mrf.mxu1 }
 0x212   :  { %v566_v20 = vadd.f32 %v523_v16, %v2576_v19  ;;  %v586_v21 = vadd.f32 %v543_v18, %v143_v15  ;;  %v2152_v15 = vld [vmem:[%s2502_s3 + $0x150] sm:$0xff]  ;;  %v2165_v16 = vld [vmem:[%s2502_s3 + $0x138] sm:$0xff]  ;;  %v2178_v18 = vld [vmem:[%s2502_s3 + $0x120] sm:$0xff] }
 0x213   :  { %v2191_v19 = vld [vmem:[%s2502_s3 + $0x108] sm:$0xff] }
 0x214   :  { %v1219_v22 = vmul.f32 -1.442695, %v566_v20  ;;  %v1220_v24 = vmul.f32 -1.442695, %v586_v21  ;;  %v2204_v20 = vld [vmem:[%s2502_s3 + $0xf0] sm:$0xff]  ;;  %v2217_v21 = vld [vmem:[%s2502_s3 + $0xd8] sm:$0xff] }
 0x216   :  { %1262 = vpow2.f32 %v1219_v22  ;;  %v2230_v22 = vld [vmem:[%s2502_s3 + $0xc0] sm:$0xff] }
 0x217   :  { %1264 = vpow2.f32 %v1220_v24  ;;  %v2243_v24 = vld [vmem:[%s2502_s3 + $0xa8] sm:$0xff] }
 0x218   :  { %v563_v28 = vpop.f32.mrf.mxu2 }
 0x219   :  { %v606_v17 = vadd.f32 %v1966_v3, %v563_v28  ;;  %v2579_v28 = vld [vmem:[#allocation16_spill] sm:$0xff] }
 0x21c   :  { %v1263_v26 = vpop.eup %1262 }
 0x21d   :  { %v1265_v27 = vpop.eup %1264  ;;  %v570_v29 = vadd.f32 1.0, %v1263_v26  ;;  %v2256_v26 = vld [vmem:[%s2502_s3 + $0x90] sm:$0xff] }
 0x21e   :  { %v590_v30 = vadd.f32 1.0, %v1265_v27  ;;  %v2269_v27 = vld [vmem:[%s2502_s3 + $0x78] sm:$0xff] }
 0x21f   :  { %1266 = vrcp.f32 %v570_v29  ;;  %v582_v57 = vand.u32 2147483648, %v570_v29  ;;  %v580_v47 = vand.u32 2147483647, %v570_v29  ;;  %vm576_vm2 = vweird.f32 %v570_v29 }
 0x220   :  { %1268 = vrcp.f32 %v590_v30  ;;  %v602_v25 = vand.u32 2147483648, %v590_v30  ;;  %vm596_vm6 = vweird.f32 %v590_v30  ;;  %v600_v38 = vand.u32 2147483647, %v590_v30 }
 0x221   :  { %v583_v13 = vor.u32 1.1754944e-38, %v582_v57  ;;  %vm581_vm4 = vcmp.eq.f32.partialorder %v580_v47, 8.507059e+37 }
 0x222   :  { %v603_v0 = vor.u32 1.1754944e-38, %v602_v25  ;;  %vm601_vm8 = vcmp.eq.f32.partialorder %v600_v38, 8.507059e+37 }
 0x225   :  { %v1267_v31 = vpop.eup %1266 }
 0x226   :  { %v1269_v32 = vpop.eup %1268  ;;  %v572_v35 = vmul.f32 %v1267_v31, %v570_v29  ;;  %vm577_vm1 = vweird.f32 %v1267_v31  ;;  %v2282_v29 = vld [vmem:[%s2502_s3 + $0x60] sm:$0xff] }
 0x227   :  { %v592_v42 = vmul.f32 %v1269_v32, %v590_v30  ;;  %vm578_vm3 = vmor %vm576_vm2, %vm577_vm1  ;;  %vm597_vm5 = vweird.f32 %v1269_v32  ;;  %v2295_v30 = vld [vmem:[%s2502_s3 + $0x48] sm:$0xff] }
 0x228   :  { %v573_v39 = vsub.f32 1.0, %v572_v35  ;;  %vm598_vm7 = vmor %vm596_vm6, %vm597_vm5  ;;  %v2334_v35 = vld [vmem:[%s2502_s3] sm:$0xff] }
 0x229   :  { %v593_v36 = vsub.f32 1.0, %v592_v42 }
 0x22a   :  { %v574_v23 = vmul.f32 %v1267_v31, %v573_v39  ;;  %v2578_v39 = vld [vmem:[#allocation25_spill] sm:$0xff] }
 0x22b   :  { %v594_v60 = vmul.f32 %v1269_v32, %v593_v36  ;;  %v146_v42 = vadd.f32 %v2578_v39, %v2574_v12  ;;  %v2580_v39 = vld [vmem:[#allocation24_spill] sm:$0xff] }
 0x22c   :  { %v575_v5 = vadd.f32 %v1267_v31, %v574_v23 }
 0x22d   :  { %v595_v33 = vadd.f32 %v1269_v32, %v594_v60 }
 0x22e   :  { %v579_v44 = vsel %vm578_vm3, %v1267_v31, %v575_v5  ;;  %v2308_v31 = vld [vmem:[%s2502_s3 + $0x30] sm:$0xff] }
 0x22f   :  { %v584_v2 = vsel %vm581_vm4, %v583_v13, %v579_v44  ;;  %v599_v37 = vsel %vm598_vm7, %v1269_v32, %v595_v33  ;;  %v2321_v32 = vld [vmem:[%s2502_s3 + $0x18] sm:$0xff] }
 0x230   :  { %v607_v40 = vmul.f32 %v606_v17, %v584_v2  ;;  %v604_v6 = vsel %vm601_vm8, %v603_v0, %v599_v37 }
 0x232   :  { %v608_v34 = vadd.f32 %v607_v40, %v184_v63 }
 0x234   :  { %1270 = vtanh.f32 %v608_v34 }
 0x23a   :  { %v1271_v61 = vpop.eup %1270 }
 0x23b   :  { %v610_v1 = vsub.f32 %v2057_v52, %v1271_v61  ;;  %v2139_v52 = vld [vmem:[%s2502_s3 + $0x168] sm:$0xff] }
 0x23d   :  { %v611_v7 = vmul.f32 %v610_v1, %v604_v6 }
 0x23f   :  { %v2121_v9 = vadd.f32 %v1271_v61, %v611_v7 }
 0x241   :  { %1221 = vst [vmem:[%s2508_s6 + $0x10] sm:$0xff] %v2121_v9  ;;  %635 = vmatmul.f32.vlgmr.msrb.gmra.mxu3 %v2121_v9  ;;  %655 = vmatmul.f32.vlgmr.msrb.gmra.mxu0 %v2121_v9 }
 0x242   :  { %675 = vmatmul.f32.vlgmr.msrb.gmra.mxu1 %v2121_v9  ;;  %885 = vmatpush.msrb.mxu3 %v2133_v10 }
 0x243   :  { %958 = vmatpush.msrb.mxu0 %v2139_v52  ;;  %978 = vmatpush.msrb.mxu1 %v1647_v41  ;;  %v2159_v41 = vld [vmem:[%s2502_s3 + $0x148] sm:$0xff] }
 0x244   :  { %886 = vmatpush.msrb.mxu3 %v2146_v14 }
 0x245   :  { %959 = vmatpush.msrb.mxu0 %v2152_v15  ;;  %979 = vmatpush.msrb.mxu1 %v1662_v43  ;;  %v2172_v43 = vld [vmem:[%s2502_s3 + $0x130] sm:$0xff] }
 0x246   :  { %887 = vmatpush.msrb.mxu3 %v2159_v41 }
 0x247   :  { %960 = vmatpush.msrb.mxu0 %v2165_v16  ;;  %980 = vmatpush.msrb.mxu1 %v1675_v45  ;;  %v2185_v45 = vld [vmem:[%s2502_s3 + $0x118] sm:$0xff] }
 0x248   :  { %888 = vmatpush.msrb.mxu3 %v2172_v43 }
 0x249   :  { %961 = vmatpush.msrb.mxu0 %v2178_v18  ;;  %981 = vmatpush.msrb.mxu1 %v1694_v48  ;;  %v2198_v48 = vld [vmem:[%s2502_s3 + $0x100] sm:$0xff] }
 0x24a   :  { %889 = vmatpush.msrb.mxu3 %v2185_v45 }
 0x24b   :  { %962 = vmatpush.msrb.mxu0 %v2191_v19  ;;  %982 = vmatpush.msrb.mxu1 %v1704_v49  ;;  %v2211_v49 = vld [vmem:[%s2502_s3 + $0xe8] sm:$0xff] }
 0x24c   :  { %890 = vmatpush.msrb.mxu3 %v2198_v48 }
 0x24d   :  { %963 = vmatpush.msrb.mxu0 %v2204_v20  ;;  %983 = vmatpush.msrb.mxu1 %v1714_v50  ;;  %v2224_v50 = vld [vmem:[%s2502_s3 + $0xd0] sm:$0xff] }
 0x24e   :  { %891 = vmatpush.msrb.mxu3 %v2211_v49 }
 0x24f   :  { %964 = vmatpush.msrb.mxu0 %v2217_v21  ;;  %984 = vmatpush.msrb.mxu1 %v1724_v51  ;;  %v2237_v51 = vld [vmem:[%s2502_s3 + $0xb8] sm:$0xff] }
 0x250   :  { %892 = vmatpush.msrb.mxu3 %v2224_v50 }
 0x251   :  { %965 = vmatpush.msrb.mxu0 %v2230_v22  ;;  %985 = vmatpush.msrb.mxu1 %v1738_v53  ;;  %v2250_v53 = vld [vmem:[%s2502_s3 + $0xa0] sm:$0xff] }
 0x252   :  { %893 = vmatpush.msrb.mxu3 %v2237_v51 }
 0x253   :  { %966 = vmatpush.msrb.mxu0 %v2243_v24  ;;  %986 = vmatpush.msrb.mxu1 %v1748_v54  ;;  %v2263_v54 = vld [vmem:[%s2502_s3 + $0x88] sm:$0xff] }
 0x254   :  { %894 = vmatpush.msrb.mxu3 %v2250_v53 }
 0x255   :  { %967 = vmatpush.msrb.mxu0 %v2256_v26  ;;  %987 = vmatpush.msrb.mxu1 %v1758_v55  ;;  %v2276_v55 = vld [vmem:[%s2502_s3 + $0x70] sm:$0xff] }
 0x256   :  { %895 = vmatpush.msrb.mxu3 %v2263_v54 }
 0x257   :  { %968 = vmatpush.msrb.mxu0 %v2269_v27  ;;  %988 = vmatpush.msrb.mxu1 %v1768_v56  ;;  %v2289_v56 = vld [vmem:[%s2502_s3 + $0x58] sm:$0xff] }
 0x258   :  { %896 = vmatpush.msrb.mxu3 %v2276_v55 }
 0x259   :  { %969 = vmatpush.msrb.mxu0 %v2282_v29  ;;  %989 = vmatpush.msrb.mxu1 %v1782_v58  ;;  %v2302_v58 = vld [vmem:[%s2502_s3 + $0x40] sm:$0xff] }
 0x25a   :  { %897 = vmatpush.msrb.mxu3 %v2289_v56 }
 0x25b   :  { %970 = vmatpush.msrb.mxu0 %v2295_v30  ;;  %990 = vmatpush.msrb.mxu1 %v1792_v59  ;;  %v2315_v59 = vld [vmem:[%s2502_s3 + $0x28] sm:$0xff] }
 0x25c   :  { %898 = vmatpush.msrb.mxu3 %v2302_v58 }
 0x25d   :  { %971 = vmatpush.msrb.mxu0 %v2308_v31  ;;  %991 = vmatpush.msrb.mxu1 %v2567_v4  ;;  %v2328_v4 = vld [vmem:[%s2502_s3 + $0x10] sm:$0xff] }
 0x25e   :  { %899 = vmatpush.msrb.mxu3 %v2315_v59 }
 0x25f   :  { %972 = vmatpush.msrb.mxu0 %v2321_v32  ;;  %992 = vmatpush.msrb.mxu1 %v2570_v8 }
 0x260   :  { %900 = vmatpush.msrb.mxu3 %v2328_v4 }
 0x261   :  { %973 = vmatpush.msrb.mxu0 %v2334_v35  ;;  %993 = vmatpush.msrb.mxu1 %v2573_v11 }
 0x2be   :  { %v656_v8 = vpop.f32.mrf.mxu0 }
 0x2bf   :  { %v699_v57 = vadd.f32 %v656_v8, %v146_v42  ;;  %v676_v38 = vpop.f32.mrf.mxu1  ;;  %v187_v42 = vadd.f32 %v2580_v39, %v1969_v46 }
 0x2c0   :  { %v719_v1 = vadd.f32 %v1966_v3, %v676_v38 }
 0x2c1   :  { %v1223_v23 = vmul.f32 -1.442695, %v699_v57 }
 0x2c3   :  { %1272 = vpow2.f32 %v1223_v23 }
 0x2c4   :  { %v636_v47 = vpop.f32.mrf.mxu3 }
 0x2c5   :  { %v679_v5 = vadd.f32 %v636_v47, %v2579_v28 }
 0x2c7   :  { %v1222_v36 = vmul.f32 -1.442695, %v679_v5 }
 0x2c9   :  { %1274 = vpow2.f32 %v1222_v36  ;;  %v1273_v13 = vpop.eup %1272 }
 0x2ca   :  { %v703_v17 = vadd.f32 1.0, %v1273_v13 }
 0x2cc   :  { %v715_v28 = vand.u32 2147483648, %v703_v17  ;;  %vm709_vm14 = vweird.f32 %v703_v17  ;;  %v713_v5 = vand.u32 2147483647, %v703_v17 }
 0x2ce   :  { %vm714_vm0 = vcmp.eq.f32.partialorder %v713_v5, 8.507059e+37 }
 0x2cf   :  { %v1275_v44 = vpop.eup %1274 }
 0x2d0   :  { %v683_v2 = vadd.f32 1.0, %v1275_v44  ;;  %v716_v44 = vor.u32 1.1754944e-38, %v715_v28 }
 0x2d2   :  { %1276 = vrcp.f32 %v683_v2  ;;  %v695_v34 = vand.u32 2147483648, %v683_v2  ;;  %v693_v25 = vand.u32 2147483647, %v683_v2  ;;  %vm689_vm10 = vweird.f32 %v683_v2 }
 0x2d3   :  { %1278 = vrcp.f32 %v703_v17 }
 0x2d4   :  { %v696_v0 = vor.u32 1.1754944e-38, %v695_v34  ;;  %vm694_vm12 = vcmp.eq.f32.partialorder %v693_v25, 8.507059e+37 }
 0x2d8   :  { %v1277_v62 = vpop.eup %1276 }
 0x2d9   :  { %v1279_v11 = vpop.eup %1278  ;;  %v685_v63 = vmul.f32 %v1277_v62, %v683_v2  ;;  %vm690_vm9 = vweird.f32 %v1277_v62 }
 0x2da   :  { %v705_v60 = vmul.f32 %v1279_v11, %v703_v17  ;;  %vm691_vm11 = vmor %vm689_vm10, %vm690_vm9  ;;  %vm710_vm13 = vweird.f32 %v1279_v11  ;;  %v1355_v17 = vld [vmem:[%s2502_s3 + $0x158] sm:$0xff] }
 0x2db   :  { %v686_v40 = vsub.f32 1.0, %v685_v63  ;;  %vm711_vm15 = vmor %vm709_vm14, %vm710_vm13 }
 0x2dc   :  { %v706_v61 = vsub.f32 1.0, %v705_v60 }
 0x2dd   :  { %v687_v33 = vmul.f32 %v1277_v62, %v686_v40 }
 0x2de   :  { %v707_v57 = vmul.f32 %v1279_v11, %v706_v61 }
 0x2df   :  { %v688_v37 = vadd.f32 %v1277_v62, %v687_v33 }
 0x2e0   :  { %v708_v47 = vadd.f32 %v1279_v11, %v707_v57 }
 0x2e1   :  { %v692_v6 = vsel %vm691_vm11, %v1277_v62, %v688_v37 }
 0x2e2   :  { %v697_v7 = vsel %vm694_vm12, %v696_v0, %v692_v6  ;;  %v712_v36 = vsel %vm711_vm15, %v1279_v11, %v708_v47  ;;  %v2581_v11 = vld [vmem:[#allocation27_spill] sm:$0xff] }
 0x2e3   :  { %v720_v8 = vmul.f32 %v719_v1, %v697_v7  ;;  %v717_v62 = vsel %vm714_vm0, %v716_v44, %v712_v36  ;;  %v149_v60 = vadd.f32 %v2581_v11, %v2574_v12 }
 0x2e5   :  { %v721_v23 = vadd.f32 %v720_v8, %v187_v42 }
 0x2e7   :  { %1280 = vtanh.f32 %v721_v23 }
 0x2ed   :  { %v1281_v13 = vpop.eup %1280 }
 0x2ee   :  { %v723_v2 = vsub.f32 %v2121_v9, %v1281_v13  ;;  %v1354_v9 = vld [vmem:[%s2502_s3 + $0x170] sm:$0xff] }
 0x2f0   :  { %v724_v63 = vmul.f32 %v723_v2, %v717_v62 }
 0x2f2   :  { %v2345_v40 = vadd.f32 %v1281_v13, %v724_v63 }
 0x2f4   :  { %1224 = vst [vmem:[%s2508_s6 + $0x18] sm:$0xff] %v2345_v40  ;;  %748 = vmatmul.f32.vlgmr.msrb.gmra.mxu2 %v2345_v40  ;;  %768 = vmatmul.f32.vlgmr.msra.gmra.mxu3 %v2345_v40 }
 0x2f5   :  { %788 = vmatmul.f32.vlgmr.msra.gmra.mxu0 %v2345_v40  ;;  %998 = vmatpush.msrb.mxu2 %v2133_v10 }
 0x2f6   :  { %1071 = vmatpush.msra.mxu3 %v2139_v52  ;;  %1091 = vmatpush.msra.mxu0 %v1354_v9  ;;  %v1356_v52 = vld [vmem:[%s2502_s3 + $0x140] sm:$0xff]  ;;  %v2583_v9 = vld [vmem:[#allocation26_spill] sm:$0xff] }
 0x2f7   :  { %999 = vmatpush.msrb.mxu2 %v2146_v14 }
 0x2f8   :  { %1072 = vmatpush.msra.mxu3 %v2152_v15  ;;  %1092 = vmatpush.msra.mxu0 %v1355_v17  ;;  %v1357_v15 = vld [vmem:[%s2502_s3 + $0x128] sm:$0xff]  ;;  %v190_v17 = vadd.f32 %v2583_v9, %v1969_v46 }
 0x2f9   :  { %1000 = vmatpush.msrb.mxu2 %v2159_v41 }
 0x2fa   :  { %1073 = vmatpush.msra.mxu3 %v2165_v16  ;;  %1093 = vmatpush.msra.mxu0 %v1356_v52  ;;  %v1358_v16 = vld [vmem:[%s2502_s3 + $0x110] sm:$0xff] }
 0x2fb   :  { %1001 = vmatpush.msrb.mxu2 %v2172_v43 }
 0x2fc   :  { %1074 = vmatpush.msra.mxu3 %v2178_v18  ;;  %1094 = vmatpush.msra.mxu0 %v1357_v15  ;;  %v1359_v18 = vld [vmem:[%s2502_s3 + $0xf8] sm:$0xff] }
 0x2fd   :  { %1002 = vmatpush.msrb.mxu2 %v2185_v45 }
 0x2fe   :  { %1075 = vmatpush.msra.mxu3 %v2191_v19  ;;  %1095 = vmatpush.msra.mxu0 %v1358_v16  ;;  %v1360_v19 = vld [vmem:[%s2502_s3 + $0xe0] sm:$0xff] }
 0x2ff   :  { %1003 = vmatpush.msrb.mxu2 %v2198_v48 }
 0x300   :  { %1076 = vmatpush.msra.mxu3 %v2204_v20  ;;  %1096 = vmatpush.msra.mxu0 %v1359_v18  ;;  %v1361_v20 = vld [vmem:[%s2502_s3 + $0xc8] sm:$0xff] }
 0x301   :  { %1004 = vmatpush.msrb.mxu2 %v2211_v49 }
 0x302   :  { %1077 = vmatpush.msra.mxu3 %v2217_v21  ;;  %1097 = vmatpush.msra.mxu0 %v1360_v19  ;;  %v1362_v21 = vld [vmem:[%s2502_s3 + $0xb0] sm:$0xff] }
 0x303   :  { %1005 = vmatpush.msrb.mxu2 %v2224_v50 }
 0x304   :  { %1078 = vmatpush.msra.mxu3 %v2230_v22  ;;  %1098 = vmatpush.msra.mxu0 %v1361_v20  ;;  %v1363_v22 = vld [vmem:[%s2502_s3 + $0x98] sm:$0xff] }
 0x305   :  { %1006 = vmatpush.msrb.mxu2 %v2237_v51 }
 0x306   :  { %1079 = vmatpush.msra.mxu3 %v2243_v24  ;;  %1099 = vmatpush.msra.mxu0 %v1362_v21  ;;  %v1364_v24 = vld [vmem:[%s2502_s3 + $0x80] sm:$0xff] }
 0x307   :  { %1007 = vmatpush.msrb.mxu2 %v2250_v53 }
 0x308   :  { %1080 = vmatpush.msra.mxu3 %v2256_v26  ;;  %1100 = vmatpush.msra.mxu0 %v1363_v22  ;;  %v1365_v26 = vld [vmem:[%s2502_s3 + $0x68] sm:$0xff] }
 0x309   :  { %1008 = vmatpush.msrb.mxu2 %v2263_v54 }
 0x30a   :  { %1081 = vmatpush.msra.mxu3 %v2269_v27  ;;  %1101 = vmatpush.msra.mxu0 %v1364_v24  ;;  %v1366_v27 = vld [vmem:[%s2502_s3 + $0x50] sm:$0xff] }
 0x30b   :  { %1009 = vmatpush.msrb.mxu2 %v2276_v55 }
 0x30c   :  { %1082 = vmatpush.msra.mxu3 %v2282_v29  ;;  %1102 = vmatpush.msra.mxu0 %v1365_v26  ;;  %v1367_v29 = vld [vmem:[%s2502_s3 + $0x38] sm:$0xff] }
 0x30d   :  { %1010 = vmatpush.msrb.mxu2 %v2289_v56 }
 0x30e   :  { %1083 = vmatpush.msra.mxu3 %v2295_v30  ;;  %1103 = vmatpush.msra.mxu0 %v1366_v27  ;;  %v1368_v30 = vld [vmem:[%s2502_s3 + $0x20] sm:$0xff] }
 0x30f   :  { %1011 = vmatpush.msrb.mxu2 %v2302_v58 }
 0x310   :  { %1084 = vmatpush.msra.mxu3 %v2308_v31  ;;  %1104 = vmatpush.msra.mxu0 %v1367_v29  ;;  %v1369_v31 = vld [vmem:[%s2502_s3 + $0x8] sm:$0xff] }
 0x311   :  { %1012 = vmatpush.msrb.mxu2 %v2315_v59 }
 0x312   :  { %1085 = vmatpush.msra.mxu3 %v2321_v32  ;;  %1105 = vmatpush.msra.mxu0 %v1368_v30  ;;  %v2582_v32 = vld [vmem:[#allocation17_spill] sm:$0xff] }
 0x313   :  { %1013 = vmatpush.msrb.mxu2 %v2328_v4 }
 0x314   :  { %1086 = vmatpush.msra.mxu3 %v2334_v35  ;;  %1106 = vmatpush.msra.mxu0 %v1369_v31 }
 0x372   :  { %v789_v5 = vpop.f32.mrf.mxu0 }
 0x373   :  { %v832_v2 = vadd.f32 %v1966_v3, %v789_v5 }
 0x377   :  { %v749_v34 = vpop.f32.mrf.mxu2  ;;  %v769_v33 = vpop.f32.mrf.mxu3 }
 0x378   :  { %v792_v25 = vadd.f32 %v749_v34, %v2582_v32  ;;  %v812_v38 = vadd.f32 %v769_v33, %v149_v60 }
 0x37a   :  { %v1225_v37 = vmul.f32 -1.442695, %v792_v25  ;;  %v1226_v61 = vmul.f32 -1.442695, %v812_v38 }
 0x37c   :  { %1282 = vpow2.f32 %v1225_v37  ;;  %v2472_v37 = vld [vmem:[%s2506_s4] ss:$0 sm:$0xff] }
 0x37d   :  { %1284 = vpow2.f32 %v1226_v61 }
 0x382   :  { %v1283_v0 = vpop.eup %1282 }
 0x383   :  { %v1285_v1 = vpop.eup %1284  ;;  %v796_v35 = vadd.f32 1.0, %v1283_v0 }
 0x384   :  { %v816_v6 = vadd.f32 1.0, %v1285_v1  ;;  %v2586_v1 = vld [vmem:[#allocation28_spill] sm:$0xff] }
 0x385   :  { %1286 = vrcp.f32 %v796_v35  ;;  %v808_v57 = vand.u32 2147483648, %v796_v35  ;;  %v806_v28 = vand.u32 2147483647, %v796_v35  ;;  %vm802_vm2 = vweird.f32 %v796_v35 }
 0x386   :  { %1288 = vrcp.f32 %v816_v6  ;;  %v828_v19 = vand.u32 2147483648, %v816_v6  ;;  %vm822_vm6 = vweird.f32 %v816_v6  ;;  %v826_v20 = vand.u32 2147483647, %v816_v6 }
 0x387   :  { %v809_v13 = vor.u32 1.1754944e-38, %v808_v57  ;;  %vm807_vm4 = vcmp.eq.f32.partialorder %v806_v28, 8.507059e+37 }
 0x388   :  { %v829_v24 = vor.u32 1.1754944e-38, %v828_v19  ;;  %vm827_vm8 = vcmp.eq.f32.partialorder %v826_v20, 8.507059e+37 }
 0x38b   :  { %v1287_v7 = vpop.eup %1286 }
 0x38c   :  { %v1289_v39 = vpop.eup %1288  ;;  %v798_v42 = vmul.f32 %v1287_v7, %v796_v35  ;;  %vm803_vm1 = vweird.f32 %v1287_v7  ;;  %v193_v35 = vadd.f32 %v2586_v1, %v1969_v46 }
 0x38d   :  { %v818_v23 = vmul.f32 %v1289_v39, %v816_v6  ;;  %vm804_vm3 = vmor %vm802_vm2, %vm803_vm1  ;;  %vm823_vm5 = vweird.f32 %v1289_v39 }
 0x38e   :  { %v799_v8 = vsub.f32 1.0, %v798_v42  ;;  %vm824_vm7 = vmor %vm822_vm6, %vm823_vm5 }
 0x38f   :  { %v819_v44 = vsub.f32 1.0, %v818_v23 }
 0x390   :  { %v800_v47 = vmul.f32 %v1287_v7, %v799_v8 }
 0x391   :  { %v820_v15 = vmul.f32 %v1289_v39, %v819_v44 }
 0x392   :  { %v801_v36 = vadd.f32 %v1287_v7, %v800_v47 }
 0x393   :  { %v821_v18 = vadd.f32 %v1289_v39, %v820_v15 }
 0x394   :  { %v805_v62 = vsel %vm804_vm3, %v1287_v7, %v801_v36 }
 0x395   :  { %v810_v63 = vsel %vm807_vm4, %v809_v13, %v805_v62  ;;  %v825_v21 = vsel %vm824_vm7, %v1289_v39, %v821_v18 }
 0x396   :  { %v833_v52 = vmul.f32 %v832_v2, %v810_v63  ;;  %v830_v26 = vsel %vm827_vm8, %v829_v24, %v825_v21  ;;  %v2587_v2 = vld [vmem:[#allocation31_spill] sm:$0xff] }
 0x397   :  { %v155_v62 = vadd.f32 %v2587_v2, %v2574_v12 }
 0x398   :  { %v834_v16 = vadd.f32 %v833_v52, %v190_v17  ;;  %v2588_v17 = vld [vmem:[#allocation19_spill] sm:$0xff] }
 0x39a   :  { %1290 = vtanh.f32 %v834_v16 }
 0x3a0   :  { %v1291_v22 = vpop.eup %1290 }
 0x3a1   :  { %v836_v3 = vsub.f32 %v2345_v40, %v1291_v22 }
 0x3a3   :  { %v837_v27 = vmul.f32 %v836_v3, %v830_v26 }
 0x3a5   :  { %v2441_v29 = vadd.f32 %v1291_v22, %v837_v27 }
 0x3a7   :  { %1227 = vst [vmem:[%s2508_s6 + $0x20] sm:$0xff] %v2441_v29  ;;  %861 = vmatmul.f32.vlgmr.msra.gmra.mxu1 %v2441_v29  ;;  %881 = vmatmul.f32.vlgmr.msra.gmra.mxu2 %v2441_v29 }
 0x3a8   :  { %901 = vmatmul.f32.vlgmr.msrb.gmra.mxu3 %v2441_v29  ;;  %1111 = vmatpush.msra.mxu1 %v2133_v10 }
 0x3aa   :  { %1112 = vmatpush.msra.mxu1 %v2146_v14  ;;  %v2584_v14 = vld [vmem:[#allocation18_spill] sm:$0xff] }
 0x3ac   :  { %1113 = vmatpush.msra.mxu1 %v2159_v41 }
 0x3ae   :  { %1114 = vmatpush.msra.mxu1 %v2172_v43 }
 0x3b0   :  { %1115 = vmatpush.msra.mxu1 %v2185_v45  ;;  %v2585_v45 = vld [vmem:[#allocation29_spill] sm:$0xff] }
 0x3b2   :  { %1116 = vmatpush.msra.mxu1 %v2198_v48  ;;  %v152_v48 = vadd.f32 %v2585_v45, %v2574_v12 }
 0x3b4   :  { %1117 = vmatpush.msra.mxu1 %v2211_v49 }
 0x3b6   :  { %1118 = vmatpush.msra.mxu1 %v2224_v50 }
 0x3b8   :  { %1119 = vmatpush.msra.mxu1 %v2237_v51 }
 0x3ba   :  { %1120 = vmatpush.msra.mxu1 %v2250_v53 }
 0x3bc   :  { %1121 = vmatpush.msra.mxu1 %v2263_v54 }
 0x3be   :  { %1122 = vmatpush.msra.mxu1 %v2276_v55 }
 0x3c0   :  { %1123 = vmatpush.msra.mxu1 %v2289_v56 }
 0x3c2   :  { %1124 = vmatpush.msra.mxu1 %v2302_v58 }
 0x3c4   :  { %1125 = vmatpush.msra.mxu1 %v2315_v59 }
 0x3c6   :  { %1126 = vmatpush.msra.mxu1 %v2328_v4 }
 0x424   :  { %v862_v10 = vpop.f32.mrf.mxu1 }
 0x425   :  { %v905_v41 = vadd.f32 %v862_v10, %v2584_v14 }
 0x427   :  { %v1228_v43 = vmul.f32 -1.442695, %v905_v41 }
 0x429   :  { %1292 = vpow2.f32 %v1228_v43 }
 0x42a   :  { %v882_v49 = vpop.f32.mrf.mxu2 }
 0x42b   :  { %v925_v50 = vadd.f32 %v882_v49, %v152_v48  ;;  %v902_v60 = vpop.f32.mrf.mxu3 }
 0x42c   :  { %v945_v61 = vadd.f32 %v2472_v37, %v902_v60 }
 0x42d   :  { %v1229_v51 = vmul.f32 -1.442695, %v925_v50 }
 0x42f   :  { %v1293_v53 = vpop.eup %1292  ;;  %1294 = vpow2.f32 %v1229_v51 }
 0x430   :  { %v909_v54 = vadd.f32 1.0, %v1293_v53 }
 0x432   :  { %1296 = vrcp.f32 %v909_v54  ;;  %v921_v40 = vand.u32 2147483648, %v909_v54  ;;  %v919_v31 = vand.u32 2147483647, %v909_v54  ;;  %vm915_vm10 = vweird.f32 %v909_v54 }
 0x434   :  { %v922_v32 = vor.u32 1.1754944e-38, %v921_v40  ;;  %vm920_vm12 = vcmp.eq.f32.partialorder %v919_v31, 8.507059e+37 }
 0x435   :  { %v1295_v55 = vpop.eup %1294 }
 0x436   :  { %v929_v56 = vadd.f32 1.0, %v1295_v55 }
 0x438   :  { %v1297_v58 = vpop.eup %1296  ;;  %1298 = vrcp.f32 %v929_v56  ;;  %v941_v8 = vand.u32 2147483648, %v929_v56  ;;  %vm935_vm14 = vweird.f32 %v929_v56  ;;  %v939_v57 = vand.u32 2147483647, %v929_v56 }
 0x439   :  { %v911_v59 = vmul.f32 %v1297_v58, %v909_v54  ;;  %vm916_vm9 = vweird.f32 %v1297_v58  ;;  %v2589_v54 = vld [vmem:[#allocation30_spill] sm:$0xff] }
 0x43a   :  { %vm917_vm11 = vmor %vm915_vm10, %vm916_vm9  ;;  %v942_v28 = vor.u32 1.1754944e-38, %v941_v8  ;;  %vm940_vm0 = vcmp.eq.f32.partialorder %v939_v57, 8.507059e+37  ;;  %v196_v55 = vadd.f32 %v2589_v54, %v1969_v46 }
 0x43b   :  { %v912_v4 = vsub.f32 1.0, %v911_v59 }
 0x43d   :  { %v913_v30 = vmul.f32 %v1297_v58, %v912_v4 }
 0x43e   :  { %v1299_v11 = vpop.eup %1298 }
 0x43f   :  { %v931_v34 = vmul.f32 %v1299_v11, %v929_v56  ;;  %v914_v33 = vadd.f32 %v1297_v58, %v913_v30  ;;  %vm936_vm13 = vweird.f32 %v1299_v11 }
 0x440   :  { %vm937_vm15 = vmor %vm935_vm14, %vm936_vm13 }
 0x441   :  { %v932_v25 = vsub.f32 1.0, %v931_v34  ;;  %v918_v38 = vsel %vm917_vm11, %v1297_v58, %v914_v33 }
 0x442   :  { %v923_v0 = vsel %vm920_vm12, %v922_v32, %v918_v38  ;;  %v2590_v38 = vld [vmem:[#allocation21_spill] sm:$0xff] }
 0x443   :  { %v946_v6 = vmul.f32 %v945_v61, %v923_v0  ;;  %v933_v7 = vmul.f32 %v1299_v11, %v932_v25  ;;  %v158_v61 = vadd.f32 %v2590_v38, %v2574_v12 }
 0x445   :  { %v947_v39 = vadd.f32 %v946_v6, %v193_v35  ;;  %v934_v42 = vadd.f32 %v1299_v11, %v933_v7  ;;  %v2591_v7 = vld [vmem:[#allocation14_spill] sm:$0xff] }
 0x447   :  { %1300 = vtanh.f32 %v947_v39  ;;  %v938_v23 = vsel %vm937_vm15, %v1299_v11, %v934_v42 }
 0x448   :  { %v943_v36 = vsel %vm940_vm0, %v942_v28, %v938_v23 }
 0x44d   :  { %v1301_v47 = vpop.eup %1300 }
 0x44e   :  { %v949_v5 = vsub.f32 %v2441_v29, %v1301_v47 }
 0x450   :  { %v950_v13 = vmul.f32 %v949_v5, %v943_v36 }
 0x452   :  { %v951_v44 = vadd.f32 %v1301_v47, %v950_v13 }
 0x454   :  { %1230 = vst [vmem:[%s2508_s6 + $0x28] sm:$0xff] %v951_v44  ;;  %974 = vmatmul.f32.vlgmr.msrb.gmra.mxu0 %v951_v44  ;;  %994 = vmatmul.f32.vlgmr.msrb.gmra.mxu1 %v951_v44 }
 0x455   :  { %1014 = vmatmul.f32.vlgmr.msrb.gmra.mxu2 %v951_v44 }
 0x4d1   :  { %v975_v63 = vpop.f32.mrf.mxu0  ;;  %v995_v9 = vpop.f32.mrf.mxu1 }
 0x4d2   :  { %v1018_v52 = vadd.f32 %v975_v63, %v2588_v17  ;;  %v1038_v15 = vadd.f32 %v995_v9, %v155_v62 }
 0x4d4   :  { %v1231_v16 = vmul.f32 -1.442695, %v1018_v52  ;;  %v1232_v18 = vmul.f32 -1.442695, %v1038_v15 }
 0x4d6   :  { %1302 = vpow2.f32 %v1231_v16 }
 0x4d7   :  { %1304 = vpow2.f32 %v1232_v18 }
 0x4d8   :  { %v1015_v43 = vpop.f32.mrf.mxu2 }
 0x4d9   :  { %v1058_v51 = vadd.f32 %v2472_v37, %v1015_v43 }
 0x4dc   :  { %v1303_v19 = vpop.eup %1302 }
 0x4dd   :  { %v1305_v20 = vpop.eup %1304  ;;  %v1022_v21 = vadd.f32 1.0, %v1303_v19  ;;  %v2592_v19 = vld [vmem:[#allocation32_spill] sm:$0xff] }
 0x4de   :  { %v1042_v22 = vadd.f32 1.0, %v1305_v20  ;;  %v199_v20 = vadd.f32 %v2592_v19, %v1969_v46 }
 0x4df   :  { %1306 = vrcp.f32 %v1022_v21  ;;  %v1034_v10 = vand.u32 2147483648, %v1022_v21  ;;  %v1032_v41 = vand.u32 2147483647, %v1022_v21  ;;  %vm1028_vm2 = vweird.f32 %v1022_v21 }
 0x4e0   :  { %1308 = vrcp.f32 %v1042_v22  ;;  %v1054_v40 = vand.u32 2147483648, %v1042_v22  ;;  %vm1048_vm6 = vweird.f32 %v1042_v22  ;;  %v1052_v30 = vand.u32 2147483647, %v1042_v22 }
 0x4e1   :  { %v1035_v49 = vor.u32 1.1754944e-38, %v1034_v10  ;;  %vm1033_vm4 = vcmp.eq.f32.partialorder %v1032_v41, 8.507059e+37 }
 0x4e2   :  { %v1055_v60 = vor.u32 1.1754944e-38, %v1054_v40  ;;  %vm1053_vm8 = vcmp.eq.f32.partialorder %v1052_v30, 8.507059e+37 }
 0x4e5   :  { %v1307_v24 = vpop.eup %1306 }
 0x4e6   :  { %v1309_v3 = vpop.eup %1308  ;;  %v1024_v26 = vmul.f32 %v1307_v24, %v1022_v21  ;;  %vm1029_vm1 = vweird.f32 %v1307_v24 }
 0x4e7   :  { %v1044_v29 = vmul.f32 %v1309_v3, %v1042_v22  ;;  %vm1030_vm3 = vmor %vm1028_vm2, %vm1029_vm1  ;;  %vm1049_vm5 = vweird.f32 %v1309_v3 }
 0x4e8   :  { %v1025_v27 = vsub.f32 1.0, %v1024_v26  ;;  %vm1050_vm7 = vmor %vm1048_vm6, %vm1049_vm5 }
 0x4e9   :  { %v1045_v48 = vsub.f32 1.0, %v1044_v29 }
 0x4ea   :  { %v1026_v14 = vmul.f32 %v1307_v24, %v1025_v27 }
 0x4eb   :  { %v1046_v58 = vmul.f32 %v1309_v3, %v1045_v48 }
 0x4ec   :  { %v1027_v45 = vadd.f32 %v1307_v24, %v1026_v14 }
 0x4ed   :  { %v1047_v4 = vadd.f32 %v1309_v3, %v1046_v58 }
 0x4ee   :  { %v1031_v50 = vsel %vm1030_vm3, %v1307_v24, %v1027_v45 }
 0x4ef   :  { %v1036_v53 = vsel %vm1033_vm4, %v1035_v49, %v1031_v50  ;;  %v1051_v31 = vsel %vm1050_vm7, %v1309_v3, %v1047_v4 }
 0x4f0   :  { %v1059_v56 = vmul.f32 %v1058_v51, %v1036_v53  ;;  %v1056_v33 = vsel %vm1053_vm8, %v1055_v60, %v1051_v31 }
 0x4f2   :  { %v1060_v59 = vadd.f32 %v1059_v56, %v196_v55 }
 0x4f4   :  { %1310 = vtanh.f32 %v1060_v59 }
 0x4fa   :  { %v1311_v11 = vpop.eup %1310 }
 0x4fb   :  { %v1062_v34 = vsub.f32 %v951_v44, %v1311_v11 }
 0x4fd   :  { %v1063_v32 = vmul.f32 %v1062_v34, %v1056_v33 }
 0x4ff   :  { %v1064_v25 = vadd.f32 %v1311_v11, %v1063_v32 }
 0x501   :  { %1233 = vst [vmem:[%s2508_s6 + $0x30] sm:$0xff] %v1064_v25  ;;  %1087 = vmatmul.f32.vlgmr.msra.gmra.mxu3 %v1064_v25  ;;  %1107 = vmatmul.f32.vlgmr.msra.gmra.mxu0 %v1064_v25 }
 0x502   :  { %1127 = vmatmul.f32.vlgmr.msra.gmra.mxu1 %v1064_v25 }
 0x57e   :  { %v1108_v0 = vpop.f32.mrf.mxu0 }
 0x57f   :  { %v1151_v1 = vadd.f32 %v1108_v0, %v158_v61  ;;  %v1128_v63 = vpop.f32.mrf.mxu1 }
 0x580   :  { %v1171_v15 = vadd.f32 %v2472_v37, %v1128_v63 }
 0x581   :  { %v1235_v35 = vmul.f32 -1.442695, %v1151_v1 }
 0x583   :  { %1312 = vpow2.f32 %v1235_v35 }
 0x584   :  { %v1088_v6 = vpop.f32.mrf.mxu3 }
 0x585   :  { %v1131_v39 = vadd.f32 %v1088_v6, %v2591_v7 }
 0x587   :  { %v1234_v42 = vmul.f32 -1.442695, %v1131_v39 }
 0x589   :  { %1314 = vpow2.f32 %v1234_v42  ;;  %v1313_v8 = vpop.eup %1312 }
 0x58a   :  { %v1155_v23 = vadd.f32 1.0, %v1313_v8 }
 0x58c   :  { %v1167_v26 = vand.u32 2147483648, %v1155_v23  ;;  %vm1161_vm14 = vweird.f32 %v1155_v23  ;;  %v1165_v27 = vand.u32 2147483647, %v1155_v23 }
 0x58e   :  { %v1168_v14 = vor.u32 1.1754944e-38, %v1167_v26  ;;  %vm1166_vm0 = vcmp.eq.f32.partialorder %v1165_v27, 8.507059e+37 }
 0x58f   :  { %v1315_v57 = vpop.eup %1314 }
 0x590   :  { %v1135_v47 = vadd.f32 1.0, %v1315_v57 }
 0x592   :  { %1316 = vrcp.f32 %v1135_v47  ;;  %v1147_v44 = vand.u32 2147483648, %v1135_v47  ;;  %v1145_v62 = vand.u32 2147483647, %v1135_v47  ;;  %vm1141_vm10 = vweird.f32 %v1135_v47 }
 0x593   :  { %1318 = vrcp.f32 %v1155_v23 }
 0x594   :  { %v1148_v52 = vor.u32 1.1754944e-38, %v1147_v44  ;;  %vm1146_vm12 = vcmp.eq.f32.partialorder %v1145_v62, 8.507059e+37 }
 0x598   :  { %v1317_v28 = vpop.eup %1316 }
 0x599   :  { %v1319_v5 = vpop.eup %1318  ;;  %v1137_v36 = vmul.f32 %v1317_v28, %v1135_v47  ;;  %vm1142_vm9 = vweird.f32 %v1317_v28 }
 0x59a   :  { %v1157_v12 = vmul.f32 %v1319_v5, %v1155_v23  ;;  %vm1143_vm11 = vmor %vm1141_vm10, %vm1142_vm9  ;;  %vm1162_vm13 = vweird.f32 %v1319_v5 }
 0x59b   :  { %v1138_v13 = vsub.f32 1.0, %v1137_v36  ;;  %vm1163_vm15 = vmor %vm1161_vm14, %vm1162_vm13 }
 0x59c   :  { %v1158_v17 = vsub.f32 1.0, %v1157_v12 }
 0x59d   :  { %v1139_v2 = vmul.f32 %v1317_v28, %v1138_v13 }
 0x59e   :  { %v1159_v22 = vmul.f32 %v1319_v5, %v1158_v17 }
 0x59f   :  { %v1140_v9 = vadd.f32 %v1317_v28, %v1139_v2 }
 0x5a0   :  { %v1160_v3 = vadd.f32 %v1319_v5, %v1159_v22 }
 0x5a1   :  { %v1144_v16 = vsel %vm1143_vm11, %v1317_v28, %v1140_v9 }
 0x5a2   :  { %v1149_v18 = vsel %vm1146_vm12, %v1148_v52, %v1144_v16  ;;  %v1164_v29 = vsel %vm1163_vm15, %v1319_v5, %v1160_v3 }
 0x5a3   :  { %v1172_v21 = vmul.f32 %v1171_v15, %v1149_v18  ;;  %v1169_v41 = vsel %vm1166_vm0, %v1168_v14, %v1164_v29 }
 0x5a5   :  { %v1173_v24 = vadd.f32 %v1172_v21, %v199_v20 }
 0x5a7   :  { %1320 = vtanh.f32 %v1173_v24 }
 0x5ad   :  { %v1321_v10 = vpop.eup %1320 }
 0x5ae   :  { %v1175_v37 = vsub.f32 %v1064_v25, %v1321_v10 }
 0x5b0   :  { %v1176_v43 = vmul.f32 %v1175_v37, %v1169_v41 }
 0x5b2   :  { %v1177_v45 = vadd.f32 %v1321_v10, %v1176_v43 }
 0x5b4   :  { %1236 = vst [vmem:[%s2508_s6 + $0x38] sm:$0xff] %v1177_v45 }
 0x5b5   :  { %1181 = vst [vmem:[%s2509_s7] sm:$0xff] %v1177_v45 }

// kernel: mc_mtl_sgru_forward.3
= control target key start
LH: loop header
LB: loop body
LE: loop exit
PB: predicated region body
PF: predicated region fallthrough
CT: control target
= control target key end

     0   :  { %s2700_s1 = inlined_call_operand.vmem [shape: f32[128,384], index: 1, kind: input, shape index: {}]   ;;  %s2701_s3 = inlined_call_operand.vmem [shape: f32[128,384], index: 3, kind: input, shape index: {}]   ;;  %s2702_s0 = inlined_call_operand.vmem [shape: f32[8,8,128], index: 0, kind: input, shape index: {}]   ;;  %s2703_s5 = inlined_call_operand.vmem [shape: f32[8,128], index: 5, kind: input, shape index: {}]   ;;  %s2704_s4 = inlined_call_operand.vmem [shape: f32[1,128], index: 4, kind: input, shape index: {}]   ;;  %s2705_s2 = inlined_call_operand.vmem [shape: f32[1,384], index: 2, kind: input, shape index: {}]   ;;  %s2706_s7 = inlined_call_operand.vmem [shape: f32[1,8], index: 7, kind: input, shape index: {}]   ;;  %s2707_s6 = inlined_call_operand.vmem [shape: f32[128,8], index: 6, kind: input, shape index: {}]   ;;  %s2708_s8 = inlined_call_operand.vmem [shape: f32[8,8], index: 8, kind: output, shape index: {}]  }
   0x1   :  { %v88_v0 = vld [vmem:[%s2700_s1 + $0x168] sm:$0xff]  ;;  %v85_v2 = vld [vmem:[%s2700_s1 + $0x150] sm:$0xff]  ;;  %v82_v4 = vld [vmem:[%s2700_s1 + $0x138] sm:$0xff] }
   0x2   :  { %v1434_v1 = vld [vmem:[%s2701_s3 + $0x168] sm:$0xff]  ;;  %99 = vmatpush.msra.mxu0 %v88_v0  ;;  %v1443_v3 = vld [vmem:[%s2701_s3 + $0x150] sm:$0xff]  ;;  %v1451_v5 = vld [vmem:[%s2701_s3 + $0x138] sm:$0xff] }
   0x3   :  { %302 = vmatpush.msra.mxu3 %v1434_v1  ;;  %v79_v6 = vld [vmem:[%s2700_s1 + $0x120] sm:$0xff]  ;;  %v76_v8 = vld [vmem:[%s2700_s1 + $0x108] sm:$0xff]  ;;  %v73_v10 = vld [vmem:[%s2700_s1 + $0xf0] sm:$0xff] }
   0x4   :  { %100 = vmatpush.msra.mxu0 %v85_v2  ;;  %v1460_v7 = vld [vmem:[%s2701_s3 + $0x120] sm:$0xff]  ;;  %v1469_v9 = vld [vmem:[%s2701_s3 + $0x108] sm:$0xff]  ;;  %v1478_v11 = vld [vmem:[%s2701_s3 + $0xf0] sm:$0xff] }
   0x5   :  { %303 = vmatpush.msra.mxu3 %v1443_v3  ;;  %v70_v12 = vld [vmem:[%s2700_s1 + $0xd8] sm:$0xff]  ;;  %v67_v14 = vld [vmem:[%s2700_s1 + $0xc0] sm:$0xff]  ;;  %v89_v16 = vld [vmem:[%s2700_s1 + $0x170] sm:$0xff] }
   0x6   :  { %101 = vmatpush.msra.mxu0 %v82_v4  ;;  %v1487_v13 = vld [vmem:[%s2701_s3 + $0xd8] sm:$0xff]  ;;  %v1496_v15 = vld [vmem:[%s2701_s3 + $0xc0] sm:$0xff]  ;;  %v64_v18 = vld [vmem:[%s2700_s1 + $0xa8] sm:$0xff]  ;;  %140 = vmatpush.msra.mxu1 %v89_v16 }
   0x7   :  { %304 = vmatpush.msra.mxu3 %v1451_v5  ;;  %v86_v17 = vld [vmem:[%s2700_s1 + $0x158] sm:$0xff]  ;;  %v1511_v19 = vld [vmem:[%s2701_s3 + $0xa8] sm:$0xff]  ;;  %v83_v20 = vld [vmem:[%s2700_s1 + $0x140] sm:$0xff] }
   0x8   :  { %102 = vmatpush.msra.mxu0 %v79_v6  ;;  %v61_v21 = vld [vmem:[%s2700_s1 + $0x90] sm:$0xff]  ;;  %141 = vmatpush.msra.mxu1 %v86_v17  ;;  %v80_v23 = vld [vmem:[%s2700_s1 + $0x128] sm:$0xff]  ;;  %v58_v24 = vld [vmem:[%s2700_s1 + $0x78] sm:$0xff] }
   0x9   :  { %305 = vmatpush.msra.mxu3 %v1460_v7  ;;  %v1523_v22 = vld [vmem:[%s2701_s3 + $0x90] sm:$0xff]  ;;  %v1535_v25 = vld [vmem:[%s2701_s3 + $0x78] sm:$0xff]  ;;  %v55_v27 = vld [vmem:[%s2700_s1 + $0x60] sm:$0xff] }
   0xa   :  { %103 = vmatpush.msra.mxu0 %v76_v8  ;;  %142 = vmatpush.msra.mxu1 %v83_v20  ;;  %v77_v26 = vld [vmem:[%s2700_s1 + $0x110] sm:$0xff]  ;;  %v1547_v28 = vld [vmem:[%s2701_s3 + $0x60] sm:$0xff]  ;;  %v74_v29 = vld [vmem:[%s2700_s1 + $0xf8] sm:$0xff] }
   0xb   :  { %306 = vmatpush.msra.mxu3 %v1469_v9  ;;  %v52_v30 = vld [vmem:[%s2700_s1 + $0x48] sm:$0xff]  ;;  %v71_v32 = vld [vmem:[%s2700_s1 + $0xe0] sm:$0xff]  ;;  %v49_v33 = vld [vmem:[%s2700_s1 + $0x30] sm:$0xff] }
   0xc   :  { %104 = vmatpush.msra.mxu0 %v73_v10  ;;  %143 = vmatpush.msra.mxu1 %v80_v23  ;;  %v1559_v31 = vld [vmem:[%s2701_s3 + $0x48] sm:$0xff]  ;;  %v1571_v34 = vld [vmem:[%s2701_s3 + $0x30] sm:$0xff]  ;;  %v46_v36 = vld [vmem:[%s2700_s1 + $0x18] sm:$0xff] }
   0xd   :  { %307 = vmatpush.msra.mxu3 %v1478_v11  ;;  %2738 = vst [vmem:[#allocation4_spill] sm:$0xff] %v1571_v34  ;;  %v68_v35 = vld [vmem:[%s2700_s1 + $0xc8] sm:$0xff]  ;;  %v1583_v37 = vld [vmem:[%s2701_s3 + $0x18] sm:$0xff]  ;;  %v65_v38 = vld [vmem:[%s2700_s1 + $0xb0] sm:$0xff] }
   0xe   :  { %105 = vmatpush.msra.mxu0 %v70_v12  ;;  %144 = vmatpush.msra.mxu1 %v77_v26  ;;  %2739 = vst [vmem:[#allocation5_spill] sm:$0xff] %v1583_v37  ;;  %v43_v39 = vld [vmem:[%s2700_s1] sm:$0xff]  ;;  %v90_v43 = vld [vmem:[%s2700_s1 + $0x178] sm:$0xff]  ;;  %v1614_v44 = vld [vmem:[%s2701_s3 + $0x170] sm:$0xff] }
   0xf   :  { %308 = vmatpush.msra.mxu3 %v1487_v13  ;;  %v1595_v40 = vld [vmem:[%s2701_s3] sm:$0xff]  ;;  %v1619_v45 = vld [vmem:[%s2701_s3 + $0x178] sm:$0xff]  ;;  %181 = vmatpush.msra.mxu2 %v90_v43  ;;  %v84_v51 = vld [vmem:[%s2700_s1 + $0x148] sm:$0xff] }
  0x10   :  { %106 = vmatpush.msra.mxu0 %v67_v14  ;;  %145 = vmatpush.msra.mxu1 %v74_v29  ;;  %2740 = vst [vmem:[#allocation6_spill] sm:$0xff] %v1595_v40  ;;  %v1601_v41 = vld [vmem:[%s2702_s0] sm:$0xff]  ;;  %v62_v46 = vld [vmem:[%s2700_s1 + $0x98] sm:$0xff]  ;;  %v1656_v53 = vld [vmem:[%s2701_s3 + $0x148] sm:$0xff] }
  0x11   :  { %309 = vmatpush.msra.mxu3 %v1496_v15  ;;  %v1606_v42 = vld [vmem:[%s2703_s5] sm:$0xff]  ;;  %v1633_v48 = vld [vmem:[%s2701_s3 + $0x158] sm:$0xff]  ;;  %v56_v54 = vld [vmem:[%s2700_s1 + $0x68] sm:$0xff] }
  0x12   :  { %107 = vmatpush.msra.mxu0 %v64_v18  ;;  %146 = vmatpush.msra.mxu1 %v71_v32  ;;  %v87_v47 = vld [vmem:[%s2700_s1 + $0x160] sm:$0xff]  ;;  %v81_v55 = vld [vmem:[%s2700_s1 + $0x130] sm:$0xff]  ;;  %v1669_v56 = vld [vmem:[%s2701_s3 + $0x128] sm:$0xff] }
  0x13   :  { %310 = vmatpush.msra.mxu3 %v1511_v19  ;;  %v1638_v49 = vld [vmem:[%s2701_s3 + $0x160] sm:$0xff]  ;;  %182 = vmatpush.msra.mxu2 %v87_v47  ;;  %v1674_v57 = vld [vmem:[%s2701_s3 + $0x130] sm:$0xff]  ;;  %v1680_v58 = vld [vmem:[%s2702_s0 + $0x8] sm:$0xff] }
  0x14   :  { %108 = vmatpush.msra.mxu0 %v61_v21  ;;  %147 = vmatpush.msra.mxu1 %v68_v35  ;;  %v59_v50 = vld [vmem:[%s2700_s1 + $0x80] sm:$0xff]  ;;  %v53_v59 = vld [vmem:[%s2700_s1 + $0x50] sm:$0xff]  ;;  %v1694_v61 = vld [vmem:[%s2701_s3 + $0x118] sm:$0xff] }
  0x15   :  { %311 = vmatpush.msra.mxu3 %v1523_v22  ;;  %v1651_v52 = vld [vmem:[%s2701_s3 + $0x140] sm:$0xff]  ;;  %183 = vmatpush.msra.mxu2 %v84_v51  ;;  %v1689_v60 = vld [vmem:[%s2701_s3 + $0x110] sm:$0xff]  ;;  %v50_v62 = vld [vmem:[%s2700_s1 + $0x38] sm:$0xff] }
  0x16   :  { %109 = vmatpush.msra.mxu0 %v58_v24  ;;  %148 = vmatpush.msra.mxu1 %v65_v38  ;;  %v78_v63 = vld [vmem:[%s2700_s1 + $0x118] sm:$0xff]  ;;  %v1713_v2 = vld [vmem:[%s2701_s3 + $0x100] sm:$0xff]  ;;  %v1731_v10 = vld [vmem:[%s2701_s3 + $0xe8] sm:$0xff] }
  0x17   :  { %312 = vmatpush.msra.mxu3 %v1535_v25  ;;  %184 = vmatpush.msra.mxu2 %v81_v55  ;;  %v1708_v0 = vld [vmem:[%s2701_s3 + $0xf8] sm:$0xff]  ;;  %v47_v4 = vld [vmem:[%s2700_s1 + $0x20] sm:$0xff]  ;;  %v44_v12 = vld [vmem:[%s2700_s1 + $0x8] sm:$0xff] }
  0x18   :  { %110 = vmatpush.msra.mxu0 %v55_v27  ;;  %149 = vmatpush.msra.mxu1 %v62_v46  ;;  %v75_v6 = vld [vmem:[%s2700_s1 + $0x100] sm:$0xff]  ;;  %v72_v14 = vld [vmem:[%s2700_s1 + $0xe8] sm:$0xff]  ;;  %v1749_v17 = vld [vmem:[%s2701_s3 + $0xd0] sm:$0xff] }
  0x19   :  { %313 = vmatpush.msra.mxu3 %v1547_v28  ;;  %v1726_v8 = vld [vmem:[%s2701_s3 + $0xe0] sm:$0xff]  ;;  %185 = vmatpush.msra.mxu2 %v78_v63  ;;  %v1744_v16 = vld [vmem:[%s2701_s3 + $0xc8] sm:$0xff]  ;;  %v1755_v18 = vld [vmem:[%s2702_s0 + $0x10] sm:$0xff] }
  0x1a   :  { %111 = vmatpush.msra.mxu0 %v52_v30  ;;  %150 = vmatpush.msra.mxu1 %v59_v50  ;;  %v1761_v20 = vld [vmem:[%s2701_s3 + $0xb0] sm:$0xff]  ;;  %v1766_v21 = vld [vmem:[%s2701_s3 + $0xb8] sm:$0xff]  ;;  %v1783_v26 = vld [vmem:[%s2701_s3 + $0xa0] sm:$0xff] }
  0x1b   :  { %314 = vmatpush.msra.mxu3 %v1559_v31  ;;  %186 = vmatpush.msra.mxu2 %v75_v6  ;;  %v69_v23 = vld [vmem:[%s2700_s1 + $0xd0] sm:$0xff]  ;;  %v1777_v24 = vld [vmem:[%s2701_s3 + $0x98] sm:$0xff]  ;;  %v1793_v29 = vld [vmem:[%s2701_s3 + $0x80] sm:$0xff] }
  0x1c   :  { %112 = vmatpush.msra.mxu0 %v49_v33  ;;  %151 = vmatpush.msra.mxu1 %v56_v54  ;;  %v66_v27 = vld [vmem:[%s2700_s1 + $0xb8] sm:$0xff]  ;;  %v1798_v30 = vld [vmem:[%s2701_s3 + $0x88] sm:$0xff]  ;;  %v63_v32 = vld [vmem:[%s2700_s1 + $0xa0] sm:$0xff] }
  0x1d   :  { %315 = vmatpush.msra.mxu3 %v1571_v34  ;;  %187 = vmatpush.msra.mxu2 %v72_v14  ;;  %v1809_v33 = vld [vmem:[%s2701_s3 + $0x68] sm:$0xff]  ;;  %v1814_v35 = vld [vmem:[%s2701_s3 + $0x70] sm:$0xff]  ;;  %v1835_v43 = vld [vmem:[%s2701_s3 + $0x58] sm:$0xff] }
  0x1e   :  { %113 = vmatpush.msra.mxu0 %v46_v36  ;;  %152 = vmatpush.msra.mxu1 %v53_v59  ;;  %v1821_v36 = vld [vmem:[%s2702_s0 + $0x18] sm:$0xff]  ;;  %v60_v38 = vld [vmem:[%s2700_s1 + $0x88] sm:$0xff]  ;;  %v57_v46 = vld [vmem:[%s2700_s1 + $0x70] sm:$0xff] }
  0x1f   :  { %316 = vmatpush.msra.mxu3 %v1583_v37  ;;  %188 = vmatpush.msra.mxu2 %v69_v23  ;;  %v1847_v47 = vld [vmem:[%s2701_s3 + $0x38] sm:$0xff]  ;;  %v1852_v50 = vld [vmem:[%s2701_s3 + $0x40] sm:$0xff]  ;;  %v1867_v55 = vld [vmem:[%s2701_s3 + $0x28] sm:$0xff] }
  0x20   :  { %114 = vmatpush.msra.mxu0 %v43_v39  ;;  %153 = vmatpush.msra.mxu1 %v50_v62  ;;  %v1830_v39 = vld [vmem:[%s2701_s3 + $0x50] sm:$0xff]  ;;  %2741 = vst [vmem:[#allocation7_spill] sm:$0xff] %v1847_v47  ;;  %v54_v51 = vld [vmem:[%s2700_s1 + $0x58] sm:$0xff]  ;;  %v1862_v54 = vld [vmem:[%s2701_s3 + $0x20] sm:$0xff] }
  0x21   :  { %317 = vmatpush.msra.mxu3 %v1595_v40  ;;  %115 = vmatmul.f32.vlgmr.msra.gmra.mxu0 %v1601_v41  ;;  %2742 = vst [vmem:[#allocation8_spill] sm:$0xff] %v1852_v50  ;;  %v51_v59 = vld [vmem:[%s2700_s1 + $0x40] sm:$0xff]  ;;  %v1878_v62 = vld [vmem:[%s2701_s3 + $0x8] sm:$0xff]  ;;  %v1883_v63 = vld [vmem:[%s2701_s3 + $0x10] sm:$0xff] }
  0x22   :  { %318 = vmatmul.f32.vlgmr.msra.gmra.mxu3 %v1606_v42  ;;  %342 = vmatpush.msrb.mxu0 %v1619_v45  ;;  %2743 = vst [vmem:[#allocation9_spill] sm:$0xff] %v1862_v54  ;;  %v48_v6 = vld [vmem:[%s2700_s1 + $0x28] sm:$0xff]  ;;  %v91_v23 = vld [vmem:[%s2705_s2] sm:$0x7] }
  0x23   :  { %322 = vmatpush.msrb.mxu3 %v1614_v44  ;;  %154 = vmatpush.msra.mxu1 %v47_v4  ;;  %2744 = vst [vmem:[#allocation10_spill] sm:$0xff] %v1867_v55  ;;  %v1890_v4 = vld [vmem:[%s2702_s0 + $0x20] sm:$0xff]  ;;  %v1913_v14 = vld [vmem:[%s2702_s0 + $0x28] sm:$0xff] }
  0x24   :  { %343 = vmatpush.msrb.mxu0 %v1638_v49  ;;  %189 = vmatpush.msra.mxu2 %v66_v27  ;;  %2745 = vst [vmem:[#allocation11_spill] sm:$0xff] %v1878_v62  ;;  %v93_v27 = vperm.slane %v91_v23, 0 }
  0x25   :  { %323 = vmatpush.msrb.mxu3 %v1633_v48  ;;  %155 = vmatpush.msra.mxu1 %v44_v12  ;;  %2746 = vst [vmem:[#allocation12_spill] sm:$0xff] %v1883_v63  ;;  %v45_v12 = vld [vmem:[%s2700_s1 + $0x10] sm:$0xff] }
  0x26   :  { %344 = vmatpush.msrb.mxu0 %v1656_v53  ;;  %156 = vmatmul.f32.vlgmr.msra.gmra.mxu1 %v1601_v41 }
  0x27   :  { %324 = vmatpush.msrb.mxu3 %v1651_v52  ;;  %413 = vmatpush.msrb.mxu1 %v1434_v1 }
  0x28   :  { %345 = vmatpush.msrb.mxu0 %v1674_v57  ;;  %190 = vmatpush.msra.mxu2 %v63_v32 }
  0x29   :  { %325 = vmatpush.msrb.mxu3 %v1669_v56  ;;  %118 = vmatmul.f32.gmra.mxu0 %v1680_v58 }
  0x2a   :  { %346 = vmatpush.msrb.mxu0 %v1694_v61  ;;  %414 = vmatpush.msrb.mxu1 %v1443_v3 }
  0x2b   :  { %326 = vmatpush.msrb.mxu3 %v1689_v60  ;;  %191 = vmatpush.msra.mxu2 %v60_v38 }
  0x2c   :  { %347 = vmatpush.msrb.mxu0 %v1713_v2  ;;  %415 = vmatpush.msrb.mxu1 %v1451_v5 }
  0x2d   :  { %327 = vmatpush.msrb.mxu3 %v1708_v0  ;;  %192 = vmatpush.msra.mxu2 %v57_v46 }
  0x2e   :  { %348 = vmatpush.msrb.mxu0 %v1731_v10  ;;  %159 = vmatmul.f32.gmra.mxu1 %v1680_v58 }
  0x2f   :  { %328 = vmatpush.msrb.mxu3 %v1726_v8  ;;  %193 = vmatpush.msra.mxu2 %v54_v51 }
  0x30   :  { %349 = vmatpush.msrb.mxu0 %v1749_v17  ;;  %416 = vmatpush.msrb.mxu1 %v1460_v7 }
  0x31   :  { %329 = vmatpush.msrb.mxu3 %v1744_v16  ;;  %121 = vmatmul.f32.gmra.mxu0 %v1755_v18 }
  0x32   :  { %350 = vmatpush.msrb.mxu0 %v1766_v21  ;;  %194 = vmatpush.msra.mxu2 %v51_v59 }
  0x33   :  { %330 = vmatpush.msrb.mxu3 %v1761_v20  ;;  %417 = vmatpush.msrb.mxu1 %v1469_v9 }
  0x34   :  { %351 = vmatpush.msrb.mxu0 %v1783_v26  ;;  %195 = vmatpush.msra.mxu2 %v48_v6 }
  0x35   :  { %331 = vmatpush.msrb.mxu3 %v1777_v24  ;;  %418 = vmatpush.msrb.mxu1 %v1478_v11 }
  0x36   :  { %352 = vmatpush.msrb.mxu0 %v1798_v30  ;;  %162 = vmatmul.f32.gmra.mxu1 %v1755_v18 }
  0x37   :  { %332 = vmatpush.msrb.mxu3 %v1793_v29  ;;  %196 = vmatpush.msra.mxu2 %v45_v12 }
  0x38   :  { %353 = vmatpush.msrb.mxu0 %v1814_v35  ;;  %419 = vmatpush.msrb.mxu1 %v1487_v13 }
  0x39   :  { %333 = vmatpush.msrb.mxu3 %v1809_v33  ;;  %124 = vmatmul.f32.gmra.mxu0 %v1821_v36 }
  0x3a   :  { %354 = vmatpush.msrb.mxu0 %v1835_v43  ;;  %197 = vmatmul.f32.vlgmr.msra.gmra.mxu2 %v1601_v41  ;;  %v1934_v41 = vld [vmem:[%s2702_s0 + $0x30] sm:$0xff] }
  0x3b   :  { %334 = vmatpush.msrb.mxu3 %v1830_v39  ;;  %433 = vmatpush.msrb.mxu2 %v1614_v44 }
  0x3c   :  { %355 = vmatpush.msrb.mxu0 %v1852_v50  ;;  %420 = vmatpush.msrb.mxu1 %v1496_v15 }
  0x3d   :  { %335 = vmatpush.msrb.mxu3 %v1847_v47  ;;  %434 = vmatpush.msrb.mxu2 %v1633_v48 }
  0x3e   :  { %356 = vmatpush.msrb.mxu0 %v1867_v55  ;;  %421 = vmatpush.msrb.mxu1 %v1511_v19 }
  0x3f   :  { %336 = vmatpush.msrb.mxu3 %v1862_v54  ;;  %435 = vmatpush.msrb.mxu2 %v1651_v52 }
  0x40   :  { %357 = vmatpush.msrb.mxu0 %v1883_v63  ;;  %422 = vmatpush.msrb.mxu1 %v1523_v22 }
  0x41   :  { %337 = vmatpush.msrb.mxu3 %v1878_v62  ;;  %127 = vmatmul.f32.gmra.mxu0 %v1890_v4 }
  0x42   :  { %338 = vmatmul.f32.vlgmr.msrb.gmra.mxu3 %v1606_v42  ;;  %524 = vmatpush.msra.mxu0 %v1434_v1 }
  0x43   :  { %453 = vmatpush.msra.mxu3 %v1619_v45  ;;  %165 = vmatmul.f32.gmra.mxu1 %v1821_v36 }
  0x44   :  { %436 = vmatpush.msrb.mxu2 %v1669_v56  ;;  %423 = vmatpush.msrb.mxu1 %v1535_v25 }
  0x45   :  { %454 = vmatpush.msra.mxu3 %v1638_v49  ;;  %200 = vmatmul.f32.gmra.mxu2 %v1680_v58  ;;  %v1955_v58 = vld [vmem:[%s2702_s0 + $0x38] sm:$0xff] }
  0x46   :  { %437 = vmatpush.msrb.mxu2 %v1689_v60  ;;  %424 = vmatpush.msrb.mxu1 %v1547_v28 }
  0x47   :  { %455 = vmatpush.msra.mxu3 %v1656_v53  ;;  %525 = vmatpush.msra.mxu0 %v1443_v3 }
  0x48   :  { %438 = vmatpush.msrb.mxu2 %v1708_v0  ;;  %425 = vmatpush.msrb.mxu1 %v1559_v31 }
  0x49   :  { %130 = vmatmul.f32.gmra.mxu0 %v1913_v14  ;;  %456 = vmatpush.msra.mxu3 %v1674_v57 }
  0x4a   :  { %439 = vmatpush.msrb.mxu2 %v1726_v8  ;;  %426 = vmatpush.msrb.mxu1 %v1571_v34 }
  0x4b   :  { %457 = vmatpush.msra.mxu3 %v1694_v61  ;;  %168 = vmatmul.f32.gmra.mxu1 %v1890_v4 }
  0x4c   :  { %440 = vmatpush.msrb.mxu2 %v1744_v16  ;;  %427 = vmatpush.msrb.mxu1 %v1583_v37 }
  0x4d   :  { %458 = vmatpush.msra.mxu3 %v1713_v2  ;;  %203 = vmatmul.f32.gmra.mxu2 %v1755_v18 }
  0x4e   :  { %441 = vmatpush.msrb.mxu2 %v1761_v20  ;;  %428 = vmatpush.msrb.mxu1 %v1595_v40 }
  0x4f   :  { %459 = vmatpush.msra.mxu3 %v1731_v10  ;;  %526 = vmatpush.msra.mxu0 %v1451_v5 }
  0x50   :  { %544 = vmatpush.msra.mxu1 %v1614_v44  ;;  %442 = vmatpush.msrb.mxu2 %v1777_v24 }
  0x51   :  { %133 = vmatmul.f32.gmra.mxu0 %v1934_v41  ;;  %460 = vmatpush.msra.mxu3 %v1749_v17 }
  0x52   :  { %443 = vmatpush.msrb.mxu2 %v1793_v29  ;;  %545 = vmatpush.msra.mxu1 %v1633_v48 }
  0x53   :  { %461 = vmatpush.msra.mxu3 %v1766_v21  ;;  %171 = vmatmul.f32.gmra.mxu1 %v1913_v14 }
  0x54   :  { %444 = vmatpush.msrb.mxu2 %v1809_v33  ;;  %546 = vmatpush.msra.mxu1 %v1651_v52 }
  0x55   :  { %462 = vmatpush.msra.mxu3 %v1783_v26  ;;  %206 = vmatmul.f32.gmra.mxu2 %v1821_v36 }
  0x56   :  { %445 = vmatpush.msrb.mxu2 %v1830_v39  ;;  %527 = vmatpush.msra.mxu0 %v1460_v7 }
  0x57   :  { %463 = vmatpush.msra.mxu3 %v1798_v30  ;;  %547 = vmatpush.msra.mxu1 %v1669_v56 }
  0x58   :  { %446 = vmatpush.msrb.mxu2 %v1847_v47  ;;  %528 = vmatpush.msra.mxu0 %v1469_v9 }
  0x59   :  { %136 = vmatmul.f32.gmra.mxu0 %v1955_v58  ;;  %464 = vmatpush.msra.mxu3 %v1814_v35 }
  0x5a   :  { %447 = vmatpush.msrb.mxu2 %v1862_v54  ;;  %548 = vmatpush.msra.mxu1 %v1689_v60 }
  0x5b   :  { %465 = vmatpush.msra.mxu3 %v1835_v43  ;;  %174 = vmatmul.f32.gmra.mxu1 %v1934_v41 }
  0x5c   :  { %529 = vmatpush.msra.mxu0 %v1478_v11  ;;  %448 = vmatpush.msrb.mxu2 %v1878_v62 }
  0x5d   :  { %466 = vmatpush.msra.mxu3 %v1852_v50  ;;  %549 = vmatpush.msra.mxu1 %v1708_v0 }
  0x5e   :  { %209 = vmatmul.f32.gmra.mxu2 %v1890_v4  ;;  %530 = vmatpush.msra.mxu0 %v1487_v13 }
  0x5f   :  { %467 = vmatpush.msra.mxu3 %v1867_v55  ;;  %564 = vmatpush.msra.mxu2 %v1619_v45 }
  0x60   :  { %550 = vmatpush.msra.mxu1 %v1726_v8  ;;  %531 = vmatpush.msra.mxu0 %v1496_v15 }
  0x61   :  { %358 = vmatmul.f32.vlgmr.msrb.gmra.mxu0 %v1606_v42  ;;  %468 = vmatpush.msra.mxu3 %v1883_v63 }
  0x62   :  { %565 = vmatpush.msra.mxu2 %v1638_v49  ;;  %551 = vmatpush.msra.mxu1 %v1744_v16 }
  0x63   :  { %635 = vmatpush.msrb.mxu3 %v1434_v1  ;;  %532 = vmatpush.msra.mxu0 %v1511_v19 }
  0x64   :  { %566 = vmatpush.msra.mxu2 %v1656_v53  ;;  %552 = vmatpush.msra.mxu1 %v1761_v20 }
  0x65   :  { %636 = vmatpush.msrb.mxu3 %v1443_v3  ;;  %177 = vmatmul.f32.gmra.mxu1 %v1955_v58 }
  0x66   :  { %533 = vmatpush.msra.mxu0 %v1523_v22  ;;  %567 = vmatpush.msra.mxu2 %v1674_v57 }
  0x67   :  { %553 = vmatpush.msra.mxu1 %v1777_v24  ;;  %212 = vmatmul.f32.gmra.mxu2 %v1913_v14 }
  0x68   :  { %534 = vmatpush.msra.mxu0 %v1535_v25  ;;  %568 = vmatpush.msra.mxu2 %v1694_v61 }
  0x69   :  { %554 = vmatpush.msra.mxu1 %v1793_v29  ;;  %637 = vmatpush.msrb.mxu3 %v1451_v5 }
  0x6a   :  { %535 = vmatpush.msra.mxu0 %v1547_v28  ;;  %569 = vmatpush.msra.mxu2 %v1713_v2 }
  0x6b   :  { %555 = vmatpush.msra.mxu1 %v1809_v33  ;;  %638 = vmatpush.msrb.mxu3 %v1460_v7 }
  0x6c   :  { %536 = vmatpush.msra.mxu0 %v1559_v31  ;;  %570 = vmatpush.msra.mxu2 %v1731_v10 }
  0x6d   :  { %556 = vmatpush.msra.mxu1 %v1830_v39  ;;  %639 = vmatpush.msrb.mxu3 %v1469_v9 }
  0x6e   :  { %537 = vmatpush.msra.mxu0 %v1571_v34  ;;  %571 = vmatpush.msra.mxu2 %v1749_v17 }
  0x6f   :  { %557 = vmatpush.msra.mxu1 %v1847_v47  ;;  %215 = vmatmul.f32.gmra.mxu2 %v1934_v41 }
  0x70   :  { %538 = vmatpush.msra.mxu0 %v1583_v37  ;;  %572 = vmatpush.msra.mxu2 %v1766_v21 }
  0x71   :  { %558 = vmatpush.msra.mxu1 %v1862_v54  ;;  %640 = vmatpush.msrb.mxu3 %v1478_v11 }
  0x72   :  { %539 = vmatpush.msra.mxu0 %v1595_v40  ;;  %573 = vmatpush.msra.mxu2 %v1783_v26 }
  0x73   :  { %559 = vmatpush.msra.mxu1 %v1878_v62  ;;  %641 = vmatpush.msrb.mxu3 %v1487_v13 }
  0x74   :  { %655 = vmatpush.msrb.mxu0 %v1614_v44  ;;  %574 = vmatpush.msra.mxu2 %v1798_v30 }
  0x75   :  { %642 = vmatpush.msrb.mxu3 %v1496_v15 }
  0x76   :  { %656 = vmatpush.msrb.mxu0 %v1633_v48  ;;  %575 = vmatpush.msra.mxu2 %v1814_v35 }
  0x77   :  { %218 = vmatmul.f32.gmra.mxu2 %v1955_v58  ;;  %643 = vmatpush.msrb.mxu3 %v1511_v19  ;;  %v2069_v58 = vperm.slane %v91_v23, 1 }
  0x78   :  { %657 = vmatpush.msrb.mxu0 %v1651_v52  ;;  %576 = vmatpush.msra.mxu2 %v1835_v43 }
  0x79   :  { %644 = vmatpush.msrb.mxu3 %v1523_v22  ;;  %2750 = vst [vmem:[#allocation16_spill] sm:$0xff] %v2069_v58 }
  0x7a   :  { %658 = vmatpush.msrb.mxu0 %v1669_v56  ;;  %577 = vmatpush.msra.mxu2 %v1852_v50 }
  0x7b   :  { %645 = vmatpush.msrb.mxu3 %v1535_v25 }
  0x7c   :  { %659 = vmatpush.msrb.mxu0 %v1689_v60  ;;  %578 = vmatpush.msra.mxu2 %v1867_v55 }
  0x7d   :  { %646 = vmatpush.msrb.mxu3 %v1547_v28 }
  0x7e   :  { %660 = vmatpush.msrb.mxu0 %v1708_v0  ;;  %579 = vmatpush.msra.mxu2 %v1883_v63 }
  0x7f   :  { %647 = vmatpush.msrb.mxu3 %v1559_v31 }
  0x80   :  { %661 = vmatpush.msrb.mxu0 %v1726_v8 }
  0x81   :  { %648 = vmatpush.msrb.mxu3 %v1571_v34 }
  0x82   :  { %662 = vmatpush.msrb.mxu0 %v1744_v16 }
  0x83   :  { %649 = vmatpush.msrb.mxu3 %v1583_v37 }
  0x84   :  { %663 = vmatpush.msrb.mxu0 %v1761_v20 }
  0x85   :  { %650 = vmatpush.msrb.mxu3 %v1595_v40 }
  0x86   :  { %664 = vmatpush.msrb.mxu0 %v1777_v24 }
  0x88   :  { %665 = vmatpush.msrb.mxu0 %v1793_v29 }
  0x8a   :  { %666 = vmatpush.msrb.mxu0 %v1809_v33 }
  0x8c   :  { %667 = vmatpush.msrb.mxu0 %v1830_v39 }
  0x8e   :  { %668 = vmatpush.msrb.mxu0 %v1847_v47 }
  0x90   :  { %669 = vmatpush.msrb.mxu0 %v1862_v54 }
  0x92   :  { %670 = vmatpush.msrb.mxu0 %v1878_v62 }
  0x9e   :  { %v116_v18 = vpop.f32.mrf.mxu0 }
  0x9f   :  { %v117_v46 = vadd.f32 %v116_v18, %v93_v27 }
  0xa3   :  { %v157_v40 = vpop.f32.mrf.mxu1 }
  0xa5   :  { %v319_v38 = vpop.f32.mrf.mxu3 }
  0xa6   :  { %v119_v32 = vpop.f32.mrf.mxu0  ;;  %v362_v59 = vadd.f32 %v319_v38, %v117_v46 }
  0xa7   :  { %v2063_v36 = vadd.f32 %v119_v32, %v93_v27 }
  0xa8   :  { %v1236_v6 = vmul.f32 -1.442695, %v362_v59 }
  0xa9   :  { %2747 = vst [vmem:[#allocation13_spill] sm:$0xff] %v2063_v36  ;;  %v158_v36 = vadd.f32 %v157_v40, %v2069_v58 }
  0xaa   :  { %1254 = vpow2.f32 %v1236_v6 }
  0xae   :  { %v122_v51 = vpop.f32.mrf.mxu0 }
  0xaf   :  { %v2065_v4 = vadd.f32 %v122_v51, %v93_v27 }
  0xb0   :  { %v1255_v41 = vpop.eup %1254 }
  0xb1   :  { %2748 = vst [vmem:[#allocation14_spill] sm:$0xff] %v2065_v4  ;;  %v366_v32 = vadd.f32 1.0, %v1255_v41  ;;  %v2078_v41 = vperm.slane %v91_v23, 2 }
  0xb3   :  { %1256 = vrcp.f32 %v366_v32  ;;  %2754 = vst [vmem:[#allocation20_spill] sm:$0xff] %v2078_v41  ;;  %v378_v55 = vand.u32 2147483648, %v366_v32  ;;  %vm372_vm1 = vweird.f32 %v366_v32  ;;  %v376_v23 = vand.u32 2147483647, %v366_v32 }
  0xb5   :  { %vm377_vm3 = vcmp.eq.f32.partialorder %v376_v23, 8.507059e+37 }
  0xb6   :  { %v125_v12 = vpop.f32.mrf.mxu0 }
  0xb7   :  { %v2067_v14 = vadd.f32 %v125_v12, %v93_v27 }
  0xb9   :  { %2749 = vst [vmem:[#allocation15_spill] sm:$0xff] %v2067_v14  ;;  %v1257_v6 = vpop.eup %1256 }
  0xba   :  { %v368_v14 = vmul.f32 %v1257_v6, %v366_v32  ;;  %vm373_vm0 = vweird.f32 %v1257_v6 }
  0xbb   :  { %vm374_vm2 = vmor %vm372_vm1, %vm373_vm0 }
  0xbd   :  { %v198_v12 = vpop.f32.mrf.mxu2 }
  0xbe   :  { %v128_v62 = vpop.f32.mrf.mxu0 }
  0xbf   :  { %v2071_v63 = vadd.f32 %v128_v62, %v93_v27 }
  0xc1   :  { %2751 = vst [vmem:[#allocation17_spill] sm:$0xff] %v2071_v63  ;;  %v369_v63 = vsub.f32 1.0, %v368_v14 }
  0xc5   :  { %v339_v18 = vpop.f32.mrf.mxu3 }
  0xc6   :  { %v382_v38 = vadd.f32 %v339_v18, %v158_v36  ;;  %v131_v46 = vpop.f32.mrf.mxu0  ;;  %v370_v18 = vmul.f32 %v1257_v6, %v369_v63 }
  0xc7   :  { %v2074_v59 = vadd.f32 %v131_v46, %v93_v27 }
  0xc8   :  { %v1237_v51 = vmul.f32 -1.442695, %v382_v38  ;;  %v201_v40 = vpop.f32.mrf.mxu2 }
  0xc9   :  { %2752 = vst [vmem:[#allocation18_spill] sm:$0xff] %v2074_v59  ;;  %v2081_v36 = vadd.f32 %v201_v40, %v2078_v41  ;;  %v371_v59 = vadd.f32 %v1257_v6, %v370_v18 }
  0xca   :  { %1258 = vpow2.f32 %v1237_v51 }
  0xcb   :  { %2755 = vst [vmem:[#allocation21_spill] sm:$0xff] %v2081_v36  ;;  %v375_v63 = vsel %vm374_vm2, %v1257_v6, %v371_v59 }
  0xce   :  { %v134_v4 = vpop.f32.mrf.mxu0 }
  0xcf   :  { %v2076_v37 = vadd.f32 %v134_v4, %v93_v27 }
  0xd0   :  { %v1259_v54 = vpop.eup %1258  ;;  %v204_v4 = vpop.f32.mrf.mxu2 }
  0xd1   :  { %2753 = vst [vmem:[#allocation19_spill] sm:$0xff] %v2076_v37  ;;  %v386_v62 = vadd.f32 1.0, %v1259_v54  ;;  %v2088_v54 = vld [vmem:[%s2704_s4] ss:$0 sm:$0xff]  ;;  %v2091_v14 = vadd.f32 %v204_v4, %v2078_v41 }
  0xd3   :  { %1260 = vrcp.f32 %v386_v62  ;;  %vm392_vm4 = vweird.f32 %v386_v62  ;;  %v398_v59 = vand.u32 2147483648, %v386_v62  ;;  %v396_v6 = vand.u32 2147483647, %v386_v62 }
  0xd5   :  { %vm397_vm7 = vcmp.eq.f32.partialorder %v396_v6, 8.507059e+37 }
  0xd6   :  { %v137_v38 = vpop.f32.mrf.mxu0 }
  0xd7   :  { %v2083_v46 = vadd.f32 %v137_v38, %v93_v27  ;;  %v379_v38 = vor.u32 1.1754944e-38, %v378_v55  ;;  %v399_v55 = vor.u32 1.1754944e-38, %v398_v59  ;;  %v2774_v59 = vld [vmem:[#allocation13_spill] sm:$0xff] }
  0xd8   :  { %v207_v50 = vpop.f32.mrf.mxu2 }
  0xd9   :  { %2756 = vst [vmem:[#allocation22_spill] sm:$0xff] %v2083_v46  ;;  %v1261_v51 = vpop.eup %1260  ;;  %v199_v46 = vadd.f32 %v198_v12, %v2078_v41  ;;  %v380_v37 = vsel %vm377_vm3, %v379_v38, %v375_v63  ;;  %v2096_v32 = vadd.f32 %v207_v50, %v2078_v41 }
  0xda   :  { %v388_v58 = vmul.f32 %v1261_v51, %v386_v62  ;;  %vm393_vm5 = vweird.f32 %v1261_v51 }
  0xdb   :  { %vm394_vm6 = vmor %vm392_vm4, %vm393_vm5 }
  0xdc   :  { %v389_v27 = vsub.f32 1.0, %v388_v58 }
  0xde   :  { %v359_v40 = vpop.f32.mrf.mxu0  ;;  %v390_v47 = vmul.f32 %v1261_v51, %v389_v27 }
  0xdf   :  { %v402_v18 = vadd.f32 %v2088_v54, %v359_v40 }
  0xe0   :  { %v391_v58 = vadd.f32 %v1261_v51, %v390_v47 }
  0xe1   :  { %v403_v36 = vmul.f32 %v402_v18, %v380_v37  ;;  %v210_v12 = vpop.f32.mrf.mxu2 }
  0xe2   :  { %v395_v23 = vsel %vm394_vm6, %v1261_v51, %v391_v58 }
  0xe3   :  { %v404_v34 = vadd.f32 %v403_v36, %v199_v46  ;;  %v2100_v36 = vadd.f32 %v210_v12, %v2078_v41  ;;  %v400_v46 = vsel %vm397_vm7, %v399_v55, %v395_v23  ;;  %v2775_v55 = vld [vmem:[#allocation16_spill] sm:$0xff] }
  0xe5   :  { %1262 = vtanh.f32 %v404_v34  ;;  %2757 = vst [vmem:[#allocation23_spill] sm:$0xff] %v2100_v36 }
  0xea   :  { %v213_v34 = vpop.f32.mrf.mxu2 }
  0xeb   :  { %v1263_v4 = vpop.eup %1262  ;;  %v2109_v47 = vadd.f32 %v213_v34, %v2078_v41 }
  0xec   :  { %v406_v37 = vsub.f32 %v1606_v42, %v1263_v4 }
  0xed   :  { %2758 = vst [vmem:[#allocation24_spill] sm:$0xff] %v2109_v47 }
  0xee   :  { %v407_v63 = vmul.f32 %v406_v37, %v400_v46 }
  0xf0   :  { %v2102_v27 = vadd.f32 %v1263_v4, %v407_v63 }
  0xf2   :  { %429 = vmatmul.f32.vlgmr.msrb.gmra.mxu1 %v2102_v27  ;;  %449 = vmatmul.f32.vlgmr.msrb.gmra.mxu2 %v2102_v27 }
  0xf3   :  { %469 = vmatmul.f32.vlgmr.msra.gmra.mxu3 %v2102_v27  ;;  %675 = vmatpush.msrb.mxu1 %v1619_v45 }
  0xf4   :  { %746 = vmatpush.msrb.mxu2 %v1434_v1  ;;  %766 = vmatpush.msra.mxu3 %v1614_v44  ;;  %v216_v1 = vpop.f32.mrf.mxu2 }
  0xf5   :  { %676 = vmatpush.msrb.mxu1 %v1638_v49  ;;  %v2124_v42 = vadd.f32 %v216_v1, %v2078_v41 }
  0xf6   :  { %747 = vmatpush.msrb.mxu2 %v1443_v3  ;;  %767 = vmatpush.msra.mxu3 %v1633_v48  ;;  %v2760_v3 = vld [vmem:[#allocation8_spill] sm:$0xff] }
  0xf7   :  { %677 = vmatpush.msrb.mxu1 %v1656_v53  ;;  %2759 = vst [vmem:[#allocation25_spill] sm:$0xff] %v2124_v42 }
  0xf8   :  { %748 = vmatpush.msrb.mxu2 %v1451_v5  ;;  %768 = vmatpush.msra.mxu3 %v1651_v52  ;;  %v2761_v5 = vld [vmem:[#allocation4_spill] sm:$0xff] }
  0xf9   :  { %678 = vmatpush.msrb.mxu1 %v1674_v57 }
  0xfa   :  { %749 = vmatpush.msrb.mxu2 %v1460_v7  ;;  %769 = vmatpush.msra.mxu3 %v1669_v56  ;;  %v2762_v7 = vld [vmem:[#allocation7_spill] sm:$0xff] }
  0xfb   :  { %679 = vmatpush.msrb.mxu1 %v1694_v61 }
  0xfc   :  { %750 = vmatpush.msrb.mxu2 %v1469_v9  ;;  %770 = vmatpush.msra.mxu3 %v1689_v60  ;;  %v2763_v9 = vld [vmem:[#allocation10_spill] sm:$0xff]  ;;  %v2173_v38 = vpop.f32.mrf.mxu2 }
  0xfd   :  { %680 = vmatpush.msrb.mxu1 %v1713_v2 }
  0xfe   :  { %751 = vmatpush.msrb.mxu2 %v1478_v11  ;;  %771 = vmatpush.msra.mxu3 %v1708_v0  ;;  %v2764_v11 = vld [vmem:[#allocation5_spill] sm:$0xff] }
  0xff   :  { %681 = vmatpush.msrb.mxu1 %v1731_v10  ;;  %2773 = vst [vmem:[#allocation5_spill] sm:$0xff] %v2173_v38 }
 0x100   :  { %752 = vmatpush.msrb.mxu2 %v1487_v13  ;;  %772 = vmatpush.msra.mxu3 %v1726_v8  ;;  %v2765_v13 = vld [vmem:[#allocation9_spill] sm:$0xff] }
 0x101   :  { %682 = vmatpush.msrb.mxu1 %v1749_v17 }
 0x102   :  { %753 = vmatpush.msrb.mxu2 %v1496_v15  ;;  %773 = vmatpush.msra.mxu3 %v1744_v16  ;;  %v2766_v15 = vld [vmem:[#allocation12_spill] sm:$0xff] }
 0x103   :  { %683 = vmatpush.msrb.mxu1 %v1766_v21 }
 0x104   :  { %754 = vmatpush.msrb.mxu2 %v1511_v19  ;;  %774 = vmatpush.msra.mxu3 %v1761_v20  ;;  %v2767_v19 = vld [vmem:[#allocation6_spill] sm:$0xff] }
 0x105   :  { %684 = vmatpush.msrb.mxu1 %v1783_v26 }
 0x106   :  { %755 = vmatpush.msrb.mxu2 %v1523_v22  ;;  %775 = vmatpush.msra.mxu3 %v1777_v24  ;;  %v2768_v22 = vld [vmem:[#allocation11_spill] sm:$0xff] }
 0x107   :  { %685 = vmatpush.msrb.mxu1 %v1798_v30 }
 0x108   :  { %756 = vmatpush.msrb.mxu2 %v1535_v25  ;;  %776 = vmatpush.msra.mxu3 %v1793_v29  ;;  %v160_v25 = vpop.f32.mrf.mxu1 }
 0x109   :  { %686 = vmatpush.msrb.mxu1 %v1814_v35  ;;  %v161_v23 = vadd.f32 %v160_v25, %v2775_v55 }
 0x10a   :  { %757 = vmatpush.msrb.mxu2 %v1547_v28  ;;  %777 = vmatpush.msra.mxu3 %v1809_v33 }
 0x10b   :  { %687 = vmatpush.msrb.mxu1 %v1835_v43 }
 0x10c   :  { %758 = vmatpush.msrb.mxu2 %v1559_v31  ;;  %778 = vmatpush.msra.mxu3 %v1830_v39 }
 0x10d   :  { %688 = vmatpush.msrb.mxu1 %v2760_v3 }
 0x10e   :  { %759 = vmatpush.msrb.mxu2 %v2761_v5  ;;  %779 = vmatpush.msra.mxu3 %v2762_v7 }
 0x10f   :  { %689 = vmatpush.msrb.mxu1 %v2763_v9 }
 0x110   :  { %760 = vmatpush.msrb.mxu2 %v2764_v11  ;;  %780 = vmatpush.msra.mxu3 %v2765_v13  ;;  %v2161_v28 = vpop.f32.mrf.mxu1 }
 0x111   :  { %690 = vmatpush.msrb.mxu1 %v2766_v15 }
 0x112   :  { %761 = vmatpush.msrb.mxu2 %v2767_v19  ;;  %781 = vmatpush.msra.mxu3 %v2768_v22 }
 0x118   :  { %v2163_v31 = vpop.f32.mrf.mxu1 }
 0x120   :  { %v2165_v50 = vpop.f32.mrf.mxu1 }
 0x121   :  { %2769 = vst [vmem:[#allocation8_spill] sm:$0xff] %v2165_v50 }
 0x128   :  { %v2167_v62 = vpop.f32.mrf.mxu1 }
 0x129   :  { %2770 = vst [vmem:[#allocation4_spill] sm:$0xff] %v2167_v62 }
 0x130   :  { %v2169_v51 = vpop.f32.mrf.mxu1 }
 0x131   :  { %2771 = vst [vmem:[#allocation7_spill] sm:$0xff] %v2169_v51 }
 0x138   :  { %v2171_v40 = vpop.f32.mrf.mxu1 }
 0x139   :  { %2772 = vst [vmem:[#allocation10_spill] sm:$0xff] %v2171_v40 }
 0x16f   :  { %v430_v18 = vpop.f32.mrf.mxu1 }
 0x170   :  { %v473_v58 = vadd.f32 %v430_v18, %v2774_v59 }
 0x172   :  { %v1238_v6 = vmul.f32 -1.442695, %v473_v58 }
 0x174   :  { %1264 = vpow2.f32 %v1238_v6 }
 0x175   :  { %v450_v4 = vpop.f32.mrf.mxu2 }
 0x176   :  { %v493_v12 = vadd.f32 %v450_v4, %v161_v23  ;;  %v470_v25 = vpop.f32.mrf.mxu3 }
 0x178   :  { %v1239_v37 = vmul.f32 -1.442695, %v493_v12 }
 0x17a   :  { %v1265_v46 = vpop.eup %1264  ;;  %1266 = vpow2.f32 %v1239_v37  ;;  %v513_v37 = vadd.f32 %v2088_v54, %v470_v25 }
 0x17b   :  { %v477_v63 = vadd.f32 1.0, %v1265_v46 }
 0x17d   :  { %1268 = vrcp.f32 %v477_v63  ;;  %v489_v38 = vand.u32 2147483648, %v477_v63  ;;  %v487_v18 = vand.u32 2147483647, %v477_v63  ;;  %vm483_vm9 = vweird.f32 %v477_v63 }
 0x17f   :  { %v490_v23 = vor.u32 1.1754944e-38, %v489_v38  ;;  %vm488_vm11 = vcmp.eq.f32.partialorder %v487_v18, 8.507059e+37 }
 0x180   :  { %v1267_v34 = vpop.eup %1266 }
 0x181   :  { %v497_v1 = vadd.f32 1.0, %v1267_v34 }
 0x183   :  { %v1269_v5 = vpop.eup %1268  ;;  %1270 = vrcp.f32 %v497_v1  ;;  %v509_v51 = vand.u32 2147483648, %v497_v1  ;;  %vm503_vm13 = vweird.f32 %v497_v1  ;;  %v507_v47 = vand.u32 2147483647, %v497_v1 }
 0x184   :  { %v479_v11 = vmul.f32 %v1269_v5, %v477_v63  ;;  %vm484_vm8 = vweird.f32 %v1269_v5 }
 0x185   :  { %vm485_vm10 = vmor %vm483_vm9, %vm484_vm8  ;;  %v510_v38 = vor.u32 1.1754944e-38, %v509_v51  ;;  %vm508_vm15 = vcmp.eq.f32.partialorder %v507_v47, 8.507059e+37 }
 0x186   :  { %v480_v19 = vsub.f32 1.0, %v479_v11  ;;  %v2776_v11 = vld [vmem:[#allocation21_spill] sm:$0xff] }
 0x188   :  { %v481_v41 = vmul.f32 %v1269_v5, %v480_v19 }
 0x189   :  { %v1271_v59 = vpop.eup %1270 }
 0x18a   :  { %v499_v58 = vmul.f32 %v1271_v59, %v497_v1  ;;  %v482_v6 = vadd.f32 %v1269_v5, %v481_v41  ;;  %vm504_vm12 = vweird.f32 %v1271_v59 }
 0x18b   :  { %vm505_vm14 = vmor %vm503_vm13, %vm504_vm12 }
 0x18c   :  { %v500_v4 = vsub.f32 1.0, %v499_v58  ;;  %v486_v12 = vsel %vm485_vm10, %v1269_v5, %v482_v6 }
 0x18d   :  { %v491_v46 = vsel %vm488_vm11, %v490_v23, %v486_v12 }
 0x18e   :  { %v514_v34 = vmul.f32 %v513_v37, %v491_v46  ;;  %v501_v40 = vmul.f32 %v1271_v59, %v500_v4 }
 0x190   :  { %v515_v42 = vadd.f32 %v514_v34, %v2776_v11  ;;  %v502_v19 = vadd.f32 %v1271_v59, %v501_v40 }
 0x192   :  { %1272 = vtanh.f32 %v515_v42  ;;  %v506_v41 = vsel %vm505_vm14, %v1271_v59, %v502_v19  ;;  %v2189_v42 = vld [vmem:[%s2701_s3 + $0x168] sm:$0xff] }
 0x193   :  { %v511_v18 = vsel %vm508_vm15, %v510_v38, %v506_v41 }
 0x198   :  { %v1273_v63 = vpop.eup %1272 }
 0x199   :  { %v517_v5 = vsub.f32 %v2102_v27, %v1273_v63  ;;  %v2197_v27 = vld [vmem:[%s2701_s3 + $0x150] sm:$0xff] }
 0x19b   :  { %v518_v25 = vmul.f32 %v517_v5, %v511_v18 }
 0x19d   :  { %v2180_v58 = vadd.f32 %v1273_v63, %v518_v25 }
 0x19f   :  { %540 = vmatmul.f32.vlgmr.msra.gmra.mxu0 %v2180_v58  ;;  %560 = vmatmul.f32.vlgmr.msra.gmra.mxu1 %v2180_v58 }
 0x1a0   :  { %580 = vmatmul.f32.vlgmr.msra.gmra.mxu2 %v2180_v58  ;;  %786 = vmatpush.msra.mxu0 %v1619_v45  ;;  %v2205_v45 = vld [vmem:[%s2701_s3 + $0x138] sm:$0xff] }
 0x1a1   :  { %857 = vmatpush.msra.mxu1 %v2189_v42  ;;  %877 = vmatpush.msra.mxu2 %v1614_v44  ;;  %v2213_v44 = vld [vmem:[%s2701_s3 + $0x120] sm:$0xff] }
 0x1a2   :  { %787 = vmatpush.msra.mxu0 %v1638_v49  ;;  %v2229_v49 = vld [vmem:[%s2701_s3 + $0xf0] sm:$0xff] }
 0x1a3   :  { %858 = vmatpush.msra.mxu1 %v2197_v27  ;;  %878 = vmatpush.msra.mxu2 %v1633_v48  ;;  %v2221_v48 = vld [vmem:[%s2701_s3 + $0x108] sm:$0xff] }
 0x1a4   :  { %788 = vmatpush.msra.mxu0 %v1656_v53  ;;  %v2245_v53 = vld [vmem:[%s2701_s3 + $0xc0] sm:$0xff] }
 0x1a5   :  { %859 = vmatpush.msra.mxu1 %v2205_v45  ;;  %879 = vmatpush.msra.mxu2 %v1651_v52  ;;  %v2237_v52 = vld [vmem:[%s2701_s3 + $0xd8] sm:$0xff] }
 0x1a6   :  { %789 = vmatpush.msra.mxu0 %v1674_v57  ;;  %v2261_v57 = vld [vmem:[%s2701_s3 + $0x90] sm:$0xff] }
 0x1a7   :  { %860 = vmatpush.msra.mxu1 %v2213_v44  ;;  %880 = vmatpush.msra.mxu2 %v1669_v56  ;;  %v2253_v56 = vld [vmem:[%s2701_s3 + $0xa8] sm:$0xff] }
 0x1a8   :  { %790 = vmatpush.msra.mxu0 %v1694_v61  ;;  %v2277_v61 = vld [vmem:[%s2701_s3 + $0x60] sm:$0xff] }
 0x1a9   :  { %861 = vmatpush.msra.mxu1 %v2221_v48  ;;  %881 = vmatpush.msra.mxu2 %v1689_v60  ;;  %v2269_v60 = vld [vmem:[%s2701_s3 + $0x78] sm:$0xff] }
 0x1aa   :  { %791 = vmatpush.msra.mxu0 %v1713_v2  ;;  %v2293_v2 = vld [vmem:[%s2701_s3 + $0x30] sm:$0xff] }
 0x1ab   :  { %862 = vmatpush.msra.mxu1 %v2229_v49  ;;  %882 = vmatpush.msra.mxu2 %v1708_v0  ;;  %v2285_v0 = vld [vmem:[%s2701_s3 + $0x48] sm:$0xff]  ;;  %2777 = vst [vmem:[#allocation9_spill] sm:$0xff] %v2293_v2 }
 0x1ac   :  { %792 = vmatpush.msra.mxu0 %v1731_v10  ;;  %v2309_v10 = vld [vmem:[%s2701_s3] sm:$0xff] }
 0x1ad   :  { %863 = vmatpush.msra.mxu1 %v2237_v52  ;;  %883 = vmatpush.msra.mxu2 %v1726_v8  ;;  %v2301_v8 = vld [vmem:[%s2701_s3 + $0x18] sm:$0xff]  ;;  %2779 = vst [vmem:[#allocation6_spill] sm:$0xff] %v2309_v10 }
 0x1ae   :  { %793 = vmatpush.msra.mxu0 %v1749_v17  ;;  %2778 = vst [vmem:[#allocation12_spill] sm:$0xff] %v2301_v8 }
 0x1af   :  { %864 = vmatpush.msra.mxu1 %v2245_v53  ;;  %884 = vmatpush.msra.mxu2 %v1744_v16  ;;  %v164_v16 = vadd.f32 %v2161_v28, %v2775_v55 }
 0x1b0   :  { %794 = vmatpush.msra.mxu0 %v1766_v21  ;;  %v2780_v21 = vld [vmem:[#allocation14_spill] sm:$0xff] }
 0x1b1   :  { %865 = vmatpush.msra.mxu1 %v2253_v56  ;;  %885 = vmatpush.msra.mxu2 %v1761_v20 }
 0x1b2   :  { %795 = vmatpush.msra.mxu0 %v1783_v26 }
 0x1b3   :  { %866 = vmatpush.msra.mxu1 %v2261_v57  ;;  %886 = vmatpush.msra.mxu2 %v1777_v24 }
 0x1b4   :  { %796 = vmatpush.msra.mxu0 %v1798_v30 }
 0x1b5   :  { %867 = vmatpush.msra.mxu1 %v2269_v60  ;;  %887 = vmatpush.msra.mxu2 %v1793_v29 }
 0x1b6   :  { %797 = vmatpush.msra.mxu0 %v1814_v35 }
 0x1b7   :  { %868 = vmatpush.msra.mxu1 %v2277_v61  ;;  %888 = vmatpush.msra.mxu2 %v1809_v33 }
 0x1b8   :  { %798 = vmatpush.msra.mxu0 %v1835_v43 }
 0x1b9   :  { %869 = vmatpush.msra.mxu1 %v2285_v0  ;;  %889 = vmatpush.msra.mxu2 %v1830_v39 }
 0x1ba   :  { %799 = vmatpush.msra.mxu0 %v2760_v3 }
 0x1bb   :  { %870 = vmatpush.msra.mxu1 %v2293_v2  ;;  %890 = vmatpush.msra.mxu2 %v2762_v7 }
 0x1bc   :  { %800 = vmatpush.msra.mxu0 %v2763_v9 }
 0x1bd   :  { %871 = vmatpush.msra.mxu1 %v2301_v8  ;;  %891 = vmatpush.msra.mxu2 %v2765_v13 }
 0x1be   :  { %801 = vmatpush.msra.mxu0 %v2766_v15 }
 0x1bf   :  { %872 = vmatpush.msra.mxu1 %v2309_v10  ;;  %892 = vmatpush.msra.mxu2 %v2768_v22 }
 0x21c   :  { %v541_v17 = vpop.f32.mrf.mxu0  ;;  %v561_v20 = vpop.f32.mrf.mxu1 }
 0x21d   :  { %v584_v24 = vadd.f32 %v541_v17, %v2780_v21  ;;  %v604_v26 = vadd.f32 %v561_v20, %v164_v16  ;;  %v2340_v17 = vld [vmem:[%s2701_s3 + $0x160] sm:$0xff]  ;;  %v2347_v20 = vld [vmem:[%s2701_s3 + $0x158] sm:$0xff]  ;;  %v2353_v21 = vld [vmem:[%s2701_s3 + $0x148] sm:$0xff] }
 0x21f   :  { %v1240_v29 = vmul.f32 -1.442695, %v584_v24  ;;  %v1241_v30 = vmul.f32 -1.442695, %v604_v26  ;;  %v2360_v24 = vld [vmem:[%s2701_s3 + $0x140] sm:$0xff]  ;;  %v2366_v26 = vld [vmem:[%s2701_s3 + $0x130] sm:$0xff] }
 0x221   :  { %1274 = vpow2.f32 %v1240_v29  ;;  %v2373_v29 = vld [vmem:[%s2701_s3 + $0x128] sm:$0xff] }
 0x222   :  { %1276 = vpow2.f32 %v1241_v30  ;;  %v2379_v30 = vld [vmem:[%s2701_s3 + $0x118] sm:$0xff] }
 0x223   :  { %v581_v51 = vpop.f32.mrf.mxu2 }
 0x224   :  { %v624_v23 = vadd.f32 %v2088_v54, %v581_v51  ;;  %v2464_v51 = vld [vmem:[%s2701_s3 + $0x80] sm:$0xff] }
 0x227   :  { %v1275_v33 = vpop.eup %1274 }
 0x228   :  { %v1277_v35 = vpop.eup %1276  ;;  %v588_v39 = vadd.f32 1.0, %v1275_v33  ;;  %v2386_v33 = vld [vmem:[%s2701_s3 + $0x110] sm:$0xff] }
 0x229   :  { %v608_v43 = vadd.f32 1.0, %v1277_v35  ;;  %v2392_v35 = vld [vmem:[%s2701_s3 + $0x100] sm:$0xff] }
 0x22a   :  { %1278 = vrcp.f32 %v588_v39  ;;  %v600_v15 = vand.u32 2147483648, %v588_v39  ;;  %v598_v28 = vand.u32 2147483647, %v588_v39  ;;  %vm594_vm1 = vweird.f32 %v588_v39 }
 0x22b   :  { %1280 = vrcp.f32 %v608_v43  ;;  %v620_v11 = vand.u32 2147483648, %v608_v43  ;;  %vm614_vm5 = vweird.f32 %v608_v43  ;;  %v618_v19 = vand.u32 2147483647, %v608_v43 }
 0x22c   :  { %v601_v59 = vor.u32 1.1754944e-38, %v600_v15  ;;  %vm599_vm3 = vcmp.eq.f32.partialorder %v598_v28, 8.507059e+37  ;;  %v2444_v15 = vld [vmem:[%s2701_s3 + $0xa0] sm:$0xff]  ;;  %v2457_v28 = vld [vmem:[%s2701_s3 + $0x88] sm:$0xff] }
 0x22d   :  { %v621_v38 = vor.u32 1.1754944e-38, %v620_v11  ;;  %vm619_vm7 = vcmp.eq.f32.partialorder %v618_v19, 8.507059e+37  ;;  %v167_v11 = vadd.f32 %v2163_v31, %v2775_v55 }
 0x230   :  { %v1279_v47 = vpop.eup %1278 }
 0x231   :  { %v1281_v3 = vpop.eup %1280  ;;  %v590_v7 = vmul.f32 %v1279_v47, %v588_v39  ;;  %vm595_vm0 = vweird.f32 %v1279_v47  ;;  %v2399_v39 = vld [vmem:[%s2701_s3 + $0xf8] sm:$0xff] }
 0x232   :  { %v610_v13 = vmul.f32 %v1281_v3, %v608_v43  ;;  %vm596_vm2 = vmor %vm594_vm1, %vm595_vm0  ;;  %vm615_vm4 = vweird.f32 %v1281_v3  ;;  %v2405_v43 = vld [vmem:[%s2701_s3 + $0xe8] sm:$0xff] }
 0x233   :  { %v591_v9 = vsub.f32 1.0, %v590_v7  ;;  %vm616_vm6 = vmor %vm614_vm5, %vm615_vm4  ;;  %v2425_v7 = vld [vmem:[%s2701_s3 + $0xc8] sm:$0xff] }
 0x234   :  { %v611_v1 = vsub.f32 1.0, %v610_v13  ;;  %v2438_v13 = vld [vmem:[%s2701_s3 + $0xb0] sm:$0xff] }
 0x235   :  { %v592_v22 = vmul.f32 %v1279_v47, %v591_v9  ;;  %v2431_v9 = vld [vmem:[%s2701_s3 + $0xb8] sm:$0xff] }
 0x236   :  { %v612_v37 = vmul.f32 %v1281_v3, %v611_v1  ;;  %v2477_v1 = vld [vmem:[%s2701_s3 + $0x68] sm:$0xff] }
 0x237   :  { %v593_v40 = vadd.f32 %v1279_v47, %v592_v22  ;;  %v2451_v22 = vld [vmem:[%s2701_s3 + $0x98] sm:$0xff] }
 0x238   :  { %v613_v34 = vadd.f32 %v1281_v3, %v612_v37  ;;  %v2516_v37 = vld [vmem:[%s2701_s3 + $0x20] sm:$0xff] }
 0x239   :  { %v597_v6 = vsel %vm596_vm2, %v1279_v47, %v593_v40  ;;  %v2412_v47 = vld [vmem:[%s2701_s3 + $0xe0] sm:$0xff]  ;;  %v2470_v40 = vld [vmem:[%s2701_s3 + $0x70] sm:$0xff]  ;;  %2783 = vst [vmem:[#allocation21_spill] sm:$0xff] %v2516_v37 }
 0x23a   :  { %v602_v4 = vsel %vm599_vm3, %v601_v59, %v597_v6  ;;  %v617_v41 = vsel %vm616_vm6, %v1281_v3, %v613_v34  ;;  %v2418_v3 = vld [vmem:[%s2701_s3 + $0xd0] sm:$0xff]  ;;  %v2483_v59 = vld [vmem:[%s2701_s3 + $0x58] sm:$0xff]  ;;  %v2529_v34 = vld [vmem:[%s2701_s3 + $0x8] sm:$0xff] }
 0x23b   :  { %v625_v12 = vmul.f32 %v624_v23, %v602_v4  ;;  %v622_v18 = vsel %vm619_vm7, %v621_v38, %v617_v41  ;;  %v2490_v6 = vld [vmem:[%s2701_s3 + $0x50] sm:$0xff]  ;;  %v2496_v23 = vld [vmem:[%s2701_s3 + $0x40] sm:$0xff]  ;;  %v2503_v4 = vld [vmem:[%s2701_s3 + $0x38] sm:$0xff]  ;;  %2785 = vst [vmem:[#allocation26_spill] sm:$0xff] %v2529_v34 }
 0x23c   :  { %2781 = vst [vmem:[#allocation11_spill] sm:$0xff] %v2503_v4 }
 0x23d   :  { %v626_v46 = vadd.f32 %v625_v12, %v2091_v14  ;;  %v2327_v14 = vld [vmem:[%s2701_s3 + $0x178] sm:$0xff]  ;;  %v2509_v12 = vld [vmem:[%s2701_s3 + $0x28] sm:$0xff] }
 0x23e   :  { %2782 = vst [vmem:[#allocation13_spill] sm:$0xff] %v2509_v12 }
 0x23f   :  { %1282 = vtanh.f32 %v626_v46  ;;  %v2522_v46 = vld [vmem:[%s2701_s3 + $0x10] sm:$0xff] }
 0x240   :  { %2784 = vst [vmem:[#allocation14_spill] sm:$0xff] %v2522_v46 }
 0x245   :  { %v1283_v63 = vpop.eup %1282 }
 0x246   :  { %v628_v5 = vsub.f32 %v2180_v58, %v1283_v63  ;;  %v2334_v58 = vld [vmem:[%s2701_s3 + $0x170] sm:$0xff] }
 0x248   :  { %v629_v25 = vmul.f32 %v628_v5, %v622_v18  ;;  %v2786_v5 = vld [vmem:[#allocation15_spill] sm:$0xff] }
 0x24a   :  { %v2319_v16 = vadd.f32 %v1283_v63, %v629_v25 }
 0x24c   :  { %651 = vmatmul.f32.vlgmr.msrb.gmra.mxu3 %v2319_v16  ;;  %671 = vmatmul.f32.vlgmr.msrb.gmra.mxu0 %v2319_v16 }
 0x24d   :  { %691 = vmatmul.f32.vlgmr.msrb.gmra.mxu1 %v2319_v16  ;;  %897 = vmatpush.msrb.mxu3 %v2327_v14 }
 0x24e   :  { %968 = vmatpush.msrb.mxu0 %v2189_v42  ;;  %988 = vmatpush.msrb.mxu1 %v2334_v58 }
 0x24f   :  { %898 = vmatpush.msrb.mxu3 %v2340_v17 }
 0x250   :  { %969 = vmatpush.msrb.mxu0 %v2197_v27  ;;  %989 = vmatpush.msrb.mxu1 %v2347_v20 }
 0x251   :  { %899 = vmatpush.msrb.mxu3 %v2353_v21 }
 0x252   :  { %970 = vmatpush.msrb.mxu0 %v2205_v45  ;;  %990 = vmatpush.msrb.mxu1 %v2360_v24 }
 0x253   :  { %900 = vmatpush.msrb.mxu3 %v2366_v26 }
 0x254   :  { %971 = vmatpush.msrb.mxu0 %v2213_v44  ;;  %991 = vmatpush.msrb.mxu1 %v2373_v29 }
 0x255   :  { %901 = vmatpush.msrb.mxu3 %v2379_v30 }
 0x256   :  { %972 = vmatpush.msrb.mxu0 %v2221_v48  ;;  %992 = vmatpush.msrb.mxu1 %v2386_v33 }
 0x257   :  { %902 = vmatpush.msrb.mxu3 %v2392_v35 }
 0x258   :  { %973 = vmatpush.msrb.mxu0 %v2229_v49  ;;  %993 = vmatpush.msrb.mxu1 %v2399_v39 }
 0x259   :  { %903 = vmatpush.msrb.mxu3 %v2405_v43 }
 0x25a   :  { %974 = vmatpush.msrb.mxu0 %v2237_v52  ;;  %994 = vmatpush.msrb.mxu1 %v2412_v47 }
 0x25b   :  { %904 = vmatpush.msrb.mxu3 %v2418_v3 }
 0x25c   :  { %975 = vmatpush.msrb.mxu0 %v2245_v53  ;;  %995 = vmatpush.msrb.mxu1 %v2425_v7 }
 0x25d   :  { %905 = vmatpush.msrb.mxu3 %v2431_v9 }
 0x25e   :  { %976 = vmatpush.msrb.mxu0 %v2253_v56  ;;  %996 = vmatpush.msrb.mxu1 %v2438_v13 }
 0x25f   :  { %906 = vmatpush.msrb.mxu3 %v2444_v15 }
 0x260   :  { %977 = vmatpush.msrb.mxu0 %v2261_v57  ;;  %997 = vmatpush.msrb.mxu1 %v2451_v22 }
 0x261   :  { %907 = vmatpush.msrb.mxu3 %v2457_v28 }
 0x262   :  { %978 = vmatpush.msrb.mxu0 %v2269_v60  ;;  %998 = vmatpush.msrb.mxu1 %v2464_v51 }
 0x263   :  { %908 = vmatpush.msrb.mxu3 %v2470_v40 }
 0x264   :  { %979 = vmatpush.msrb.mxu0 %v2277_v61  ;;  %999 = vmatpush.msrb.mxu1 %v2477_v1 }
 0x265   :  { %909 = vmatpush.msrb.mxu3 %v2483_v59 }
 0x266   :  { %980 = vmatpush.msrb.mxu0 %v2285_v0  ;;  %1000 = vmatpush.msrb.mxu1 %v2490_v6 }
 0x267   :  { %910 = vmatpush.msrb.mxu3 %v2496_v23 }
 0x268   :  { %981 = vmatpush.msrb.mxu0 %v2293_v2  ;;  %1001 = vmatpush.msrb.mxu1 %v2503_v4 }
 0x269   :  { %911 = vmatpush.msrb.mxu3 %v2509_v12 }
 0x26a   :  { %982 = vmatpush.msrb.mxu0 %v2301_v8  ;;  %1002 = vmatpush.msrb.mxu1 %v2516_v37 }
 0x26b   :  { %912 = vmatpush.msrb.mxu3 %v2522_v46 }
 0x26c   :  { %983 = vmatpush.msrb.mxu0 %v2309_v10  ;;  %1003 = vmatpush.msrb.mxu1 %v2529_v34 }
 0x2c9   :  { %v672_v19 = vpop.f32.mrf.mxu0 }
 0x2ca   :  { %v715_v41 = vadd.f32 %v672_v19, %v167_v11 }
 0x2cc   :  { %v1243_v63 = vmul.f32 -1.442695, %v715_v41  ;;  %v692_v41 = vpop.f32.mrf.mxu1 }
 0x2ce   :  { %1284 = vpow2.f32 %v1243_v63 }
 0x2cf   :  { %v652_v38 = vpop.f32.mrf.mxu3 }
 0x2d0   :  { %v695_v18 = vadd.f32 %v652_v38, %v2786_v5 }
 0x2d2   :  { %v1242_v25 = vmul.f32 -1.442695, %v695_v18 }
 0x2d4   :  { %1286 = vpow2.f32 %v1242_v25  ;;  %v1285_v62 = vpop.eup %1284 }
 0x2d5   :  { %v719_v50 = vadd.f32 1.0, %v1285_v62  ;;  %v735_v62 = vadd.f32 %v2088_v54, %v692_v41 }
 0x2d7   :  { %vm725_vm13 = vweird.f32 %v719_v50  ;;  %v729_v2 = vand.u32 2147483647, %v719_v50 }
 0x2d9   :  { %vm730_vm15 = vcmp.eq.f32.partialorder %v729_v2, 8.507059e+37 }
 0x2da   :  { %v1287_v36 = vpop.eup %1286 }
 0x2db   :  { %v699_v10 = vadd.f32 1.0, %v1287_v36 }
 0x2dd   :  { %1288 = vrcp.f32 %v699_v10  ;;  %v711_v55 = vand.u32 2147483648, %v699_v10  ;;  %v709_v19 = vand.u32 2147483647, %v699_v10  ;;  %vm705_vm9 = vweird.f32 %v699_v10 }
 0x2de   :  { %1290 = vrcp.f32 %v719_v50 }
 0x2df   :  { %v712_v5 = vor.u32 1.1754944e-38, %v711_v55  ;;  %vm710_vm11 = vcmp.eq.f32.partialorder %v709_v19, 8.507059e+37 }
 0x2e3   :  { %v1289_v46 = vpop.eup %1288 }
 0x2e4   :  { %v1291_v34 = vpop.eup %1290  ;;  %v701_v37 = vmul.f32 %v1289_v46, %v699_v10  ;;  %vm706_vm8 = vweird.f32 %v1289_v46 }
 0x2e5   :  { %v721_v31 = vmul.f32 %v1291_v34, %v719_v50  ;;  %vm707_vm10 = vmor %vm705_vm9, %vm706_vm8  ;;  %vm726_vm12 = vweird.f32 %v1291_v34 }
 0x2e6   :  { %v702_v8 = vsub.f32 1.0, %v701_v37  ;;  %vm727_vm14 = vmor %vm725_vm13, %vm726_vm12 }
 0x2e7   :  { %v722_v63 = vsub.f32 1.0, %v721_v31 }
 0x2e8   :  { %v703_v11 = vmul.f32 %v1289_v46, %v702_v8  ;;  %v731_v8 = vand.u32 2147483648, %v719_v50  ;;  %v2788_v50 = vld [vmem:[#allocation11_spill] sm:$0xff] }
 0x2e9   :  { %v723_v12 = vmul.f32 %v1291_v34, %v722_v63 }
 0x2ea   :  { %v704_v38 = vadd.f32 %v1289_v46, %v703_v11  ;;  %v732_v11 = vor.u32 1.1754944e-38, %v731_v8 }
 0x2eb   :  { %v724_v4 = vadd.f32 %v1291_v34, %v723_v12 }
 0x2ec   :  { %v708_v36 = vsel %vm707_vm10, %v1289_v46, %v704_v38 }
 0x2ed   :  { %v713_v18 = vsel %vm710_vm11, %v712_v5, %v708_v36  ;;  %v728_v10 = vsel %vm727_vm14, %v1291_v34, %v724_v4 }
 0x2ee   :  { %v736_v25 = vmul.f32 %v735_v62, %v713_v18  ;;  %v733_v46 = vsel %vm730_vm15, %v732_v11, %v728_v10 }
 0x2f0   :  { %v737_v37 = vadd.f32 %v736_v25, %v2096_v32  ;;  %v2787_v32 = vld [vmem:[#allocation9_spill] sm:$0xff]  ;;  %v2798_v25 = vld [vmem:[#allocation23_spill] sm:$0xff] }
 0x2f2   :  { %1292 = vtanh.f32 %v737_v37 }
 0x2f8   :  { %v1293_v31 = vpop.eup %1292 }
 0x2f9   :  { %v739_v55 = vsub.f32 %v2319_v16, %v1293_v31 }
 0x2fb   :  { %v740_v19 = vmul.f32 %v739_v55, %v733_v46 }
 0x2fd   :  { %v2538_v41 = vadd.f32 %v1293_v31, %v740_v19 }
 0x2ff   :  { %762 = vmatmul.f32.vlgmr.msrb.gmra.mxu2 %v2538_v41  ;;  %782 = vmatmul.f32.vlgmr.msra.gmra.mxu3 %v2538_v41 }
 0x300   :  { %802 = vmatmul.f32.vlgmr.msra.gmra.mxu0 %v2538_v41  ;;  %1008 = vmatpush.msrb.mxu2 %v2327_v14 }
 0x301   :  { %1079 = vmatpush.msra.mxu3 %v2189_v42  ;;  %1099 = vmatpush.msra.mxu0 %v2334_v58  ;;  %v2789_v42 = vld [vmem:[#allocation13_spill] sm:$0xff] }
 0x302   :  { %1009 = vmatpush.msrb.mxu2 %v2340_v17 }
 0x303   :  { %1080 = vmatpush.msra.mxu3 %v2197_v27  ;;  %1100 = vmatpush.msra.mxu0 %v2347_v20  ;;  %v2790_v27 = vld [vmem:[#allocation12_spill] sm:$0xff] }
 0x304   :  { %1010 = vmatpush.msrb.mxu2 %v2353_v21 }
 0x305   :  { %1081 = vmatpush.msra.mxu3 %v2205_v45  ;;  %1101 = vmatpush.msra.mxu0 %v2360_v24  ;;  %v2791_v45 = vld [vmem:[#allocation21_spill] sm:$0xff] }
 0x306   :  { %1011 = vmatpush.msrb.mxu2 %v2366_v26 }
 0x307   :  { %1082 = vmatpush.msra.mxu3 %v2213_v44  ;;  %1102 = vmatpush.msra.mxu0 %v2373_v29  ;;  %v2792_v44 = vld [vmem:[#allocation14_spill] sm:$0xff] }
 0x308   :  { %1012 = vmatpush.msrb.mxu2 %v2379_v30 }
 0x309   :  { %1083 = vmatpush.msra.mxu3 %v2221_v48  ;;  %1103 = vmatpush.msra.mxu0 %v2386_v33  ;;  %v2793_v48 = vld [vmem:[#allocation6_spill] sm:$0xff] }
 0x30a   :  { %1013 = vmatpush.msrb.mxu2 %v2392_v35 }
 0x30b   :  { %1084 = vmatpush.msra.mxu3 %v2229_v49  ;;  %1104 = vmatpush.msra.mxu0 %v2399_v39  ;;  %v2794_v49 = vld [vmem:[#allocation26_spill] sm:$0xff] }
 0x30c   :  { %1014 = vmatpush.msrb.mxu2 %v2405_v43 }
 0x30d   :  { %1085 = vmatpush.msra.mxu3 %v2237_v52  ;;  %1105 = vmatpush.msra.mxu0 %v2412_v47  ;;  %v2795_v52 = vld [vmem:[#allocation16_spill] sm:$0xff] }
 0x30e   :  { %1015 = vmatpush.msrb.mxu2 %v2418_v3 }
 0x30f   :  { %1086 = vmatpush.msra.mxu3 %v2245_v53  ;;  %1106 = vmatpush.msra.mxu0 %v2425_v7  ;;  %v2796_v53 = vld [vmem:[#allocation8_spill] sm:$0xff] }
 0x310   :  { %1016 = vmatpush.msrb.mxu2 %v2431_v9 }
 0x311   :  { %1087 = vmatpush.msra.mxu3 %v2253_v56  ;;  %1107 = vmatpush.msra.mxu0 %v2438_v13  ;;  %v170_v56 = vadd.f32 %v2796_v53, %v2795_v52 }
 0x312   :  { %1017 = vmatpush.msrb.mxu2 %v2444_v15 }
 0x313   :  { %1088 = vmatpush.msra.mxu3 %v2261_v57  ;;  %1108 = vmatpush.msra.mxu0 %v2451_v22 }
 0x314   :  { %1018 = vmatpush.msrb.mxu2 %v2457_v28 }
 0x315   :  { %1089 = vmatpush.msra.mxu3 %v2269_v60  ;;  %1109 = vmatpush.msra.mxu0 %v2464_v51 }
 0x316   :  { %1019 = vmatpush.msrb.mxu2 %v2470_v40 }
 0x317   :  { %1090 = vmatpush.msra.mxu3 %v2277_v61  ;;  %1110 = vmatpush.msra.mxu0 %v2477_v1  ;;  %v2797_v61 = vld [vmem:[#allocation17_spill] sm:$0xff] }
 0x318   :  { %1020 = vmatpush.msrb.mxu2 %v2483_v59 }
 0x319   :  { %1091 = vmatpush.msra.mxu3 %v2285_v0  ;;  %1111 = vmatpush.msra.mxu0 %v2490_v6 }
 0x31a   :  { %1021 = vmatpush.msrb.mxu2 %v2496_v23 }
 0x31b   :  { %1092 = vmatpush.msra.mxu3 %v2787_v32  ;;  %1112 = vmatpush.msra.mxu0 %v2788_v50 }
 0x31c   :  { %1022 = vmatpush.msrb.mxu2 %v2789_v42 }
 0x31d   :  { %1093 = vmatpush.msra.mxu3 %v2790_v27  ;;  %1113 = vmatpush.msra.mxu0 %v2791_v45 }
 0x31e   :  { %1023 = vmatpush.msrb.mxu2 %v2792_v44 }
 0x31f   :  { %1094 = vmatpush.msra.mxu3 %v2793_v48  ;;  %1114 = vmatpush.msra.mxu0 %v2794_v49 }
 0x37d   :  { %v803_v4 = vpop.f32.mrf.mxu0 }
 0x37e   :  { %v846_v63 = vadd.f32 %v2088_v54, %v803_v4  ;;  %v2802_v4 = vld [vmem:[#allocation7_spill] sm:$0xff] }
 0x382   :  { %v763_v57 = vpop.f32.mrf.mxu2  ;;  %v783_v60 = vpop.f32.mrf.mxu3 }
 0x383   :  { %v806_v0 = vadd.f32 %v763_v57, %v2797_v61  ;;  %v826_v2 = vadd.f32 %v783_v60, %v170_v56 }
 0x385   :  { %v1244_v16 = vmul.f32 -1.442695, %v806_v0  ;;  %v1245_v58 = vmul.f32 -1.442695, %v826_v2 }
 0x387   :  { %1294 = vpow2.f32 %v1244_v16 }
 0x388   :  { %1296 = vpow2.f32 %v1245_v58 }
 0x38d   :  { %v1295_v20 = vpop.eup %1294 }
 0x38e   :  { %v1297_v24 = vpop.eup %1296  ;;  %v810_v29 = vadd.f32 1.0, %v1295_v20 }
 0x38f   :  { %v830_v33 = vadd.f32 1.0, %v1297_v24  ;;  %v2801_v24 = vld [vmem:[#allocation24_spill] sm:$0xff] }
 0x390   :  { %1298 = vrcp.f32 %v810_v29  ;;  %v822_v22 = vand.u32 2147483648, %v810_v29  ;;  %v820_v6 = vand.u32 2147483647, %v810_v29  ;;  %vm816_vm1 = vweird.f32 %v810_v29 }
 0x391   :  { %1300 = vrcp.f32 %v830_v33  ;;  %v842_v10 = vand.u32 2147483648, %v830_v33  ;;  %vm836_vm5 = vweird.f32 %v830_v33  ;;  %v840_v31 = vand.u32 2147483647, %v830_v33 }
 0x392   :  { %v823_v34 = vor.u32 1.1754944e-38, %v822_v22  ;;  %vm821_vm3 = vcmp.eq.f32.partialorder %v820_v6, 8.507059e+37 }
 0x393   :  { %v843_v46 = vor.u32 1.1754944e-38, %v842_v10  ;;  %vm841_vm7 = vcmp.eq.f32.partialorder %v840_v31, 8.507059e+37 }
 0x396   :  { %v1299_v39 = vpop.eup %1298 }
 0x397   :  { %v1301_v47 = vpop.eup %1300  ;;  %v812_v7 = vmul.f32 %v1299_v39, %v810_v29  ;;  %vm817_vm0 = vweird.f32 %v1299_v39 }
 0x398   :  { %v832_v51 = vmul.f32 %v1301_v47, %v830_v33  ;;  %vm818_vm2 = vmor %vm816_vm1, %vm817_vm0  ;;  %vm837_vm4 = vweird.f32 %v1301_v47 }
 0x399   :  { %v813_v13 = vsub.f32 1.0, %v812_v7  ;;  %vm838_vm6 = vmor %vm836_vm5, %vm837_vm4 }
 0x39a   :  { %v833_v38 = vsub.f32 1.0, %v832_v51 }
 0x39b   :  { %v814_v1 = vmul.f32 %v1299_v39, %v813_v13 }
 0x39c   :  { %v834_v18 = vmul.f32 %v1301_v47, %v833_v38 }
 0x39d   :  { %v815_v12 = vadd.f32 %v1299_v39, %v814_v1 }
 0x39e   :  { %v835_v8 = vadd.f32 %v1301_v47, %v834_v18 }
 0x39f   :  { %v819_v5 = vsel %vm818_vm2, %v1299_v39, %v815_v12  ;;  %v176_v12 = vadd.f32 %v2802_v4, %v2795_v52  ;;  %v1193_v4 = vld [vmem:[%s2707_s6 + $0x18] sm:$0xff] }
 0x3a0   :  { %v824_v62 = vsel %vm821_vm3, %v823_v34, %v819_v5  ;;  %v839_v11 = vsel %vm838_vm6, %v1301_v47, %v835_v8 }
 0x3a1   :  { %v847_v36 = vmul.f32 %v846_v63, %v824_v62  ;;  %v844_v32 = vsel %vm841_vm7, %v843_v46, %v839_v11  ;;  %v2803_v63 = vld [vmem:[#allocation19_spill] sm:$0xff] }
 0x3a3   :  { %v848_v37 = vadd.f32 %v847_v36, %v2798_v25 }
 0x3a5   :  { %1302 = vtanh.f32 %v848_v37 }
 0x3ab   :  { %v1303_v55 = vpop.eup %1302 }
 0x3ac   :  { %v850_v19 = vsub.f32 %v2538_v41, %v1303_v55 }
 0x3ae   :  { %v851_v50 = vmul.f32 %v850_v19, %v844_v32 }
 0x3b0   :  { %v2597_v27 = vadd.f32 %v1303_v55, %v851_v50 }
 0x3b2   :  { %873 = vmatmul.f32.vlgmr.msra.gmra.mxu1 %v2597_v27  ;;  %893 = vmatmul.f32.vlgmr.msra.gmra.mxu2 %v2597_v27 }
 0x3b3   :  { %913 = vmatmul.f32.vlgmr.msrb.gmra.mxu3 %v2597_v27  ;;  %1119 = vmatpush.msra.mxu1 %v2327_v14 }
 0x3b5   :  { %1120 = vmatpush.msra.mxu1 %v2340_v17  ;;  %v2799_v17 = vld [vmem:[#allocation18_spill] sm:$0xff] }
 0x3b7   :  { %1121 = vmatpush.msra.mxu1 %v2353_v21 }
 0x3b9   :  { %1122 = vmatpush.msra.mxu1 %v2366_v26 }
 0x3bb   :  { %1123 = vmatpush.msra.mxu1 %v2379_v30  ;;  %v2800_v30 = vld [vmem:[#allocation4_spill] sm:$0xff] }
 0x3bd   :  { %1124 = vmatpush.msra.mxu1 %v2392_v35  ;;  %v173_v35 = vadd.f32 %v2800_v30, %v2795_v52 }
 0x3bf   :  { %1125 = vmatpush.msra.mxu1 %v2405_v43 }
 0x3c1   :  { %1126 = vmatpush.msra.mxu1 %v2418_v3 }
 0x3c3   :  { %1127 = vmatpush.msra.mxu1 %v2431_v9 }
 0x3c5   :  { %1128 = vmatpush.msra.mxu1 %v2444_v15 }
 0x3c7   :  { %1129 = vmatpush.msra.mxu1 %v2457_v28 }
 0x3c9   :  { %1130 = vmatpush.msra.mxu1 %v2470_v40 }
 0x3cb   :  { %1131 = vmatpush.msra.mxu1 %v2483_v59 }
 0x3cd   :  { %1132 = vmatpush.msra.mxu1 %v2496_v23 }
 0x3cf   :  { %1133 = vmatpush.msra.mxu1 %v2789_v42 }
 0x3d1   :  { %1134 = vmatpush.msra.mxu1 %v2792_v44 }
 0x42f   :  { %v874_v14 = vpop.f32.mrf.mxu1 }
 0x430   :  { %v917_v21 = vadd.f32 %v874_v14, %v2799_v17 }
 0x432   :  { %v1246_v26 = vmul.f32 -1.442695, %v917_v21 }
 0x434   :  { %1304 = vpow2.f32 %v1246_v26 }
 0x435   :  { %v894_v43 = vpop.f32.mrf.mxu2 }
 0x436   :  { %v937_v3 = vadd.f32 %v894_v43, %v173_v35  ;;  %v914_v53 = vpop.f32.mrf.mxu3  ;;  %v2630_v35 = vld [vmem:[%s2704_s4] ss:$0 sm:$0xff] }
 0x437   :  { %v957_v2 = vadd.f32 %v2088_v54, %v914_v53 }
 0x438   :  { %v1247_v9 = vmul.f32 -1.442695, %v937_v3 }
 0x43a   :  { %v1305_v15 = vpop.eup %1304  ;;  %1306 = vpow2.f32 %v1247_v9 }
 0x43b   :  { %v921_v28 = vadd.f32 1.0, %v1305_v15 }
 0x43d   :  { %1308 = vrcp.f32 %v921_v28  ;;  %v933_v45 = vand.u32 2147483648, %v921_v28  ;;  %v931_v48 = vand.u32 2147483647, %v921_v28  ;;  %vm927_vm9 = vweird.f32 %v921_v28 }
 0x43f   :  { %v934_v60 = vor.u32 1.1754944e-38, %v933_v45  ;;  %vm932_vm11 = vcmp.eq.f32.partialorder %v931_v48, 8.507059e+37 }
 0x440   :  { %v1307_v40 = vpop.eup %1306 }
 0x441   :  { %v941_v59 = vadd.f32 1.0, %v1307_v40 }
 0x443   :  { %v1309_v23 = vpop.eup %1308  ;;  %1310 = vrcp.f32 %v941_v59  ;;  %v953_v39 = vand.u32 2147483648, %v941_v59  ;;  %vm947_vm13 = vweird.f32 %v941_v59  ;;  %v951_v47 = vand.u32 2147483647, %v941_v59 }
 0x444   :  { %v923_v41 = vmul.f32 %v1309_v23, %v921_v28  ;;  %vm928_vm8 = vweird.f32 %v1309_v23  ;;  %v2804_v28 = vld [vmem:[#allocation25_spill] sm:$0xff] }
 0x445   :  { %vm929_vm10 = vmor %vm927_vm9, %vm928_vm8  ;;  %v954_v22 = vor.u32 1.1754944e-38, %v953_v39  ;;  %vm952_vm15 = vcmp.eq.f32.partialorder %v951_v47, 8.507059e+37  ;;  %v1197_v47 = vld [vmem:[%s2707_s6 + $0x38] sm:$0xff] }
 0x446   :  { %v924_v42 = vsub.f32 1.0, %v923_v41 }
 0x448   :  { %v925_v44 = vmul.f32 %v1309_v23, %v924_v42 }
 0x449   :  { %v1311_v49 = vpop.eup %1310 }
 0x44a   :  { %v943_v56 = vmul.f32 %v1311_v49, %v941_v59  ;;  %v926_v57 = vadd.f32 %v1309_v23, %v925_v44  ;;  %vm948_vm12 = vweird.f32 %v1311_v49 }
 0x44b   :  { %vm949_vm14 = vmor %vm947_vm13, %vm948_vm12 }
 0x44c   :  { %v944_v61 = vsub.f32 1.0, %v943_v56  ;;  %v930_v0 = vsel %vm929_vm10, %v1309_v23, %v926_v57  ;;  %v1205_v57 = vld [vmem:[%s2707_s6 + $0x78] sm:$0xff] }
 0x44d   :  { %v935_v16 = vsel %vm932_vm11, %v934_v60, %v930_v0  ;;  %1210 = vmatpush.msra.mxu2 %v1205_v57  ;;  %v1204_v60 = vld [vmem:[%s2707_s6 + $0x70] sm:$0xff]  ;;  %v1202_v0 = vld [vmem:[%s2707_s6 + $0x60] sm:$0xff] }
 0x44e   :  { %v958_v58 = vmul.f32 %v957_v2, %v935_v16  ;;  %v945_v20 = vmul.f32 %v1311_v49, %v944_v61  ;;  %v1203_v61 = vld [vmem:[%s2707_s6 + $0x68] sm:$0xff]  ;;  %v2805_v2 = vld [vmem:[#allocation10_spill] sm:$0xff] }
 0x44f   :  { %1211 = vmatpush.msra.mxu2 %v1204_v60  ;;  %v179_v16 = vadd.f32 %v2805_v2, %v2795_v52  ;;  %v1198_v52 = vld [vmem:[%s2707_s6 + $0x40] sm:$0xff] }
 0x450   :  { %v959_v29 = vadd.f32 %v958_v58, %v2801_v24  ;;  %v946_v33 = vadd.f32 %v1311_v49, %v945_v20  ;;  %v1201_v58 = vld [vmem:[%s2707_s6 + $0x58] sm:$0xff] }
 0x451   :  { %1212 = vmatpush.msra.mxu2 %v1203_v61 }
 0x452   :  { %1312 = vtanh.f32 %v959_v29  ;;  %v950_v7 = vsel %vm949_vm14, %v1311_v49, %v946_v33  ;;  %v1200_v29 = vld [vmem:[%s2707_s6 + $0x50] sm:$0xff]  ;;  %v1199_v33 = vld [vmem:[%s2707_s6 + $0x48] sm:$0xff] }
 0x453   :  { %v955_v1 = vsel %vm952_vm15, %v954_v22, %v950_v7  ;;  %1213 = vmatpush.msra.mxu2 %v1202_v0 }
 0x455   :  { %1214 = vmatpush.msra.mxu2 %v1201_v58 }
 0x457   :  { %1215 = vmatpush.msra.mxu2 %v1200_v29 }
 0x458   :  { %v1313_v13 = vpop.eup %1312 }
 0x459   :  { %v961_v51 = vsub.f32 %v2597_v27, %v1313_v13  ;;  %1216 = vmatpush.msra.mxu2 %v1199_v33 }
 0x45b   :  { %v962_v54 = vmul.f32 %v961_v51, %v955_v1  ;;  %1217 = vmatpush.msra.mxu2 %v1198_v52  ;;  %v1196_v51 = vld [vmem:[%s2707_s6 + $0x30] sm:$0xff] }
 0x45d   :  { %v963_v6 = vadd.f32 %v1313_v13, %v962_v54  ;;  %v2806_v13 = vld [vmem:[#allocation22_spill] sm:$0xff]  ;;  %1218 = vmatpush.msra.mxu2 %v1197_v47  ;;  %v1195_v54 = vld [vmem:[%s2707_s6 + $0x28] sm:$0xff] }
 0x45f   :  { %984 = vmatmul.f32.vlgmr.msrb.gmra.mxu0 %v963_v6  ;;  %1004 = vmatmul.f32.vlgmr.msrb.gmra.mxu1 %v963_v6 }
 0x460   :  { %1024 = vmatmul.f32.vlgmr.msrb.gmra.mxu2 %v963_v6 }
 0x461   :  { %1219 = vmatpush.msra.mxu2 %v1196_v51 }
 0x463   :  { %1220 = vmatpush.msra.mxu2 %v1195_v54 }
 0x4dc   :  { %v985_v34 = vpop.f32.mrf.mxu0  ;;  %v1005_v38 = vpop.f32.mrf.mxu1 }
 0x4dd   :  { %v1028_v5 = vadd.f32 %v985_v34, %v2803_v63  ;;  %v1048_v62 = vadd.f32 %v1005_v38, %v176_v12  ;;  %v1192_v34 = vld [vmem:[%s2707_s6 + $0x10] sm:$0xff] }
 0x4df   :  { %v1248_v36 = vmul.f32 -1.442695, %v1028_v5  ;;  %v1249_v18 = vmul.f32 -1.442695, %v1048_v62  ;;  %v1191_v5 = vld [vmem:[%s2707_s6 + $0x8] sm:$0xff] }
 0x4e1   :  { %1314 = vpow2.f32 %v1248_v36  ;;  %v1190_v36 = vld [vmem:[%s2707_s6] sm:$0xff] }
 0x4e2   :  { %1316 = vpow2.f32 %v1249_v18 }
 0x4e3   :  { %v1025_v14 = vpop.f32.mrf.mxu2 }
 0x4e4   :  { %v1068_v43 = vadd.f32 %v2630_v35, %v1025_v14 }
 0x4e7   :  { %v1315_v25 = vpop.eup %1314 }
 0x4e8   :  { %v1317_v37 = vpop.eup %1316  ;;  %v1032_v8 = vadd.f32 1.0, %v1315_v25 }
 0x4e9   :  { %v1052_v10 = vadd.f32 1.0, %v1317_v37 }
 0x4ea   :  { %1318 = vrcp.f32 %v1032_v8  ;;  %v1044_v32 = vand.u32 2147483648, %v1032_v8  ;;  %v1042_v27 = vand.u32 2147483647, %v1032_v8  ;;  %vm1038_vm1 = vweird.f32 %v1032_v8 }
 0x4eb   :  { %1320 = vrcp.f32 %v1052_v10  ;;  %v1064_v23 = vand.u32 2147483648, %v1052_v10  ;;  %vm1058_vm5 = vweird.f32 %v1052_v10  ;;  %v1062_v41 = vand.u32 2147483647, %v1052_v10 }
 0x4ec   :  { %v1045_v26 = vor.u32 1.1754944e-38, %v1044_v32  ;;  %vm1043_vm3 = vcmp.eq.f32.partialorder %v1042_v27, 8.507059e+37 }
 0x4ed   :  { %v1065_v44 = vor.u32 1.1754944e-38, %v1064_v23  ;;  %vm1063_vm7 = vcmp.eq.f32.partialorder %v1062_v41, 8.507059e+37 }
 0x4f0   :  { %v1319_v31 = vpop.eup %1318 }
 0x4f1   :  { %v1321_v11 = vpop.eup %1320  ;;  %v1034_v55 = vmul.f32 %v1319_v31, %v1032_v8  ;;  %vm1039_vm0 = vweird.f32 %v1319_v31 }
 0x4f2   :  { %v1054_v19 = vmul.f32 %v1321_v11, %v1052_v10  ;;  %vm1040_vm2 = vmor %vm1038_vm1, %vm1039_vm0  ;;  %vm1059_vm4 = vweird.f32 %v1321_v11  ;;  %vm1230_vm0 = vcmask 64512  }
 0x4f3   :  { %v1035_v46 = vsub.f32 1.0, %v1034_v55  ;;  %vm1060_vm6 = vmor %vm1058_vm5, %vm1059_vm4 }
 0x4f4   :  { %v1055_v21 = vsub.f32 1.0, %v1054_v19 }
 0x4f5   :  { %v1036_v50 = vmul.f32 %v1319_v31, %v1035_v46 }
 0x4f6   :  { %v1056_v15 = vmul.f32 %v1321_v11, %v1055_v21  ;;  %v2807_v21 = vld [vmem:[#allocation20_spill] sm:$0xff] }
 0x4f7   :  { %v1037_v17 = vadd.f32 %v1319_v31, %v1036_v50 }
 0x4f8   :  { %v1057_v59 = vadd.f32 %v1321_v11, %v1056_v15 }
 0x4f9   :  { %v1041_v30 = vsel %vm1040_vm2, %v1319_v31, %v1037_v17 }
 0x4fa   :  { %v1046_v3 = vsel %vm1043_vm3, %v1045_v26, %v1041_v30  ;;  %v1061_v42 = vsel %vm1060_vm6, %v1321_v11, %v1057_v59  ;;  %v2808_v26 = vld [vmem:[#allocation5_spill] sm:$0xff] }
 0x4fb   :  { %v1069_v9 = vmul.f32 %v1068_v43, %v1046_v3  ;;  %v1066_v49 = vsel %vm1063_vm7, %v1065_v44, %v1061_v42  ;;  %v220_v30 = vadd.f32 %v2808_v26, %v2807_v21 }
 0x4fd   :  { %v1070_v40 = vadd.f32 %v1069_v9, %v2804_v28 }
 0x4ff   :  { %1322 = vtanh.f32 %v1070_v40 }
 0x505   :  { %v1323_v45 = vpop.eup %1322 }
 0x506   :  { %v1072_v48 = vsub.f32 %v963_v6, %v1323_v45  ;;  %v1194_v6 = vld [vmem:[%s2707_s6 + $0x20] sm:$0xff] }
 0x507   :  { %1221 = vmatpush.msra.mxu2 %v1194_v6 }
 0x508   :  { %v1073_v53 = vmul.f32 %v1072_v48, %v1066_v49  ;;  %v1253_v48 = vld [vmem:[%s2706_s7] ss:$0 sm:$0xff] }
 0x509   :  { %1222 = vmatpush.msra.mxu2 %v1193_v4 }
 0x50a   :  { %v2634_v56 = vadd.f32 %v1323_v45, %v1073_v53 }
 0x50b   :  { %1223 = vmatpush.msra.mxu2 %v1192_v34 }
 0x50c   :  { %1095 = vmatmul.f32.vlgmr.msra.gmra.mxu3 %v2634_v56  ;;  %1115 = vmatmul.f32.vlgmr.msra.gmra.mxu0 %v2634_v56 }
 0x50d   :  { %1135 = vmatmul.f32.vlgmr.msra.gmra.mxu1 %v2634_v56  ;;  %1224 = vmatpush.msra.mxu2 %v1191_v5 }
 0x50f   :  { %1225 = vmatpush.msra.mxu2 %v1190_v36 }
 0x589   :  { %v1116_v20 = vpop.f32.mrf.mxu0 }
 0x58a   :  { %v1159_v24 = vadd.f32 %v1116_v20, %v179_v16  ;;  %v1136_v46 = vpop.f32.mrf.mxu1 }
 0x58b   :  { %v1179_v27 = vadd.f32 %v2630_v35, %v1136_v46 }
 0x58c   :  { %v1251_v39 = vmul.f32 -1.442695, %v1159_v24 }
 0x58e   :  { %1324 = vpow2.f32 %v1251_v39 }
 0x58f   :  { %v1096_v7 = vpop.f32.mrf.mxu3 }
 0x590   :  { %v1139_v22 = vadd.f32 %v1096_v7, %v2806_v13 }
 0x592   :  { %v1250_v1 = vmul.f32 -1.442695, %v1139_v22 }
 0x594   :  { %1326 = vpow2.f32 %v1250_v1  ;;  %v1325_v12 = vpop.eup %1324 }
 0x595   :  { %v1163_v63 = vadd.f32 1.0, %v1325_v12 }
 0x597   :  { %v1175_v28 = vand.u32 2147483648, %v1163_v63  ;;  %vm1169_vm13 = vweird.f32 %v1163_v63  ;;  %v1173_v40 = vand.u32 2147483647, %v1163_v63 }
 0x599   :  { %v1176_v41 = vor.u32 1.1754944e-38, %v1175_v28  ;;  %vm1174_vm15 = vcmp.eq.f32.partialorder %v1173_v40, 8.507059e+37 }
 0x59a   :  { %v1327_v38 = vpop.eup %1326 }
 0x59b   :  { %v1143_v62 = vadd.f32 1.0, %v1327_v38 }
 0x59d   :  { %1328 = vrcp.f32 %v1143_v62  ;;  %v1155_v31 = vand.u32 2147483648, %v1143_v62  ;;  %v1153_v55 = vand.u32 2147483647, %v1143_v62  ;;  %vm1149_vm9 = vweird.f32 %v1143_v62 }
 0x59e   :  { %1330 = vrcp.f32 %v1163_v63 }
 0x59f   :  { %v1156_v50 = vor.u32 1.1754944e-38, %v1155_v31  ;;  %vm1154_vm11 = vcmp.eq.f32.partialorder %v1153_v55, 8.507059e+37 }
 0x5a3   :  { %v1329_v18 = vpop.eup %1328 }
 0x5a4   :  { %v1331_v25 = vpop.eup %1330  ;;  %v1145_v37 = vmul.f32 %v1329_v18, %v1143_v62  ;;  %vm1150_vm8 = vweird.f32 %v1329_v18 }
 0x5a5   :  { %v1165_v10 = vmul.f32 %v1331_v25, %v1163_v63  ;;  %vm1151_vm10 = vmor %vm1149_vm9, %vm1150_vm8  ;;  %vm1170_vm12 = vweird.f32 %v1331_v25 }
 0x5a6   :  { %v1146_v8 = vsub.f32 1.0, %v1145_v37  ;;  %vm1171_vm14 = vmor %vm1169_vm13, %vm1170_vm12 }
 0x5a7   :  { %v1166_v32 = vsub.f32 1.0, %v1165_v10 }
 0x5a8   :  { %v1147_v11 = vmul.f32 %v1329_v18, %v1146_v8 }
 0x5a9   :  { %v1167_v3 = vmul.f32 %v1331_v25, %v1166_v32 }
 0x5aa   :  { %v1148_v19 = vadd.f32 %v1329_v18, %v1147_v11 }
 0x5ab   :  { %v1168_v15 = vadd.f32 %v1331_v25, %v1167_v3 }
 0x5ac   :  { %v1152_v14 = vsel %vm1151_vm10, %v1329_v18, %v1148_v19 }
 0x5ad   :  { %v1157_v17 = vsel %vm1154_vm11, %v1156_v50, %v1152_v14  ;;  %v1172_v59 = vsel %vm1171_vm14, %v1331_v25, %v1168_v15 }
 0x5ae   :  { %v1180_v43 = vmul.f32 %v1179_v27, %v1157_v17  ;;  %v1177_v42 = vsel %vm1174_vm15, %v1176_v41, %v1172_v59 }
 0x5b0   :  { %v1181_v9 = vadd.f32 %v1180_v43, %v220_v30 }
 0x5b2   :  { %1332 = vtanh.f32 %v1181_v9 }
 0x5b8   :  { %v1333_v23 = vpop.eup %1332 }
 0x5b9   :  { %v1183_v35 = vsub.f32 %v2634_v56, %v1333_v23 }
 0x5bb   :  { %v1184_v45 = vmul.f32 %v1183_v35, %v1177_v42 }
 0x5bd   :  { %v1185_v44 = vadd.f32 %v1333_v23, %v1184_v45 }
 0x5bf   :  { %1226 = vmatmul.f32.vlgmr.msra.gmra.mxu2 %v1185_v44 }
 0x642   :  { %v1227_v49 = vpop.f32.mrf.mxu2 }
 0x643   :  { %v1228_v53 = vadd.f32 %v1253_v48, %v1227_v49 }
 0x645   :  { %1231 = vst.msk [vmem:[%s2708_s8] sm:$0xff] %vm1230_vm0, %v1228_v53 }

</bundles_post_ra>
